<compile_context>
chip_gen: v5e
topology: v5e:2x2
jax: 0.10.0
libtpu: 0.0.40
codegen_flags: <defaults>
</compile_context>

<pallas_src>
import numpy as np
import jax
import jax.numpy as jnp
from jax import lax
from jax.experimental import pallas as pl
from jax.experimental.pallas import tpu as pltpu


# ------------------------------- fused kernel -----------------------------------

def _make_fusion_kernel(C, H, W, has_skip, lpad):
    HW = H * W
    RPAD = W + 1

    def kernel(*refs):
        if has_skip:
            (x_ref, s_ref, wc_ref, bc_ref, wp_ref, bp_ref, awt_ref, ah_ref,
             out_ref, pad_ref, col_ref, stage_ref) = refs
        else:
            (x_ref, wc_ref, bc_ref, wp_ref, bp_ref, awt_ref, ah_ref,
             out_ref, pad_ref, col_ref, stage_ref) = refs
            s_ref = None

        # Zero only the two halo strips (interior is always rewritten before use).
        pad_ref[:, :lpad] = jnp.zeros((C, lpad), jnp.float32)
        pad_ref[:, lpad + HW:lpad + HW + RPAD] = jnp.zeros((C, RPAD), jnp.float32)

        # Column masks for the flattened-spatial shifted taps (kill row wrap-around).
        col = lax.broadcasted_iota(jnp.int32, (1, HW), 1) % W
        mask_l = (col != 0).astype(jnp.float32)        # taps that read x-1
        mask_r = (col != (W - 1)).astype(jnp.float32)  # taps that read x+1

        def conv3x3(hf, k):
            # hf: (C, HW) f32.  3x3 'SAME' conv as ONE MXU matmul with K = 9*C:
            # stage the 9 shifted (masked) taps as bf16 into the im2col scratch,
            # then (C, 9C) @ (9C, HW) with f32 accumulation.
            pad_ref[:, lpad:lpad + HW] = hf
            for t in range(9):
                dy, dx = t // 3, t % 3
                start = lpad + (dy - 1) * W + (dx - 1)
                tap = pad_ref[:, start:start + HW]
                if dx == 0:
                    tap = tap * mask_l
                elif dx == 2:
                    tap = tap * mask_r
                col_ref[t * C:(t + 1) * C, :] = tap.astype(jnp.bfloat16)
            acc = jnp.dot(wc_ref[k], col_ref[...], preferred_element_type=jnp.float32)
            return acc + bc_ref[k]                      # bias (C,1) broadcasts over lanes

        x = x_ref[0].astype(jnp.float32)                # (C, H*W)

        # rcu1: relu -> conv -> relu -> conv, + residual
        h = jnp.maximum(x, 0.0)
        h = conv3x3(h, 0)
        h = jnp.maximum(h, 0.0)
        h = conv3x3(h, 1)
        z = h + x
        if has_skip:
            z = z + s_ref[0].astype(jnp.float32)
        # rcu2
        h = jnp.maximum(z, 0.0)
        h = conv3x3(h, 2)
        h = jnp.maximum(h, 0.0)
        h = conv3x3(h, 3)
        z = z + h                                       # (C, H*W) f32

        # 1x1 projection + bias BEFORE the upsample (linear ops commute; bilinear
        # align_corners rows sum to 1, so moving the bias is exact) -> 4x fewer proj FLOPs.
        p = jnp.dot(wp_ref[...], z.astype(jnp.bfloat16),
                    preferred_element_type=jnp.float32) + bp_ref[...]          # (C, H*W)

        # Separable bilinear 2x upsample (align_corners=True):
        #   de-flatten (C, HW) -> (C, H, W) via static ref-slice copies,
        #   then two batched MXU matmuls (over W, then over H).
        pb = p.astype(jnp.bfloat16)
        for hh in range(H):
            stage_ref[:, hh, :] = pb[:, hh * W:(hh + 1) * W]
        p3 = stage_ref[...]                                                    # (C, H, W) bf16
        awt_b = jnp.broadcast_to(awt_ref[...], (C, W, 2 * W))                  # (C, W, 2W) bf16
        uw = jnp.einsum("chw,cwj->chj", p3, awt_b,
                        preferred_element_type=jnp.float32)                    # (C, H, 2W) f32
        ah_b = jnp.broadcast_to(ah_ref[...], (C, 2 * H, H))                    # (C, 2H, H) bf16
        out3 = jnp.einsum("cih,chj->cij", ah_b, uw.astype(jnp.bfloat16),
                          preferred_element_type=jnp.float32)                  # (C, 2H, 2W) f32
        out_ref[0] = out3.astype(out_ref.dtype)

    return kernel


# ------------------------------- glue / parameters ------------------------------

def interp_matrix_align_corners(n_in, scale):
    """Row-interpolation matrix A (n_out, n_in) for bilinear, align_corners=True (numpy)."""
    n_out = int(n_in * scale)
    A = np.zeros((n_out, n_in), dtype=np.float32)
    if n_out == 1 or n_in == 1:
        A[:, 0] = 1.0
        return A
    for i in range(n_out):
        src = i * (n_in - 1) / (n_out - 1)
        lo = min(int(np.floor(src)), n_in - 1)
        frac = src - lo
        A[i, lo] += 1.0 - frac
        if frac > 0.0:
            A[i, lo + 1] += frac
    return A


def init_fusion_block_params(key, feature_dim):
    C = feature_dim
    ks = jax.random.split(key, 10)
    std3 = 1.0 / np.sqrt(9 * C)
    std1 = 1.0 / np.sqrt(C)
    conv_w = lambda k: jax.random.normal(k, (3, 3, C, C), jnp.float32) * std3   # HWIO
    bias = lambda k: jax.random.normal(k, (C,), jnp.float32) * 0.1
    return dict(
        w11=conv_w(ks[0]), b11=bias(ks[1]),
        w12=conv_w(ks[2]), b12=bias(ks[3]),
        w21=conv_w(ks[4]), b21=bias(ks[5]),
        w22=conv_w(ks[6]), b22=bias(ks[7]),
        wp=jax.random.normal(ks[8], (C, C), jnp.float32) * std1,   # (out, in)
        bp=jax.random.normal(ks[9], (C,), jnp.float32) * 0.1,
    )


def fusion_block_forward(params, x0_nchw, x1_nchw=None):
    """FusionBlock.forward(*xs). Inputs NCHW; output NCHW (B, C, 2H, 2W)."""
    B, C, H, W = x0_nchw.shape
    HW = H * W
    LPAD = ((W + 1 + 127) // 128) * 128                      # 128-aligned interior start

    x0 = x0_nchw.reshape(B, C, HW)                           # free view: lane-dense (C, H*W)

    # Conv weights HWIO -> (4, O, 9*I) bf16 for the K=9C im2col matmul; biases (4, C, 1) f32.
    ws = jnp.stack([params["w11"], params["w12"], params["w21"], params["w22"]])   # (4,3,3,I,O)
    wc = ws.transpose(0, 4, 1, 2, 3).reshape(4, C, 9 * C).astype(jnp.bfloat16)
    bc = jnp.stack([params["b11"], params["b12"], params["b21"], params["b22"]]
                   ).reshape(4, C, 1).astype(jnp.float32)
    wp = params["wp"].astype(jnp.bfloat16)                   # (out, in)
    bp = params["bp"].reshape(C, 1).astype(jnp.float32)

    # Separable bilinear-2x operators (tiny: (W, 2W) and (2H, H)), bf16 for the MXU.
    awt = jnp.asarray(interp_matrix_align_corners(W, 2).T).astype(jnp.bfloat16)     # (W, 2W)
    ahm = jnp.asarray(interp_matrix_align_corners(H, 2)).astype(jnp.bfloat16)       # (2H, H)

    has_skip = x1_nchw is not None
    img_spec = pl.BlockSpec((1, C, HW), lambda b: (b, 0, 0))
    args, in_specs = [x0], [img_spec]
    if has_skip:
        args.append(x1_nchw.reshape(B, C, HW))
        in_specs.append(img_spec)
    args += [wc, bc, wp, bp, awt, ahm]
    in_specs += [
        pl.BlockSpec(wc.shape, lambda b: (0, 0, 0)),
        pl.BlockSpec(bc.shape, lambda b: (0, 0, 0)),
        pl.BlockSpec(wp.shape, lambda b: (0, 0)),
        pl.BlockSpec(bp.shape, lambda b: (0, 0)),
        pl.BlockSpec(awt.shape, lambda b: (0, 0)),
        pl.BlockSpec(ahm.shape, lambda b: (0, 0)),
    ]

    out = pl.pallas_call(
        _make_fusion_kernel(C, H, W, has_skip, LPAD),
        out_shape=jax.ShapeDtypeStruct((B, C, 2 * H, 2 * W), jnp.float32),
        grid=(B,),
        in_specs=in_specs,
        out_specs=pl.BlockSpec((1, C, 2 * H, 2 * W), lambda b: (b, 0, 0, 0)),
        scratch_shapes=[
            pltpu.VMEM((C, LPAD + HW + W + 1), jnp.float32),   # halo-padded flattened image
            pltpu.VMEM((9 * C, HW), jnp.bfloat16),             # im2col (9 taps stacked on K)
            pltpu.VMEM((C, H, W), jnp.bfloat16),               # de-flatten staging for upsample
        ],
        compiler_params=pltpu.CompilerParams(
            dimension_semantics=("parallel",),
            vmem_limit_bytes=48 * 1024 * 1024,
        ),
    )(*args)
    return out


# --------------------------------- reference ------------------------------------

def _conv3x3_ref(x, w, b):
    y = lax.conv_general_dilated(x, w, (1, 1), "SAME",
                                 dimension_numbers=("NHWC", "HWIO", "NHWC"))
    return y + b.reshape(1, 1, 1, -1)


def fusion_block_ref(params, x0_nchw, x1_nchw=None):
    x = jnp.transpose(x0_nchw, (0, 2, 3, 1)).astype(jnp.float32)

    def rcu(x, wA, bA, wB, bB):
        h = jnp.maximum(x, 0.0)
        h = _conv3x3_ref(h, wA, bA)
        h = jnp.maximum(h, 0.0)
        h = _conv3x3_ref(h, wB, bB)
        return h + x

    z = rcu(x, params["w11"], params["b11"], params["w12"], params["b12"])
    if x1_nchw is not None:
        z = z + jnp.transpose(x1_nchw, (0, 2, 3, 1)).astype(jnp.float32)
    z = rcu(z, params["w21"], params["b21"], params["w22"], params["b22"])
    B, H, W, C = z.shape
    ah = jnp.asarray(interp_matrix_align_corners(H, 2))
    aw = jnp.asarray(interp_matrix_align_corners(W, 2))
    z = jnp.einsum("ih,bhwc->biwc", ah, z)
    z = jnp.einsum("jw,biwc->bijc", aw, z)
    out = jnp.einsum("oc,bijc->bijo", params["wp"], z) + params["bp"].reshape(1, 1, 1, -1)
    return jnp.transpose(out, (0, 3, 1, 2))


if __name__ == "__main__":
    key = jax.random.PRNGKey(0)
    kp, k0, k1 = jax.random.split(key, 3)
    B, C, H, W = 2, 8, 16, 16
    params = init_fusion_block_params(kp, C)
    x0 = jax.random.normal(k0, (B, C, H, W), jnp.float32)
    x1 = jax.random.normal(k1, (B, C, H, W), jnp.float32)

    # two-input path (with skip)
    out2 = jax.block_until_ready(fusion_block_forward(params, x0, x1))
    assert out2.shape == (B, C, 2 * H, 2 * W), out2.shape
    ref2 = fusion_block_ref(params, x0, x1)
    err2 = float(jnp.max(jnp.abs(out2 - ref2)))
    assert err2 < 5e-2, f"two-input max abs err {err2}"   # bf16 MXU operands -> ~1e-2 level error

    # single-input path (no skip DMA'd)
    out1 = jax.block_until_ready(fusion_block_forward(params, x0))
    ref1 = fusion_block_ref(params, x0)
    err1 = float(jnp.max(jnp.abs(out1 - ref1)))
    assert err1 < 5e-2, f"one-input max abs err {err1}"

    print("KERNEL_OK")
</pallas_src>

<mosaic_0001>
module attributes {stable_mosaic.version = 11 : i64} {
  func.func @kernel(%arg0: i32, %arg1: memref<1x8x256xf32, #tpu.memory_space<vmem>>, %arg2: memref<1x8x256xf32, #tpu.memory_space<vmem>>, %arg3: memref<4x8x72xbf16, #tpu.memory_space<vmem>>, %arg4: memref<4x8x1xf32, #tpu.memory_space<vmem>>, %arg5: memref<8x8xbf16, #tpu.memory_space<vmem>>, %arg6: memref<8x1xf32, #tpu.memory_space<vmem>>, %arg7: memref<16x32xbf16, #tpu.memory_space<vmem>>, %arg8: memref<32x16xbf16, #tpu.memory_space<vmem>>, %arg9: memref<1x8x32x32xf32, #tpu.memory_space<vmem>>, %arg10: memref<8x401xf32, #tpu.memory_space<vmem>>, %arg11: memref<72x256xbf16, #tpu.memory_space<vmem>>, %arg12: memref<8x16x16xbf16, #tpu.memory_space<vmem>>) attributes {dimension_semantics = [#tpu.dimension_semantics<parallel>], iteration_bounds = array<i64: 2>, scalar_prefetch = 0 : i64, scratch_operands = 3 : i64, tpu.core_type = #tpu.core_type<tc>, window_params = [{transform_indices = @transform_0, window_bounds = array<i64: 1, 8, 256>}, {transform_indices = @transform_1, window_bounds = array<i64: 1, 8, 256>}, {pipeline_mode = #tpu.pipeline_mode<synchronous>, transform_indices = @transform_2, window_bounds = array<i64: 4, 8, 72>}, {pipeline_mode = #tpu.pipeline_mode<synchronous>, transform_indices = @transform_3, window_bounds = array<i64: 4, 8, 1>}, {pipeline_mode = #tpu.pipeline_mode<synchronous>, transform_indices = @transform_4, window_bounds = array<i64: 8, 8>}, {pipeline_mode = #tpu.pipeline_mode<synchronous>, transform_indices = @transform_5, window_bounds = array<i64: 8, 1>}, {pipeline_mode = #tpu.pipeline_mode<synchronous>, transform_indices = @transform_6, window_bounds = array<i64: 16, 32>}, {pipeline_mode = #tpu.pipeline_mode<synchronous>, transform_indices = @transform_7, window_bounds = array<i64: 32, 16>}, {transform_indices = @transform_8, window_bounds = array<i64: 1, 8, 32, 32>}]} {
    %cst = arith.constant 0.000000e+00 : f32
    %0 = vector.broadcast %cst : f32 to vector<8x128xf32>
    %c0 = arith.constant 0 : index
    %c0_0 = arith.constant 0 : index
    %1 = vector.load %arg10[%c0, %c0_0] : memref<8x401xf32, #tpu.memory_space<vmem>>, vector<8x128xf32>
    tpu.vector_store %arg10[%c0, %c0_0], %0 {strides = array<i32>} : memref<8x401xf32, #tpu.memory_space<vmem>>, vector<8x128xf32>,
    %cst_1 = arith.constant 0.000000e+00 : f32
    %2 = vector.broadcast %cst_1 : f32 to vector<8x17xf32>
    %c0_2 = arith.constant 0 : index
    %c384 = arith.constant 384 : index
    %3 = vector.load %arg10[%c0_2, %c384] : memref<8x401xf32, #tpu.memory_space<vmem>>, vector<8x17xf32>
    tpu.vector_store %arg10[%c0_2, %c384], %2 {strides = array<i32>} : memref<8x401xf32, #tpu.memory_space<vmem>>, vector<8x17xf32>,
    %4 = tpu.iota {dimensions = array<i32: 1>} : vector<1x256xi32>
    %c16_i32 = arith.constant 16 : i32
    %c0_i32 = arith.constant 0 : i32
    %5 = arith.cmpi eq, %c16_i32, %c0_i32 : i32
    %c1_i32 = arith.constant 1 : i32
    %6 = arith.select %5, %c1_i32, %c16_i32 : i32
    %7 = vector.broadcast %6 : i32 to vector<1x256xi32>
    %8 = arith.remsi %4, %7 : vector<1x256xi32>
    %c0_i32_3 = arith.constant 0 : i32
    %9 = vector.broadcast %c0_i32_3 : i32 to vector<1x256xi32>
    %10 = arith.cmpi ne, %8, %9 : vector<1x256xi32>
    %c0_i32_4 = arith.constant 0 : i32
    %11 = vector.broadcast %c0_i32_4 : i32 to vector<1x256xi32>
    %12 = arith.cmpi slt, %8, %11 : vector<1x256xi32>
    %c0_i32_5 = arith.constant 0 : i32
    %13 = arith.cmpi slt, %6, %c0_i32_5 : i32
    %14 = vector.broadcast %13 : i1 to vector<1x256xi1>
    %15 = vector.broadcast %14 : vector<1x256xi1> to vector<1x256xi1>
    %16 = arith.xori %12, %15 : vector<1x256xi1>
    %17 = arith.andi %16, %10 : vector<1x256xi1>
    %18 = vector.broadcast %6 : i32 to vector<1x256xi32>
    %19 = arith.addi %8, %18 : vector<1x256xi32>
    %20 = arith.select %17, %19, %8 : vector<1x256xi1>, vector<1x256xi32>
    %c0_i32_6 = arith.constant 0 : i32
    %21 = vector.broadcast %c0_i32_6 : i32 to vector<1x256xi32>
    %22 = arith.cmpi ne, %20, %21 : vector<1x256xi32>
    %23 = arith.extui %22 : vector<1x256xi1> to vector<1x256xi32>
    %24 = arith.sitofp %23 : vector<1x256xi32> to vector<1x256xf32>
    %c15_i32 = arith.constant 15 : i32
    %25 = vector.broadcast %c15_i32 : i32 to vector<1x256xi32>
    %26 = arith.cmpi ne, %20, %25 : vector<1x256xi32>
    %27 = arith.extui %26 : vector<1x256xi1> to vector<1x256xi32>
    %28 = arith.sitofp %27 : vector<1x256xi32> to vector<1x256xf32>
    %c0_7 = arith.constant 0 : index
    %c0_8 = arith.constant 0 : index
    %c0_9 = arith.constant 0 : index
    %29 = vector.load %arg1[%c0_7, %c0_8, %c0_9] : memref<1x8x256xf32, #tpu.memory_space<vmem>>, vector<1x8x256xf32>
    %30 = vector.shape_cast %29 : vector<1x8x256xf32> to vector<8x256xf32>
    %cst_10 = arith.constant 0.000000e+00 : f32
    %31 = vector.broadcast %cst_10 : f32 to vector<8x256xf32>
    %32 = arith.maximumf %30, %31 : vector<8x256xf32>
    %c0_11 = arith.constant 0 : index
    %c128 = arith.constant 128 : index
    %33 = vector.load %arg10[%c0_11, %c128] : memref<8x401xf32, #tpu.memory_space<vmem>>, vector<8x256xf32>
    tpu.vector_store %arg10[%c0_11, %c128], %32 {strides = array<i32>} : memref<8x401xf32, #tpu.memory_space<vmem>>, vector<8x256xf32>,
    %c0_12 = arith.constant 0 : index
    %c111 = arith.constant 111 : index
    %34 = vector.load %arg10[%c0_12, %c111] : memref<8x401xf32, #tpu.memory_space<vmem>>, vector<8x256xf32>
    %35 = vector.broadcast %24 : vector<1x256xf32> to vector<8x256xf32>
    %36 = arith.mulf %34, %35 : vector<8x256xf32>
    %37 = arith.truncf %36 : vector<8x256xf32> to vector<8x256xbf16>
    %c0_13 = arith.constant 0 : index
    %c0_14 = arith.constant 0 : index
    %38 = vector.load %arg11[%c0_13, %c0_14] : memref<72x256xbf16, #tpu.memory_space<vmem>>, vector<8x256xbf16>
    tpu.vector_store %arg11[%c0_13, %c0_14], %37 {strides = array<i32>} : memref<72x256xbf16, #tpu.memory_space<vmem>>, vector<8x256xbf16>,
    %c0_15 = arith.constant 0 : index
    %c112 = arith.constant 112 : index
    %39 = vector.load %arg10[%c0_15, %c112] : memref<8x401xf32, #tpu.memory_space<vmem>>, vector<8x256xf32>
    %40 = arith.truncf %39 : vector<8x256xf32> to vector<8x256xbf16>
    %c8 = arith.constant 8 : index
    %c0_16 = arith.constant 0 : index
    %41 = vector.load %arg11[%c8, %c0_16] : memref<72x256xbf16, #tpu.memory_space<vmem>>, vector<8x256xbf16>
    tpu.vector_store %arg11[%c8, %c0_16], %40 {strides = array<i32>} : memref<72x256xbf16, #tpu.memory_space<vmem>>, vector<8x256xbf16>,
    %c0_17 = arith.constant 0 : index
    %c113 = arith.constant 113 : index
    %42 = vector.load %arg10[%c0_17, %c113] : memref<8x401xf32, #tpu.memory_space<vmem>>, vector<8x256xf32>
    %43 = vector.broadcast %28 : vector<1x256xf32> to vector<8x256xf32>
    %44 = arith.mulf %42, %43 : vector<8x256xf32>
    %45 = arith.truncf %44 : vector<8x256xf32> to vector<8x256xbf16>
    %c16 = arith.constant 16 : index
    %c0_18 = arith.constant 0 : index
    %46 = vector.load %arg11[%c16, %c0_18] : memref<72x256xbf16, #tpu.memory_space<vmem>>, vector<8x256xbf16>
    tpu.vector_store %arg11[%c16, %c0_18], %45 {strides = array<i32>} : memref<72x256xbf16, #tpu.memory_space<vmem>>, vector<8x256xbf16>,
    %c0_19 = arith.constant 0 : index
    %c127 = arith.constant 127 : index
    %47 = vector.load %arg10[%c0_19, %c127] : memref<8x401xf32, #tpu.memory_space<vmem>>, vector<8x256xf32>
    %48 = vector.broadcast %24 : vector<1x256xf32> to vector<8x256xf32>
    %49 = arith.mulf %47, %48 : vector<8x256xf32>
    %50 = arith.truncf %49 : vector<8x256xf32> to vector<8x256xbf16>
    %c24 = arith.constant 24 : index
    %c0_20 = arith.constant 0 : index
    %51 = vector.load %arg11[%c24, %c0_20] : memref<72x256xbf16, #tpu.memory_space<vmem>>, vector<8x256xbf16>
    tpu.vector_store %arg11[%c24, %c0_20], %50 {strides = array<i32>} : memref<72x256xbf16, #tpu.memory_space<vmem>>, vector<8x256xbf16>,
    %c0_21 = arith.constant 0 : index
    %c128_22 = arith.constant 128 : index
    %52 = vector.load %arg10[%c0_21, %c128_22] : memref<8x401xf32, #tpu.memory_space<vmem>>, vector<8x256xf32>
    %53 = arith.truncf %52 : vector<8x256xf32> to vector<8x256xbf16>
    %c32 = arith.constant 32 : index
    %c0_23 = arith.constant 0 : index
    %54 = vector.load %arg11[%c32, %c0_23] : memref<72x256xbf16, #tpu.memory_space<vmem>>, vector<8x256xbf16>
    tpu.vector_store %arg11[%c32, %c0_23], %53 {strides = array<i32>} : memref<72x256xbf16, #tpu.memory_space<vmem>>, vector<8x256xbf16>,
    %c0_24 = arith.constant 0 : index
    %c129 = arith.constant 129 : index
    %55 = vector.load %arg10[%c0_24, %c129] : memref<8x401xf32, #tpu.memory_space<vmem>>, vector<8x256xf32>
    %56 = vector.broadcast %28 : vector<1x256xf32> to vector<8x256xf32>
    %57 = arith.mulf %55, %56 : vector<8x256xf32>
    %58 = arith.truncf %57 : vector<8x256xf32> to vector<8x256xbf16>
    %c40 = arith.constant 40 : index
    %c0_25 = arith.constant 0 : index
    %59 = vector.load %arg11[%c40, %c0_25] : memref<72x256xbf16, #tpu.memory_space<vmem>>, vector<8x256xbf16>
    tpu.vector_store %arg11[%c40, %c0_25], %58 {strides = array<i32>} : memref<72x256xbf16, #tpu.memory_space<vmem>>, vector<8x256xbf16>,
    %c0_26 = arith.constant 0 : index
    %c143 = arith.constant 143 : index
    %60 = vector.load %arg10[%c0_26, %c143] : memref<8x401xf32, #tpu.memory_space<vmem>>, vector<8x256xf32>
    %61 = vector.broadcast %24 : vector<1x256xf32> to vector<8x256xf32>
    %62 = arith.mulf %60, %61 : vector<8x256xf32>
    %63 = arith.truncf %62 : vector<8x256xf32> to vector<8x256xbf16>
    %c48 = arith.constant 48 : index
    %c0_27 = arith.constant 0 : index
    %64 = vector.load %arg11[%c48, %c0_27] : memref<72x256xbf16, #tpu.memory_space<vmem>>, vector<8x256xbf16>
    tpu.vector_store %arg11[%c48, %c0_27], %63 {strides = array<i32>} : memref<72x256xbf16, #tpu.memory_space<vmem>>, vector<8x256xbf16>,
    %c0_28 = arith.constant 0 : index
    %c144 = arith.constant 144 : index
    %65 = vector.load %arg10[%c0_28, %c144] : memref<8x401xf32, #tpu.memory_space<vmem>>, vector<8x256xf32>
    %66 = arith.truncf %65 : vector<8x256xf32> to vector<8x256xbf16>
    %c56 = arith.constant 56 : index
    %c0_29 = arith.constant 0 : index
    %67 = vector.load %arg11[%c56, %c0_29] : memref<72x256xbf16, #tpu.memory_space<vmem>>, vector<8x256xbf16>
    tpu.vector_store %arg11[%c56, %c0_29], %66 {strides = array<i32>} : memref<72x256xbf16, #tpu.memory_space<vmem>>, vector<8x256xbf16>,
    %c0_30 = arith.constant 0 : index
    %c145 = arith.constant 145 : index
    %68 = vector.load %arg10[%c0_30, %c145] : memref<8x401xf32, #tpu.memory_space<vmem>>, vector<8x256xf32>
    %69 = vector.broadcast %28 : vector<1x256xf32> to vector<8x256xf32>
    %70 = arith.mulf %68, %69 : vector<8x256xf32>
    %71 = arith.truncf %70 : vector<8x256xf32> to vector<8x256xbf16>
    %c64 = arith.constant 64 : index
    %c0_31 = arith.constant 0 : index
    %72 = vector.load %arg11[%c64, %c0_31] : memref<72x256xbf16, #tpu.memory_space<vmem>>, vector<8x256xbf16>
    tpu.vector_store %arg11[%c64, %c0_31], %71 {strides = array<i32>} : memref<72x256xbf16, #tpu.memory_space<vmem>>, vector<8x256xbf16>,
    %c0_32 = arith.constant 0 : index
    %c0_33 = arith.constant 0 : index
    %c0_34 = arith.constant 0 : index
    %73 = vector.load %arg3[%c0_32, %c0_33, %c0_34] : memref<4x8x72xbf16, #tpu.memory_space<vmem>>, vector<1x8x72xbf16>
    %74 = vector.shape_cast %73 : vector<1x8x72xbf16> to vector<8x72xbf16>
    %c0_35 = arith.constant 0 : index
    %c0_36 = arith.constant 0 : index
    %75 = vector.load %arg11[%c0_35, %c0_36] : memref<72x256xbf16, #tpu.memory_space<vmem>>, vector<72x256xbf16>
    %cst_37 = arith.constant dense<0.000000e+00> : vector<8x256xf32>
    %76 = tpu.matmul %74, %75, %cst_37 {dimension_numbers = #tpu.dot_dimension_numbers<[1], [0], [0], [1], [0, 0, 1, 1], [], []>} : vector<8x72xbf16>, vector<72x256xbf16>, vector<8x256xf32> -> vector<8x256xf32>
    %c0_38 = arith.constant 0 : index
    %c0_39 = arith.constant 0 : index
    %c0_40 = arith.constant 0 : index
    %77 = vector.load %arg4[%c0_38, %c0_39, %c0_40] : memref<4x8x1xf32, #tpu.memory_space<vmem>>, vector<1x8x1xf32>
    %78 = vector.shape_cast %77 : vector<1x8x1xf32> to vector<8x1xf32>
    %79 = vector.broadcast %78 : vector<8x1xf32> to vector<8x256xf32>
    %80 = arith.addf %76, %79 : vector<8x256xf32>
    %cst_41 = arith.constant 0.000000e+00 : f32
    %81 = vector.broadcast %cst_41 : f32 to vector<8x256xf32>
    %82 = arith.maximumf %80, %81 : vector<8x256xf32>
    %c0_42 = arith.constant 0 : index
    %c128_43 = arith.constant 128 : index
    %83 = vector.load %arg10[%c0_42, %c128_43] : memref<8x401xf32, #tpu.memory_space<vmem>>, vector<8x256xf32>
    tpu.vector_store %arg10[%c0_42, %c128_43], %82 {strides = array<i32>} : memref<8x401xf32, #tpu.memory_space<vmem>>, vector<8x256xf32>,
    %c0_44 = arith.constant 0 : index
    %c111_45 = arith.constant 111 : index
    %84 = vector.load %arg10[%c0_44, %c111_45] : memref<8x401xf32, #tpu.memory_space<vmem>>, vector<8x256xf32>
    %85 = vector.broadcast %24 : vector<1x256xf32> to vector<8x256xf32>
    %86 = arith.mulf %84, %85 : vector<8x256xf32>
    %87 = arith.truncf %86 : vector<8x256xf32> to vector<8x256xbf16>
    %c0_46 = arith.constant 0 : index
    %c0_47 = arith.constant 0 : index
    %88 = vector.load %arg11[%c0_46, %c0_47] : memref<72x256xbf16, #tpu.memory_space<vmem>>, vector<8x256xbf16>
    tpu.vector_store %arg11[%c0_46, %c0_47], %87 {strides = array<i32>} : memref<72x256xbf16, #tpu.memory_space<vmem>>, vector<8x256xbf16>,
    %c0_48 = arith.constant 0 : index
    %c112_49 = arith.constant 112 : index
    %89 = vector.load %arg10[%c0_48, %c112_49] : memref<8x401xf32, #tpu.memory_space<vmem>>, vector<8x256xf32>
    %90 = arith.truncf %89 : vector<8x256xf32> to vector<8x256xbf16>
    %c8_50 = arith.constant 8 : index
    %c0_51 = arith.constant 0 : index
    %91 = vector.load %arg11[%c8_50, %c0_51] : memref<72x256xbf16, #tpu.memory_space<vmem>>, vector<8x256xbf16>
    tpu.vector_store %arg11[%c8_50, %c0_51], %90 {strides = array<i32>} : memref<72x256xbf16, #tpu.memory_space<vmem>>, vector<8x256xbf16>,
    %c0_52 = arith.constant 0 : index
    %c113_53 = arith.constant 113 : index
    %92 = vector.load %arg10[%c0_52, %c113_53] : memref<8x401xf32, #tpu.memory_space<vmem>>, vector<8x256xf32>
    %93 = vector.broadcast %28 : vector<1x256xf32> to vector<8x256xf32>
    %94 = arith.mulf %92, %93 : vector<8x256xf32>
    %95 = arith.truncf %94 : vector<8x256xf32> to vector<8x256xbf16>
    %c16_54 = arith.constant 16 : index
    %c0_55 = arith.constant 0 : index
    %96 = vector.load %arg11[%c16_54, %c0_55] : memref<72x256xbf16, #tpu.memory_space<vmem>>, vector<8x256xbf16>
    tpu.vector_store %arg11[%c16_54, %c0_55], %95 {strides = array<i32>} : memref<72x256xbf16, #tpu.memory_space<vmem>>, vector<8x256xbf16>,
    %c0_56 = arith.constant 0 : index
    %c127_57 = arith.constant 127 : index
    %97 = vector.load %arg10[%c0_56, %c127_57] : memref<8x401xf32, #tpu.memory_space<vmem>>, vector<8x256xf32>
    %98 = vector.broadcast %24 : vector<1x256xf32> to vector<8x256xf32>
    %99 = arith.mulf %97, %98 : vector<8x256xf32>
    %100 = arith.truncf %99 : vector<8x256xf32> to vector<8x256xbf16>
    %c24_58 = arith.constant 24 : index
    %c0_59 = arith.constant 0 : index
    %101 = vector.load %arg11[%c24_58, %c0_59] : memref<72x256xbf16, #tpu.memory_space<vmem>>, vector<8x256xbf16>
    tpu.vector_store %arg11[%c24_58, %c0_59], %100 {strides = array<i32>} : memref<72x256xbf16, #tpu.memory_space<vmem>>, vector<8x256xbf16>,
    %c0_60 = arith.constant 0 : index
    %c128_61 = arith.constant 128 : index
    %102 = vector.load %arg10[%c0_60, %c128_61] : memref<8x401xf32, #tpu.memory_space<vmem>>, vector<8x256xf32>
    %103 = arith.truncf %102 : vector<8x256xf32> to vector<8x256xbf16>
    %c32_62 = arith.constant 32 : index
    %c0_63 = arith.constant 0 : index
    %104 = vector.load %arg11[%c32_62, %c0_63] : memref<72x256xbf16, #tpu.memory_space<vmem>>, vector<8x256xbf16>
    tpu.vector_store %arg11[%c32_62, %c0_63], %103 {strides = array<i32>} : memref<72x256xbf16, #tpu.memory_space<vmem>>, vector<8x256xbf16>,
    %c0_64 = arith.constant 0 : index
    %c129_65 = arith.constant 129 : index
    %105 = vector.load %arg10[%c0_64, %c129_65] : memref<8x401xf32, #tpu.memory_space<vmem>>, vector<8x256xf32>
    %106 = vector.broadcast %28 : vector<1x256xf32> to vector<8x256xf32>
    %107 = arith.mulf %105, %106 : vector<8x256xf32>
    %108 = arith.truncf %107 : vector<8x256xf32> to vector<8x256xbf16>
    %c40_66 = arith.constant 40 : index
    %c0_67 = arith.constant 0 : index
    %109 = vector.load %arg11[%c40_66, %c0_67] : memref<72x256xbf16, #tpu.memory_space<vmem>>, vector<8x256xbf16>
    tpu.vector_store %arg11[%c40_66, %c0_67], %108 {strides = array<i32>} : memref<72x256xbf16, #tpu.memory_space<vmem>>, vector<8x256xbf16>,
    %c0_68 = arith.constant 0 : index
    %c143_69 = arith.constant 143 : index
    %110 = vector.load %arg10[%c0_68, %c143_69] : memref<8x401xf32, #tpu.memory_space<vmem>>, vector<8x256xf32>
    %111 = vector.broadcast %24 : vector<1x256xf32> to vector<8x256xf32>
    %112 = arith.mulf %110, %111 : vector<8x256xf32>
    %113 = arith.truncf %112 : vector<8x256xf32> to vector<8x256xbf16>
    %c48_70 = arith.constant 48 : index
    %c0_71 = arith.constant 0 : index
    %114 = vector.load %arg11[%c48_70, %c0_71] : memref<72x256xbf16, #tpu.memory_space<vmem>>, vector<8x256xbf16>
    tpu.vector_store %arg11[%c48_70, %c0_71], %113 {strides = array<i32>} : memref<72x256xbf16, #tpu.memory_space<vmem>>, vector<8x256xbf16>,
    %c0_72 = arith.constant 0 : index
    %c144_73 = arith.constant 144 : index
    %115 = vector.load %arg10[%c0_72, %c144_73] : memref<8x401xf32, #tpu.memory_space<vmem>>, vector<8x256xf32>
    %116 = arith.truncf %115 : vector<8x256xf32> to vector<8x256xbf16>
    %c56_74 = arith.constant 56 : index
    %c0_75 = arith.constant 0 : index
    %117 = vector.load %arg11[%c56_74, %c0_75] : memref<72x256xbf16, #tpu.memory_space<vmem>>, vector<8x256xbf16>
    tpu.vector_store %arg11[%c56_74, %c0_75], %116 {strides = array<i32>} : memref<72x256xbf16, #tpu.memory_space<vmem>>, vector<8x256xbf16>,
    %c0_76 = arith.constant 0 : index
    %c145_77 = arith.constant 145 : index
    %118 = vector.load %arg10[%c0_76, %c145_77] : memref<8x401xf32, #tpu.memory_space<vmem>>, vector<8x256xf32>
    %119 = vector.broadcast %28 : vector<1x256xf32> to vector<8x256xf32>
    %120 = arith.mulf %118, %119 : vector<8x256xf32>
    %121 = arith.truncf %120 : vector<8x256xf32> to vector<8x256xbf16>
    %c64_78 = arith.constant 64 : index
    %c0_79 = arith.constant 0 : index
    %122 = vector.load %arg11[%c64_78, %c0_79] : memref<72x256xbf16, #tpu.memory_space<vmem>>, vector<8x256xbf16>
    tpu.vector_store %arg11[%c64_78, %c0_79], %121 {strides = array<i32>} : memref<72x256xbf16, #tpu.memory_space<vmem>>, vector<8x256xbf16>,
    %c1 = arith.constant 1 : index
    %c0_80 = arith.constant 0 : index
    %c0_81 = arith.constant 0 : index
    %123 = vector.load %arg3[%c1, %c0_80, %c0_81] : memref<4x8x72xbf16, #tpu.memory_space<vmem>>, vector<1x8x72xbf16>
    %124 = vector.shape_cast %123 : vector<1x8x72xbf16> to vector<8x72xbf16>
    %c0_82 = arith.constant 0 : index
    %c0_83 = arith.constant 0 : index
    %125 = vector.load %arg11[%c0_82, %c0_83] : memref<72x256xbf16, #tpu.memory_space<vmem>>, vector<72x256xbf16>
    %cst_84 = arith.constant dense<0.000000e+00> : vector<8x256xf32>
    %126 = tpu.matmul %124, %125, %cst_84 {dimension_numbers = #tpu.dot_dimension_numbers<[1], [0], [0], [1], [0, 0, 1, 1], [], []>} : vector<8x72xbf16>, vector<72x256xbf16>, vector<8x256xf32> -> vector<8x256xf32>
    %c1_85 = arith.constant 1 : index
    %c0_86 = arith.constant 0 : index
    %c0_87 = arith.constant 0 : index
    %127 = vector.load %arg4[%c1_85, %c0_86, %c0_87] : memref<4x8x1xf32, #tpu.memory_space<vmem>>, vector<1x8x1xf32>
    %128 = vector.shape_cast %127 : vector<1x8x1xf32> to vector<8x1xf32>
    %129 = vector.broadcast %128 : vector<8x1xf32> to vector<8x256xf32>
    %130 = arith.addf %126, %129 : vector<8x256xf32>
    %131 = arith.addf %130, %30 : vector<8x256xf32>
    %c0_88 = arith.constant 0 : index
    %c0_89 = arith.constant 0 : index
    %c0_90 = arith.constant 0 : index
    %132 = vector.load %arg2[%c0_88, %c0_89, %c0_90] : memref<1x8x256xf32, #tpu.memory_space<vmem>>, vector<1x8x256xf32>
    %133 = vector.shape_cast %132 : vector<1x8x256xf32> to vector<8x256xf32>
    %134 = arith.addf %131, %133 : vector<8x256xf32>
    %cst_91 = arith.constant 0.000000e+00 : f32
    %135 = vector.broadcast %cst_91 : f32 to vector<8x256xf32>
    %136 = arith.maximumf %134, %135 : vector<8x256xf32>
    %c0_92 = arith.constant 0 : index
    %c128_93 = arith.constant 128 : index
    %137 = vector.load %arg10[%c0_92, %c128_93] : memref<8x401xf32, #tpu.memory_space<vmem>>, vector<8x256xf32>
    tpu.vector_store %arg10[%c0_92, %c128_93], %136 {strides = array<i32>} : memref<8x401xf32, #tpu.memory_space<vmem>>, vector<8x256xf32>,
    %c0_94 = arith.constant 0 : index
    %c111_95 = arith.constant 111 : index
    %138 = vector.load %arg10[%c0_94, %c111_95] : memref<8x401xf32, #tpu.memory_space<vmem>>, vector<8x256xf32>
    %139 = vector.broadcast %24 : vector<1x256xf32> to vector<8x256xf32>
    %140 = arith.mulf %138, %139 : vector<8x256xf32>
    %141 = arith.truncf %140 : vector<8x256xf32> to vector<8x256xbf16>
    %c0_96 = arith.constant 0 : index
    %c0_97 = arith.constant 0 : index
    %142 = vector.load %arg11[%c0_96, %c0_97] : memref<72x256xbf16, #tpu.memory_space<vmem>>, vector<8x256xbf16>
    tpu.vector_store %arg11[%c0_96, %c0_97], %141 {strides = array<i32>} : memref<72x256xbf16, #tpu.memory_space<vmem>>, vector<8x256xbf16>,
    %c0_98 = arith.constant 0 : index
    %c112_99 = arith.constant 112 : index
    %143 = vector.load %arg10[%c0_98, %c112_99] : memref<8x401xf32, #tpu.memory_space<vmem>>, vector<8x256xf32>
    %144 = arith.truncf %143 : vector<8x256xf32> to vector<8x256xbf16>
    %c8_100 = arith.constant 8 : index
    %c0_101 = arith.constant 0 : index
    %145 = vector.load %arg11[%c8_100, %c0_101] : memref<72x256xbf16, #tpu.memory_space<vmem>>, vector<8x256xbf16>
    tpu.vector_store %arg11[%c8_100, %c0_101], %144 {strides = array<i32>} : memref<72x256xbf16, #tpu.memory_space<vmem>>, vector<8x256xbf16>,
    %c0_102 = arith.constant 0 : index
    %c113_103 = arith.constant 113 : index
    %146 = vector.load %arg10[%c0_102, %c113_103] : memref<8x401xf32, #tpu.memory_space<vmem>>, vector<8x256xf32>
    %147 = vector.broadcast %28 : vector<1x256xf32> to vector<8x256xf32>
    %148 = arith.mulf %146, %147 : vector<8x256xf32>
    %149 = arith.truncf %148 : vector<8x256xf32> to vector<8x256xbf16>
    %c16_104 = arith.constant 16 : index
    %c0_105 = arith.constant 0 : index
    %150 = vector.load %arg11[%c16_104, %c0_105] : memref<72x256xbf16, #tpu.memory_space<vmem>>, vector<8x256xbf16>
    tpu.vector_store %arg11[%c16_104, %c0_105], %149 {strides = array<i32>} : memref<72x256xbf16, #tpu.memory_space<vmem>>, vector<8x256xbf16>,
    %c0_106 = arith.constant 0 : index
    %c127_107 = arith.constant 127 : index
    %151 = vector.load %arg10[%c0_106, %c127_107] : memref<8x401xf32, #tpu.memory_space<vmem>>, vector<8x256xf32>
    %152 = vector.broadcast %24 : vector<1x256xf32> to vector<8x256xf32>
    %153 = arith.mulf %151, %152 : vector<8x256xf32>
    %154 = arith.truncf %153 : vector<8x256xf32> to vector<8x256xbf16>
    %c24_108 = arith.constant 24 : index
    %c0_109 = arith.constant 0 : index
    %155 = vector.load %arg11[%c24_108, %c0_109] : memref<72x256xbf16, #tpu.memory_space<vmem>>, vector<8x256xbf16>
    tpu.vector_store %arg11[%c24_108, %c0_109], %154 {strides = array<i32>} : memref<72x256xbf16, #tpu.memory_space<vmem>>, vector<8x256xbf16>,
    %c0_110 = arith.constant 0 : index
    %c128_111 = arith.constant 128 : index
    %156 = vector.load %arg10[%c0_110, %c128_111] : memref<8x401xf32, #tpu.memory_space<vmem>>, vector<8x256xf32>
    %157 = arith.truncf %156 : vector<8x256xf32> to vector<8x256xbf16>
    %c32_112 = arith.constant 32 : index
    %c0_113 = arith.constant 0 : index
    %158 = vector.load %arg11[%c32_112, %c0_113] : memref<72x256xbf16, #tpu.memory_space<vmem>>, vector<8x256xbf16>
    tpu.vector_store %arg11[%c32_112, %c0_113], %157 {strides = array<i32>} : memref<72x256xbf16, #tpu.memory_space<vmem>>, vector<8x256xbf16>,
    %c0_114 = arith.constant 0 : index
    %c129_115 = arith.constant 129 : index
    %159 = vector.load %arg10[%c0_114, %c129_115] : memref<8x401xf32, #tpu.memory_space<vmem>>, vector<8x256xf32>
    %160 = vector.broadcast %28 : vector<1x256xf32> to vector<8x256xf32>
    %161 = arith.mulf %159, %160 : vector<8x256xf32>
    %162 = arith.truncf %161 : vector<8x256xf32> to vector<8x256xbf16>
    %c40_116 = arith.constant 40 : index
    %c0_117 = arith.constant 0 : index
    %163 = vector.load %arg11[%c40_116, %c0_117] : memref<72x256xbf16, #tpu.memory_space<vmem>>, vector<8x256xbf16>
    tpu.vector_store %arg11[%c40_116, %c0_117], %162 {strides = array<i32>} : memref<72x256xbf16, #tpu.memory_space<vmem>>, vector<8x256xbf16>,
    %c0_118 = arith.constant 0 : index
    %c143_119 = arith.constant 143 : index
    %164 = vector.load %arg10[%c0_118, %c143_119] : memref<8x401xf32, #tpu.memory_space<vmem>>, vector<8x256xf32>
    %165 = vector.broadcast %24 : vector<1x256xf32> to vector<8x256xf32>
    %166 = arith.mulf %164, %165 : vector<8x256xf32>
    %167 = arith.truncf %166 : vector<8x256xf32> to vector<8x256xbf16>
    %c48_120 = arith.constant 48 : index
    %c0_121 = arith.constant 0 : index
    %168 = vector.load %arg11[%c48_120, %c0_121] : memref<72x256xbf16, #tpu.memory_space<vmem>>, vector<8x256xbf16>
    tpu.vector_store %arg11[%c48_120, %c0_121], %167 {strides = array<i32>} : memref<72x256xbf16, #tpu.memory_space<vmem>>, vector<8x256xbf16>,
    %c0_122 = arith.constant 0 : index
    %c144_123 = arith.constant 144 : index
    %169 = vector.load %arg10[%c0_122, %c144_123] : memref<8x401xf32, #tpu.memory_space<vmem>>, vector<8x256xf32>
    %170 = arith.truncf %169 : vector<8x256xf32> to vector<8x256xbf16>
    %c56_124 = arith.constant 56 : index
    %c0_125 = arith.constant 0 : index
    %171 = vector.load %arg11[%c56_124, %c0_125] : memref<72x256xbf16, #tpu.memory_space<vmem>>, vector<8x256xbf16>
    tpu.vector_store %arg11[%c56_124, %c0_125], %170 {strides = array<i32>} : memref<72x256xbf16, #tpu.memory_space<vmem>>, vector<8x256xbf16>,
    %c0_126 = arith.constant 0 : index
    %c145_127 = arith.constant 145 : index
    %172 = vector.load %arg10[%c0_126, %c145_127] : memref<8x401xf32, #tpu.memory_space<vmem>>, vector<8x256xf32>
    %173 = vector.broadcast %28 : vector<1x256xf32> to vector<8x256xf32>
    %174 = arith.mulf %172, %173 : vector<8x256xf32>
    %175 = arith.truncf %174 : vector<8x256xf32> to vector<8x256xbf16>
    %c64_128 = arith.constant 64 : index
    %c0_129 = arith.constant 0 : index
    %176 = vector.load %arg11[%c64_128, %c0_129] : memref<72x256xbf16, #tpu.memory_space<vmem>>, vector<8x256xbf16>
    tpu.vector_store %arg11[%c64_128, %c0_129], %175 {strides = array<i32>} : memref<72x256xbf16, #tpu.memory_space<vmem>>, vector<8x256xbf16>,
    %c2 = arith.constant 2 : index
    %c0_130 = arith.constant 0 : index
    %c0_131 = arith.constant 0 : index
    %177 = vector.load %arg3[%c2, %c0_130, %c0_131] : memref<4x8x72xbf16, #tpu.memory_space<vmem>>, vector<1x8x72xbf16>
    %178 = vector.shape_cast %177 : vector<1x8x72xbf16> to vector<8x72xbf16>
    %c0_132 = arith.constant 0 : index
    %c0_133 = arith.constant 0 : index
    %179 = vector.load %arg11[%c0_132, %c0_133] : memref<72x256xbf16, #tpu.memory_space<vmem>>, vector<72x256xbf16>
    %cst_134 = arith.constant dense<0.000000e+00> : vector<8x256xf32>
    %180 = tpu.matmul %178, %179, %cst_134 {dimension_numbers = #tpu.dot_dimension_numbers<[1], [0], [0], [1], [0, 0, 1, 1], [], []>} : vector<8x72xbf16>, vector<72x256xbf16>, vector<8x256xf32> -> vector<8x256xf32>
    %c2_135 = arith.constant 2 : index
    %c0_136 = arith.constant 0 : index
    %c0_137 = arith.constant 0 : index
    %181 = vector.load %arg4[%c2_135, %c0_136, %c0_137] : memref<4x8x1xf32, #tpu.memory_space<vmem>>, vector<1x8x1xf32>
    %182 = vector.shape_cast %181 : vector<1x8x1xf32> to vector<8x1xf32>
    %183 = vector.broadcast %182 : vector<8x1xf32> to vector<8x256xf32>
    %184 = arith.addf %180, %183 : vector<8x256xf32>
    %cst_138 = arith.constant 0.000000e+00 : f32
    %185 = vector.broadcast %cst_138 : f32 to vector<8x256xf32>
    %186 = arith.maximumf %184, %185 : vector<8x256xf32>
    %c0_139 = arith.constant 0 : index
    %c128_140 = arith.constant 128 : index
    %187 = vector.load %arg10[%c0_139, %c128_140] : memref<8x401xf32, #tpu.memory_space<vmem>>, vector<8x256xf32>
    tpu.vector_store %arg10[%c0_139, %c128_140], %186 {strides = array<i32>} : memref<8x401xf32, #tpu.memory_space<vmem>>, vector<8x256xf32>,
    %c0_141 = arith.constant 0 : index
    %c111_142 = arith.constant 111 : index
    %188 = vector.load %arg10[%c0_141, %c111_142] : memref<8x401xf32, #tpu.memory_space<vmem>>, vector<8x256xf32>
    %189 = vector.broadcast %24 : vector<1x256xf32> to vector<8x256xf32>
    %190 = arith.mulf %188, %189 : vector<8x256xf32>
    %191 = arith.truncf %190 : vector<8x256xf32> to vector<8x256xbf16>
    %c0_143 = arith.constant 0 : index
    %c0_144 = arith.constant 0 : index
    %192 = vector.load %arg11[%c0_143, %c0_144] : memref<72x256xbf16, #tpu.memory_space<vmem>>, vector<8x256xbf16>
    tpu.vector_store %arg11[%c0_143, %c0_144], %191 {strides = array<i32>} : memref<72x256xbf16, #tpu.memory_space<vmem>>, vector<8x256xbf16>,
    %c0_145 = arith.constant 0 : index
    %c112_146 = arith.constant 112 : index
    %193 = vector.load %arg10[%c0_145, %c112_146] : memref<8x401xf32, #tpu.memory_space<vmem>>, vector<8x256xf32>
    %194 = arith.truncf %193 : vector<8x256xf32> to vector<8x256xbf16>
    %c8_147 = arith.constant 8 : index
    %c0_148 = arith.constant 0 : index
    %195 = vector.load %arg11[%c8_147, %c0_148] : memref<72x256xbf16, #tpu.memory_space<vmem>>, vector<8x256xbf16>
    tpu.vector_store %arg11[%c8_147, %c0_148], %194 {strides = array<i32>} : memref<72x256xbf16, #tpu.memory_space<vmem>>, vector<8x256xbf16>,
    %c0_149 = arith.constant 0 : index
    %c113_150 = arith.constant 113 : index
    %196 = vector.load %arg10[%c0_149, %c113_150] : memref<8x401xf32, #tpu.memory_space<vmem>>, vector<8x256xf32>
    %197 = vector.broadcast %28 : vector<1x256xf32> to vector<8x256xf32>
    %198 = arith.mulf %196, %197 : vector<8x256xf32>
    %199 = arith.truncf %198 : vector<8x256xf32> to vector<8x256xbf16>
    %c16_151 = arith.constant 16 : index
    %c0_152 = arith.constant 0 : index
    %200 = vector.load %arg11[%c16_151, %c0_152] : memref<72x256xbf16, #tpu.memory_space<vmem>>, vector<8x256xbf16>
    tpu.vector_store %arg11[%c16_151, %c0_152], %199 {strides = array<i32>} : memref<72x256xbf16, #tpu.memory_space<vmem>>, vector<8x256xbf16>,
    %c0_153 = arith.constant 0 : index
    %c127_154 = arith.constant 127 : index
    %201 = vector.load %arg10[%c0_153, %c127_154] : memref<8x401xf32, #tpu.memory_space<vmem>>, vector<8x256xf32>
    %202 = vector.broadcast %24 : vector<1x256xf32> to vector<8x256xf32>
    %203 = arith.mulf %201, %202 : vector<8x256xf32>
    %204 = arith.truncf %203 : vector<8x256xf32> to vector<8x256xbf16>
    %c24_155 = arith.constant 24 : index
    %c0_156 = arith.constant 0 : index
    %205 = vector.load %arg11[%c24_155, %c0_156] : memref<72x256xbf16, #tpu.memory_space<vmem>>, vector<8x256xbf16>
    tpu.vector_store %arg11[%c24_155, %c0_156], %204 {strides = array<i32>} : memref<72x256xbf16, #tpu.memory_space<vmem>>, vector<8x256xbf16>,
    %c0_157 = arith.constant 0 : index
    %c128_158 = arith.constant 128 : index
    %206 = vector.load %arg10[%c0_157, %c128_158] : memref<8x401xf32, #tpu.memory_space<vmem>>, vector<8x256xf32>
    %207 = arith.truncf %206 : vector<8x256xf32> to vector<8x256xbf16>
    %c32_159 = arith.constant 32 : index
    %c0_160 = arith.constant 0 : index
    %208 = vector.load %arg11[%c32_159, %c0_160] : memref<72x256xbf16, #tpu.memory_space<vmem>>, vector<8x256xbf16>
    tpu.vector_store %arg11[%c32_159, %c0_160], %207 {strides = array<i32>} : memref<72x256xbf16, #tpu.memory_space<vmem>>, vector<8x256xbf16>,
    %c0_161 = arith.constant 0 : index
    %c129_162 = arith.constant 129 : index
    %209 = vector.load %arg10[%c0_161, %c129_162] : memref<8x401xf32, #tpu.memory_space<vmem>>, vector<8x256xf32>
    %210 = vector.broadcast %28 : vector<1x256xf32> to vector<8x256xf32>
    %211 = arith.mulf %209, %210 : vector<8x256xf32>
    %212 = arith.truncf %211 : vector<8x256xf32> to vector<8x256xbf16>
    %c40_163 = arith.constant 40 : index
    %c0_164 = arith.constant 0 : index
    %213 = vector.load %arg11[%c40_163, %c0_164] : memref<72x256xbf16, #tpu.memory_space<vmem>>, vector<8x256xbf16>
    tpu.vector_store %arg11[%c40_163, %c0_164], %212 {strides = array<i32>} : memref<72x256xbf16, #tpu.memory_space<vmem>>, vector<8x256xbf16>,
    %c0_165 = arith.constant 0 : index
    %c143_166 = arith.constant 143 : index
    %214 = vector.load %arg10[%c0_165, %c143_166] : memref<8x401xf32, #tpu.memory_space<vmem>>, vector<8x256xf32>
    %215 = vector.broadcast %24 : vector<1x256xf32> to vector<8x256xf32>
    %216 = arith.mulf %214, %215 : vector<8x256xf32>
    %217 = arith.truncf %216 : vector<8x256xf32> to vector<8x256xbf16>
    %c48_167 = arith.constant 48 : index
    %c0_168 = arith.constant 0 : index
    %218 = vector.load %arg11[%c48_167, %c0_168] : memref<72x256xbf16, #tpu.memory_space<vmem>>, vector<8x256xbf16>
    tpu.vector_store %arg11[%c48_167, %c0_168], %217 {strides = array<i32>} : memref<72x256xbf16, #tpu.memory_space<vmem>>, vector<8x256xbf16>,
    %c0_169 = arith.constant 0 : index
    %c144_170 = arith.constant 144 : index
    %219 = vector.load %arg10[%c0_169, %c144_170] : memref<8x401xf32, #tpu.memory_space<vmem>>, vector<8x256xf32>
    %220 = arith.truncf %219 : vector<8x256xf32> to vector<8x256xbf16>
    %c56_171 = arith.constant 56 : index
    %c0_172 = arith.constant 0 : index
    %221 = vector.load %arg11[%c56_171, %c0_172] : memref<72x256xbf16, #tpu.memory_space<vmem>>, vector<8x256xbf16>
    tpu.vector_store %arg11[%c56_171, %c0_172], %220 {strides = array<i32>} : memref<72x256xbf16, #tpu.memory_space<vmem>>, vector<8x256xbf16>,
    %c0_173 = arith.constant 0 : index
    %c145_174 = arith.constant 145 : index
    %222 = vector.load %arg10[%c0_173, %c145_174] : memref<8x401xf32, #tpu.memory_space<vmem>>, vector<8x256xf32>
    %223 = vector.broadcast %28 : vector<1x256xf32> to vector<8x256xf32>
    %224 = arith.mulf %222, %223 : vector<8x256xf32>
    %225 = arith.truncf %224 : vector<8x256xf32> to vector<8x256xbf16>
    %c64_175 = arith.constant 64 : index
    %c0_176 = arith.constant 0 : index
    %226 = vector.load %arg11[%c64_175, %c0_176] : memref<72x256xbf16, #tpu.memory_space<vmem>>, vector<8x256xbf16>
    tpu.vector_store %arg11[%c64_175, %c0_176], %225 {strides = array<i32>} : memref<72x256xbf16, #tpu.memory_space<vmem>>, vector<8x256xbf16>,
    %c3 = arith.constant 3 : index
    %c0_177 = arith.constant 0 : index
    %c0_178 = arith.constant 0 : index
    %227 = vector.load %arg3[%c3, %c0_177, %c0_178] : memref<4x8x72xbf16, #tpu.memory_space<vmem>>, vector<1x8x72xbf16>
    %228 = vector.shape_cast %227 : vector<1x8x72xbf16> to vector<8x72xbf16>
    %c0_179 = arith.constant 0 : index
    %c0_180 = arith.constant 0 : index
    %229 = vector.load %arg11[%c0_179, %c0_180] : memref<72x256xbf16, #tpu.memory_space<vmem>>, vector<72x256xbf16>
    %cst_181 = arith.constant dense<0.000000e+00> : vector<8x256xf32>
    %230 = tpu.matmul %228, %229, %cst_181 {dimension_numbers = #tpu.dot_dimension_numbers<[1], [0], [0], [1], [0, 0, 1, 1], [], []>} : vector<8x72xbf16>, vector<72x256xbf16>, vector<8x256xf32> -> vector<8x256xf32>
    %c3_182 = arith.constant 3 : index
    %c0_183 = arith.constant 0 : index
    %c0_184 = arith.constant 0 : index
    %231 = vector.load %arg4[%c3_182, %c0_183, %c0_184] : memref<4x8x1xf32, #tpu.memory_space<vmem>>, vector<1x8x1xf32>
    %232 = vector.shape_cast %231 : vector<1x8x1xf32> to vector<8x1xf32>
    %233 = vector.broadcast %232 : vector<8x1xf32> to vector<8x256xf32>
    %234 = arith.addf %230, %233 : vector<8x256xf32>
    %235 = arith.addf %134, %234 : vector<8x256xf32>
    %c0_185 = arith.constant 0 : index
    %c0_186 = arith.constant 0 : index
    %236 = vector.load %arg5[%c0_185, %c0_186] : memref<8x8xbf16, #tpu.memory_space<vmem>>, vector<8x8xbf16>
    %237 = arith.truncf %235 : vector<8x256xf32> to vector<8x256xbf16>
    %cst_187 = arith.constant dense<0.000000e+00> : vector<8x256xf32>
    %238 = tpu.matmul %236, %237, %cst_187 {dimension_numbers = #tpu.dot_dimension_numbers<[1], [0], [0], [1], [0, 0, 1, 1], [], []>} : vector<8x8xbf16>, vector<8x256xbf16>, vector<8x256xf32> -> vector<8x256xf32>
    %c0_188 = arith.constant 0 : index
    %c0_189 = arith.constant 0 : index
    %239 = vector.load %arg6[%c0_188, %c0_189] : memref<8x1xf32, #tpu.memory_space<vmem>>, vector<8x1xf32>
    %240 = vector.broadcast %239 : vector<8x1xf32> to vector<8x256xf32>
    %241 = arith.addf %238, %240 : vector<8x256xf32>
    %242 = arith.truncf %241 : vector<8x256xf32> to vector<8x256xbf16>
    %243 = vector.extract_strided_slice %242 {offsets = [0, 0], sizes = [8, 16], strides = [1, 1]} : vector<8x256xbf16> to vector<8x16xbf16>
    %c0_190 = arith.constant 0 : index
    %c0_191 = arith.constant 0 : index
    %c0_192 = arith.constant 0 : index
    %244 = vector.load %arg12[%c0_190, %c0_191, %c0_192] : memref<8x16x16xbf16, #tpu.memory_space<vmem>>, vector<8x1x16xbf16>
    %245 = vector.shape_cast %244 : vector<8x1x16xbf16> to vector<8x16xbf16>
    %246 = vector.shape_cast %243 : vector<8x16xbf16> to vector<8x1x16xbf16>
    tpu.vector_store %arg12[%c0_190, %c0_191, %c0_192], %246 {strides = array<i32>} : memref<8x16x16xbf16, #tpu.memory_space<vmem>>, vector<8x1x16xbf16>,
    %247 = vector.extract_strided_slice %242 {offsets = [0, 16], sizes = [8, 16], strides = [1, 1]} : vector<8x256xbf16> to vector<8x16xbf16>
    %c0_193 = arith.constant 0 : index
    %c1_194 = arith.constant 1 : index
    %c0_195 = arith.constant 0 : index
    %248 = vector.load %arg12[%c0_193, %c1_194, %c0_195] : memref<8x16x16xbf16, #tpu.memory_space<vmem>>, vector<8x1x16xbf16>
    %249 = vector.shape_cast %248 : vector<8x1x16xbf16> to vector<8x16xbf16>
    %250 = vector.shape_cast %247 : vector<8x16xbf16> to vector<8x1x16xbf16>
    tpu.vector_store %arg12[%c0_193, %c1_194, %c0_195], %250 {strides = array<i32>} : memref<8x16x16xbf16, #tpu.memory_space<vmem>>, vector<8x1x16xbf16>,
    %251 = vector.extract_strided_slice %242 {offsets = [0, 32], sizes = [8, 16], strides = [1, 1]} : vector<8x256xbf16> to vector<8x16xbf16>
    %c0_196 = arith.constant 0 : index
    %c2_197 = arith.constant 2 : index
    %c0_198 = arith.constant 0 : index
    %252 = vector.load %arg12[%c0_196, %c2_197, %c0_198] : memref<8x16x16xbf16, #tpu.memory_space<vmem>>, vector<8x1x16xbf16>
    %253 = vector.shape_cast %252 : vector<8x1x16xbf16> to vector<8x16xbf16>
    %254 = vector.shape_cast %251 : vector<8x16xbf16> to vector<8x1x16xbf16>
    tpu.vector_store %arg12[%c0_196, %c2_197, %c0_198], %254 {strides = array<i32>} : memref<8x16x16xbf16, #tpu.memory_space<vmem>>, vector<8x1x16xbf16>,
    %255 = vector.extract_strided_slice %242 {offsets = [0, 48], sizes = [8, 16], strides = [1, 1]} : vector<8x256xbf16> to vector<8x16xbf16>
    %c0_199 = arith.constant 0 : index
    %c3_200 = arith.constant 3 : index
    %c0_201 = arith.constant 0 : index
    %256 = vector.load %arg12[%c0_199, %c3_200, %c0_201] : memref<8x16x16xbf16, #tpu.memory_space<vmem>>, vector<8x1x16xbf16>
    %257 = vector.shape_cast %256 : vector<8x1x16xbf16> to vector<8x16xbf16>
    %258 = vector.shape_cast %255 : vector<8x16xbf16> to vector<8x1x16xbf16>
    tpu.vector_store %arg12[%c0_199, %c3_200, %c0_201], %258 {strides = array<i32>} : memref<8x16x16xbf16, #tpu.memory_space<vmem>>, vector<8x1x16xbf16>,
    %259 = vector.extract_strided_slice %242 {offsets = [0, 64], sizes = [8, 16], strides = [1, 1]} : vector<8x256xbf16> to vector<8x16xbf16>
    %c0_202 = arith.constant 0 : index
    %c4 = arith.constant 4 : index
    %c0_203 = arith.constant 0 : index
    %260 = vector.load %arg12[%c0_202, %c4, %c0_203] : memref<8x16x16xbf16, #tpu.memory_space<vmem>>, vector<8x1x16xbf16>
    %261 = vector.shape_cast %260 : vector<8x1x16xbf16> to vector<8x16xbf16>
    %262 = vector.shape_cast %259 : vector<8x16xbf16> to vector<8x1x16xbf16>
    tpu.vector_store %arg12[%c0_202, %c4, %c0_203], %262 {strides = array<i32>} : memref<8x16x16xbf16, #tpu.memory_space<vmem>>, vector<8x1x16xbf16>,
    %263 = vector.extract_strided_slice %242 {offsets = [0, 80], sizes = [8, 16], strides = [1, 1]} : vector<8x256xbf16> to vector<8x16xbf16>
    %c0_204 = arith.constant 0 : index
    %c5 = arith.constant 5 : index
    %c0_205 = arith.constant 0 : index
    %264 = vector.load %arg12[%c0_204, %c5, %c0_205] : memref<8x16x16xbf16, #tpu.memory_space<vmem>>, vector<8x1x16xbf16>
    %265 = vector.shape_cast %264 : vector<8x1x16xbf16> to vector<8x16xbf16>
    %266 = vector.shape_cast %263 : vector<8x16xbf16> to vector<8x1x16xbf16>
    tpu.vector_store %arg12[%c0_204, %c5, %c0_205], %266 {strides = array<i32>} : memref<8x16x16xbf16, #tpu.memory_space<vmem>>, vector<8x1x16xbf16>,
    %267 = vector.extract_strided_slice %242 {offsets = [0, 96], sizes = [8, 16], strides = [1, 1]} : vector<8x256xbf16> to vector<8x16xbf16>
    %c0_206 = arith.constant 0 : index
    %c6 = arith.constant 6 : index
    %c0_207 = arith.constant 0 : index
    %268 = vector.load %arg12[%c0_206, %c6, %c0_207] : memref<8x16x16xbf16, #tpu.memory_space<vmem>>, vector<8x1x16xbf16>
    %269 = vector.shape_cast %268 : vector<8x1x16xbf16> to vector<8x16xbf16>
    %270 = vector.shape_cast %267 : vector<8x16xbf16> to vector<8x1x16xbf16>
    tpu.vector_store %arg12[%c0_206, %c6, %c0_207], %270 {strides = array<i32>} : memref<8x16x16xbf16, #tpu.memory_space<vmem>>, vector<8x1x16xbf16>,
    %271 = vector.extract_strided_slice %242 {offsets = [0, 112], sizes = [8, 16], strides = [1, 1]} : vector<8x256xbf16> to vector<8x16xbf16>
    %c0_208 = arith.constant 0 : index
    %c7 = arith.constant 7 : index
    %c0_209 = arith.constant 0 : index
    %272 = vector.load %arg12[%c0_208, %c7, %c0_209] : memref<8x16x16xbf16, #tpu.memory_space<vmem>>, vector<8x1x16xbf16>
    %273 = vector.shape_cast %272 : vector<8x1x16xbf16> to vector<8x16xbf16>
    %274 = vector.shape_cast %271 : vector<8x16xbf16> to vector<8x1x16xbf16>
    tpu.vector_store %arg12[%c0_208, %c7, %c0_209], %274 {strides = array<i32>} : memref<8x16x16xbf16, #tpu.memory_space<vmem>>, vector<8x1x16xbf16>,
    %275 = vector.extract_strided_slice %242 {offsets = [0, 128], sizes = [8, 16], strides = [1, 1]} : vector<8x256xbf16> to vector<8x16xbf16>
    %c0_210 = arith.constant 0 : index
    %c8_211 = arith.constant 8 : index
    %c0_212 = arith.constant 0 : index
    %276 = vector.load %arg12[%c0_210, %c8_211, %c0_212] : memref<8x16x16xbf16, #tpu.memory_space<vmem>>, vector<8x1x16xbf16>
    %277 = vector.shape_cast %276 : vector<8x1x16xbf16> to vector<8x16xbf16>
    %278 = vector.shape_cast %275 : vector<8x16xbf16> to vector<8x1x16xbf16>
    tpu.vector_store %arg12[%c0_210, %c8_211, %c0_212], %278 {strides = array<i32>} : memref<8x16x16xbf16, #tpu.memory_space<vmem>>, vector<8x1x16xbf16>,
    %279 = vector.extract_strided_slice %242 {offsets = [0, 144], sizes = [8, 16], strides = [1, 1]} : vector<8x256xbf16> to vector<8x16xbf16>
    %c0_213 = arith.constant 0 : index
    %c9 = arith.constant 9 : index
    %c0_214 = arith.constant 0 : index
    %280 = vector.load %arg12[%c0_213, %c9, %c0_214] : memref<8x16x16xbf16, #tpu.memory_space<vmem>>, vector<8x1x16xbf16>
    %281 = vector.shape_cast %280 : vector<8x1x16xbf16> to vector<8x16xbf16>
    %282 = vector.shape_cast %279 : vector<8x16xbf16> to vector<8x1x16xbf16>
    tpu.vector_store %arg12[%c0_213, %c9, %c0_214], %282 {strides = array<i32>} : memref<8x16x16xbf16, #tpu.memory_space<vmem>>, vector<8x1x16xbf16>,
    %283 = vector.extract_strided_slice %242 {offsets = [0, 160], sizes = [8, 16], strides = [1, 1]} : vector<8x256xbf16> to vector<8x16xbf16>
    %c0_215 = arith.constant 0 : index
    %c10 = arith.constant 10 : index
    %c0_216 = arith.constant 0 : index
    %284 = vector.load %arg12[%c0_215, %c10, %c0_216] : memref<8x16x16xbf16, #tpu.memory_space<vmem>>, vector<8x1x16xbf16>
    %285 = vector.shape_cast %284 : vector<8x1x16xbf16> to vector<8x16xbf16>
    %286 = vector.shape_cast %283 : vector<8x16xbf16> to vector<8x1x16xbf16>
    tpu.vector_store %arg12[%c0_215, %c10, %c0_216], %286 {strides = array<i32>} : memref<8x16x16xbf16, #tpu.memory_space<vmem>>, vector<8x1x16xbf16>,
    %287 = vector.extract_strided_slice %242 {offsets = [0, 176], sizes = [8, 16], strides = [1, 1]} : vector<8x256xbf16> to vector<8x16xbf16>
    %c0_217 = arith.constant 0 : index
    %c11 = arith.constant 11 : index
    %c0_218 = arith.constant 0 : index
    %288 = vector.load %arg12[%c0_217, %c11, %c0_218] : memref<8x16x16xbf16, #tpu.memory_space<vmem>>, vector<8x1x16xbf16>
    %289 = vector.shape_cast %288 : vector<8x1x16xbf16> to vector<8x16xbf16>
    %290 = vector.shape_cast %287 : vector<8x16xbf16> to vector<8x1x16xbf16>
    tpu.vector_store %arg12[%c0_217, %c11, %c0_218], %290 {strides = array<i32>} : memref<8x16x16xbf16, #tpu.memory_space<vmem>>, vector<8x1x16xbf16>,
    %291 = vector.extract_strided_slice %242 {offsets = [0, 192], sizes = [8, 16], strides = [1, 1]} : vector<8x256xbf16> to vector<8x16xbf16>
    %c0_219 = arith.constant 0 : index
    %c12 = arith.constant 12 : index
    %c0_220 = arith.constant 0 : index
    %292 = vector.load %arg12[%c0_219, %c12, %c0_220] : memref<8x16x16xbf16, #tpu.memory_space<vmem>>, vector<8x1x16xbf16>
    %293 = vector.shape_cast %292 : vector<8x1x16xbf16> to vector<8x16xbf16>
    %294 = vector.shape_cast %291 : vector<8x16xbf16> to vector<8x1x16xbf16>
    tpu.vector_store %arg12[%c0_219, %c12, %c0_220], %294 {strides = array<i32>} : memref<8x16x16xbf16, #tpu.memory_space<vmem>>, vector<8x1x16xbf16>,
    %295 = vector.extract_strided_slice %242 {offsets = [0, 208], sizes = [8, 16], strides = [1, 1]} : vector<8x256xbf16> to vector<8x16xbf16>
    %c0_221 = arith.constant 0 : index
    %c13 = arith.constant 13 : index
    %c0_222 = arith.constant 0 : index
    %296 = vector.load %arg12[%c0_221, %c13, %c0_222] : memref<8x16x16xbf16, #tpu.memory_space<vmem>>, vector<8x1x16xbf16>
    %297 = vector.shape_cast %296 : vector<8x1x16xbf16> to vector<8x16xbf16>
    %298 = vector.shape_cast %295 : vector<8x16xbf16> to vector<8x1x16xbf16>
    tpu.vector_store %arg12[%c0_221, %c13, %c0_222], %298 {strides = array<i32>} : memref<8x16x16xbf16, #tpu.memory_space<vmem>>, vector<8x1x16xbf16>,
    %299 = vector.extract_strided_slice %242 {offsets = [0, 224], sizes = [8, 16], strides = [1, 1]} : vector<8x256xbf16> to vector<8x16xbf16>
    %c0_223 = arith.constant 0 : index
    %c14 = arith.constant 14 : index
    %c0_224 = arith.constant 0 : index
    %300 = vector.load %arg12[%c0_223, %c14, %c0_224] : memref<8x16x16xbf16, #tpu.memory_space<vmem>>, vector<8x1x16xbf16>
    %301 = vector.shape_cast %300 : vector<8x1x16xbf16> to vector<8x16xbf16>
    %302 = vector.shape_cast %299 : vector<8x16xbf16> to vector<8x1x16xbf16>
    tpu.vector_store %arg12[%c0_223, %c14, %c0_224], %302 {strides = array<i32>} : memref<8x16x16xbf16, #tpu.memory_space<vmem>>, vector<8x1x16xbf16>,
    %303 = vector.extract_strided_slice %242 {offsets = [0, 240], sizes = [8, 16], strides = [1, 1]} : vector<8x256xbf16> to vector<8x16xbf16>
    %c0_225 = arith.constant 0 : index
    %c15 = arith.constant 15 : index
    %c0_226 = arith.constant 0 : index
    %304 = vector.load %arg12[%c0_225, %c15, %c0_226] : memref<8x16x16xbf16, #tpu.memory_space<vmem>>, vector<8x1x16xbf16>
    %305 = vector.shape_cast %304 : vector<8x1x16xbf16> to vector<8x16xbf16>
    %306 = vector.shape_cast %303 : vector<8x16xbf16> to vector<8x1x16xbf16>
    tpu.vector_store %arg12[%c0_225, %c15, %c0_226], %306 {strides = array<i32>} : memref<8x16x16xbf16, #tpu.memory_space<vmem>>, vector<8x1x16xbf16>,
    %c0_227 = arith.constant 0 : index
    %c0_228 = arith.constant 0 : index
    %c0_229 = arith.constant 0 : index
    %307 = vector.load %arg12[%c0_227, %c0_228, %c0_229] : memref<8x16x16xbf16, #tpu.memory_space<vmem>>, vector<8x16x16xbf16>
    %c0_230 = arith.constant 0 : index
    %c0_231 = arith.constant 0 : index
    %308 = vector.load %arg7[%c0_230, %c0_231] : memref<16x32xbf16, #tpu.memory_space<vmem>>, vector<16x32xbf16>
    %309 = vector.shape_cast %308 : vector<16x32xbf16> to vector<1x16x32xbf16>
    %310 = vector.broadcast %309 : vector<1x16x32xbf16> to vector<8x16x32xbf16>
    "tpu.trace_start"() <{level = 10 : i32, message = "chw,cwj->chj"}> : () -> ()
    %cst_232 = arith.constant dense<0.000000e+00> : vector<8x16x32xf32>
    %311 = tpu.matmul %307, %310, %cst_232 {dimension_numbers = #tpu.dot_dimension_numbers<[2], [1], [1], [2], [0, 0, 0, 1, 1, 2], [0], [0]>} : vector<8x16x16xbf16>, vector<8x16x32xbf16>, vector<8x16x32xf32> -> vector<8x16x32xf32>
    "tpu.trace_stop"() : () -> ()
    %c0_233 = arith.constant 0 : index
    %c0_234 = arith.constant 0 : index
    %312 = vector.load %arg8[%c0_233, %c0_234] : memref<32x16xbf16, #tpu.memory_space<vmem>>, vector<32x16xbf16>
    %313 = vector.shape_cast %312 : vector<32x16xbf16> to vector<1x32x16xbf16>
    %314 = vector.broadcast %313 : vector<1x32x16xbf16> to vector<8x32x16xbf16>
    %315 = arith.truncf %311 : vector<8x16x32xf32> to vector<8x16x32xbf16>
    "tpu.trace_start"() <{level = 10 : i32, message = "cih,chj->cij"}> : () -> ()
    %cst_235 = arith.constant dense<0.000000e+00> : vector<8x32x32xf32>
    %316 = tpu.matmul %314, %315, %cst_235 {dimension_numbers = #tpu.dot_dimension_numbers<[2], [1], [1], [2], [0, 0, 0, 1, 1, 2], [0], [0]>} : vector<8x32x16xbf16>, vector<8x16x32xbf16>, vector<8x32x32xf32> -> vector<8x32x32xf32>
    "tpu.trace_stop"() : () -> ()
    %c0_236 = arith.constant 0 : index
    %c0_237 = arith.constant 0 : index
    %c0_238 = arith.constant 0 : index
    %c0_239 = arith.constant 0 : index
    %317 = vector.load %arg9[%c0_236, %c0_237, %c0_238, %c0_239] : memref<1x8x32x32xf32, #tpu.memory_space<vmem>>, vector<1x8x32x32xf32>
    %318 = vector.shape_cast %317 : vector<1x8x32x32xf32> to vector<8x32x32xf32>
    %319 = vector.shape_cast %316 : vector<8x32x32xf32> to vector<1x8x32x32xf32>
    tpu.vector_store %arg9[%c0_236, %c0_237, %c0_238, %c0_239], %319 {strides = array<i32>} : memref<1x8x32x32xf32, #tpu.memory_space<vmem>>, vector<1x8x32x32xf32>,
    return
  }
  func.func @transform_0(%arg0: i32) -> (i32, i32, i32) {
    %c0_i32 = arith.constant 0 : i32
    %c0_i32_0 = arith.constant 0 : i32
    %c0_i32_1 = arith.constant 0 : i32
    return %arg0, %c0_i32, %c0_i32_0 : i32, i32, i32
  }
  func.func @transform_1(%arg0: i32) -> (i32, i32, i32) {
    %c0_i32 = arith.constant 0 : i32
    %c0_i32_0 = arith.constant 0 : i32
    %c0_i32_1 = arith.constant 0 : i32
    return %arg0, %c0_i32, %c0_i32_0 : i32, i32, i32
  }
  func.func @transform_2(%arg0: i32) -> (i32, i32, i32) {
    %c0_i32 = arith.constant 0 : i32
    %c0_i32_0 = arith.constant 0 : i32
    %c0_i32_1 = arith.constant 0 : i32
    %c0_i32_2 = arith.constant 0 : i32
    return %c0_i32, %c0_i32_0, %c0_i32_1 : i32, i32, i32
  }
  func.func @transform_3(%arg0: i32) -> (i32, i32, i32) {
    %c0_i32 = arith.constant 0 : i32
    %c0_i32_0 = arith.constant 0 : i32
    %c0_i32_1 = arith.constant 0 : i32
    %c0_i32_2 = arith.constant 0 : i32
    return %c0_i32, %c0_i32_0, %c0_i32_1 : i32, i32, i32
  }
  func.func @transform_4(%arg0: i32) -> (i32, i32) {
    %c0_i32 = arith.constant 0 : i32
    %c0_i32_0 = arith.constant 0 : i32
    %c0_i32_1 = arith.constant 0 : i32
    return %c0_i32, %c0_i32_0 : i32, i32
  }
  func.func @transform_5(%arg0: i32) -> (i32, i32) {
    %c0_i32 = arith.constant 0 : i32
    %c0_i32_0 = arith.constant 0 : i32
    %c0_i32_1 = arith.constant 0 : i32
    return %c0_i32, %c0_i32_0 : i32, i32
  }
  func.func @transform_6(%arg0: i32) -> (i32, i32) {
    %c0_i32 = arith.constant 0 : i32
    %c0_i32_0 = arith.constant 0 : i32
    %c0_i32_1 = arith.constant 0 : i32
    return %c0_i32, %c0_i32_0 : i32, i32
  }
  func.func @transform_7(%arg0: i32) -> (i32, i32) {
    %c0_i32 = arith.constant 0 : i32
    %c0_i32_0 = arith.constant 0 : i32
    %c0_i32_1 = arith.constant 0 : i32
    return %c0_i32, %c0_i32_0 : i32, i32
  }
  func.func @transform_8(%arg0: i32) -> (i32, i32, i32, i32) {
    %c0_i32 = arith.constant 0 : i32
    %c0_i32_0 = arith.constant 0 : i32
    %c0_i32_1 = arith.constant 0 : i32
    %c0_i32_2 = arith.constant 0 : i32
    return %arg0, %c0_i32, %c0_i32_0, %c0_i32_1 : i32, i32, i32, i32
  }
}

</mosaic_0001>

<bundles_post_ra>
// kernel: tpu_custom_call.1
= control target key start
LH: loop header
LB: loop body
LE: loop exit
PB: predicated region body
PF: predicated region fallthrough
CT: control target
= control target key end

     0   :  { %13 = vsyncpa [#allocation6], 0  ;;  %s5069_s0 = inlined_call_operand.vmem [shape: f32[2,8,256], index: 0, kind: input, shape index: {}]   ;;  %s5070_s1 = inlined_call_operand.hbm [shape: f32[2,8,256], index: 1, kind: input, shape index: {}]   ;;  %s5071_s2 = inlined_call_operand.vmem [shape: bf16[4,8,72], index: 2, kind: input, shape index: {}]   ;;  %s5072_s3 = inlined_call_operand.vmem [shape: f32[4,8,1], index: 3, kind: input, shape index: {}]   ;;  %s5073_s4 = inlined_call_operand.vmem [shape: bf16[8,8], index: 4, kind: input, shape index: {}]   ;;  %s5074_s5 = inlined_call_operand.vmem [shape: f32[8,1], index: 5, kind: input, shape index: {}]   ;;  %s5075_s6 = inlined_call_operand.vmem [shape: bf16[16,32], index: 6, kind: input, shape index: {}]   ;;  %s5076_s7 = inlined_call_operand.vmem [shape: bf16[32,16], index: 7, kind: input, shape index: {}]   ;;  %s5077_s8 = inlined_call_operand.hbm [shape: f32[2,8,32,32], index: 8, kind: output, shape index: {}]  }
   0x1   :  { %15 = vsyncpa [#allocation6 + $0x1], 0 }
   0x2   :  { %16 = vsyncpa [#allocation7], 0 }
   0x3   :  { %18 = vsyncpa [#allocation7 + $0x1], 0  ;;  %s3880_s27 = smov 0   ;;  %s3882_s28 = smov 0  }
   0x4   :  { %s3884_s29 = smov 0   ;;  %s3886_s30 = smov 0  }
   0x5 LB: > { %5079 = sst [smem:[#allocation11_spill]] %s3811_s29  ;;  %s3901_s9 = sadd.s32 4294967295, %s3815_s30   ;;  %s3815_s30 = sphi %s3886_s30, %s5107_s30   ;;  %s3811_s29 = sphi %s3884_s29, %s5104_s29   ;;  %s3807_s28 = sphi %s3882_s28, %s5106_s28   ;;  %s3803_s27 = sphi %s3880_s27, %s5105_s27  }
   0x6   : > { %s3307_s10 = sadd.s32 4294967294, %s3815_s30   ;;  %s3905_s11 = sadd.s32 1, %s3815_s30  }
   0x7   : > { %s57_s12 = sadd.s32 1, %s3811_s29  ;;  %s54_s13 = ssub.s32 %s3815_s30, %s3905_s11 }
   0x8   : > { %p64_p0 = scmp.ne.s32.totalorder %s3811_s29, %s3807_s28  ;;  %p55_p1 = scmp.eq.s32.totalorder %s54_s13, 0 }
   0x9   : > { %p65_p2 = scmp.eq.s32.totalorder %s3815_s30, 0  ;;  %p70_p3 = scmp.ne.s32.totalorder %s3807_s28, %s3803_s27 }
   0xa   : > { %p71_p4 = scmp.eq.s32.totalorder %s3901_s9, 0  ;;  %p220_p7 = scmp.eq.s32.totalorder %s3901_s9, 1 }
   0xb   : > { %s3917_s14 = scalar_select %p55_p1, %s3811_s29, %s57_s12  }
   0xc   : > { %p3919_p5 = por %p65_p2, %p64_p0  ;;  %p3923_p6 = por %p71_p4, %p70_p3 }
   0xd   : > { %5080 = sst [smem:[#allocation12_spill]] %s3917_s14  ;;  %p226_p8 = scmp.eq.s32.totalorder %s3307_s10, 1 }
   0xe   : > { %p3633_p10 = scmp.lt.s32.totalorder %s3815_s30, 2  ;;  %p3930_p11 = por %p220_p7, %p64_p0 }
   0xf   : > { %p3934_p12 = por %p226_p8, %p70_p3  ;;  %s272_s19 = sand.u32 1, %s3811_s29  }
  0x10   : > { %s3575_s20 = sshll.u32 %s3815_s30, 4  ;;  %s3310_s21 = sshll.u32 %s272_s19, 4 }
  0x11   : > { %s281_s24 = scalar_lea.hbm %s5070_s1, %s3575_s20  ;;  %s276_s26 = scalar_lea.vmem [#allocation5], %s3310_s21 }
  0x12   : > { %s283_s25 = sshll.u32 %s281_s24, 4  ;;  %s285_s10 = sshll.u32 %s276_s26, 4  ;;  %s284_s25 = int_to_ptr.hbm [resolvable:$true] %s283_s25  ;;  %s286_s10 = int_to_ptr.vmem [resolvable:$true] %s285_s10 }
  0x13   : > { %p3945_p13 = pnand %p3633_p10, %p3919_p5  ;;  %p3313_p0 = scmp.ge.s32.totalorder %s3815_s30, 1 }
  0x14   : > { %p290_p1 = scmp.lt.s32.totalorder %s3815_s30, 3  ;;  %s273_s13 = scalar_lea.sflag [#allocation6], %s272_s19 }
  0x15   : > { %s3719_s14 = sshra.s32 %s284_s25, 4  ;;  %p3723_p3 = pneg %p3945_p13  ;;  %s3720_s14 = int_to_ptr.hbm [resolvable:$true] %s3719_s14 }
  0x16   : > { %s3721_s29 = scalar_lea.hbm %s3720_s14, 16  ;;  %s3726_s15 = scalar_lea.hbm %s5070_s1, 32 }
  0x17   : > { %p3722_p2 = scmp.ne.s32.totalorder %s3720_s14, %s3721_s29  ;;  %p3727_p5 = scmp.lt.s32.totalorder %s3720_s14, %s5070_s1 }
  0x18   : > { %p3728_p8 = scmp.lt.s32.totalorder %s3726_s15, %s3721_s29 }
  0x19   : > { %p3724_p4 = pnand %p3723_p3, %p3722_p2 }
  0x1a   : > { %p3729_p10 = por %p3728_p8, %p3727_p5 }
  0x1b   : > { %p3725_p7 = pneg %p3724_p4 }
  0x1d   : > { %p3730_p9 = pnand %p3729_p10, %p3725_p7 }
  0x1f   : > { %3733 = shalt.err (!%p3730_p9)
}
  0x20   : > { %3628 = dma.hbm_to_vmem [thread:$0]  (!%p3945_p13), %s284_s25, 256, %s286_s10, %s273_s13  }
  0x21   : > { %p291_p2 = pnand %p3313_p0, %p290_p1 }
  0x22   : > { %s3966_s19 = sand.u32 (!%p291_p2), 1, %s3807_s28  }
  0x23   : > { %294 = sbr.rel (%p291_p2) target bundleno = 2163 (0x873), region = 52  ;;  %s3314_s14 = sshll.u32 (!%p291_p2), %s3966_s19, 4 }
  0x24   : > { %s297_s29 = scalar_lea.sflag (!%p291_p2), [#allocation6], %s3966_s19  ;;  %s3970_s24 = scalar_lea.vmem (!%p291_p2), [#allocation5], %s3314_s14 }
  0x28   : > { %v348_v0 = vlaneseq }
  0x29   : > { %3794 = dma.done.wait (%p3923_p6), %s297_s29, 256  }
  0x2a   : > { %3796 = vsyncadd (%p3923_p6), %s297_s29, 4294967040  ;;  %v3817_v1 = vmov 0.0   ;;  %v349_v2 = vand.u32 127, %v348_v0  ;;  %p339_p9 = scmp.lt.s32.totalorder %s3901_s9, 1  ;;  %s3818_s13 = smov 17   ;;  %vm346_vm4 = vcmask 138240  }
  0x2b   : > { %345 = vst [vmem:[#allocation2] sm:$0xff] %v3817_v1  ;;  %s3819_s20 = smov 1   ;;  %s3820_s21 = smov 127   ;;  %vm472_vm5 = vcmask 121856   ;;  %vm483_vm6 = vcmask 1039360   ;;  %vm453_vm7 = vcmask 924672  }
  0x2c   : > { %v350_v3 = vadd.s32 128, %v349_v2  ;;  %v355_v4 = vand.u32 15, %v349_v2  ;;  %s340_s25 = scalar_select %p339_p9, %s3901_s9, 1  ;;  %347 = vst.msk [vmem:[#allocation2 + $0x18] sm:$0xff] %vm346_vm4, %v3817_v1  ;;  %vm502_vm8 = vcmask 7168   ;;  %vm402_vm9 = vcmask 908288  }
  0x2d   : > { %s3821_s15 = smov 15   ;;  %s3822_s22 = smov 113   ;;  %vm420_vm10 = vcmask 1043456   ;;  %vm584_vm11 = vcmask 916480   ;;  %vm440_vm12 = vcmask 130048   ;;  %vm678_vm13 = vcmask 588800  }
  0x2e   : > { %v362_v5 = vand.u32 15, %v350_v3  ;;  %vm381_vm0 = vcmp.ne.s32.totalorder %v355_v4, 15  ;;  %vm375_vm1 = vcmp.ne.s32.totalorder %v355_v4, 0  ;;  %s3576_s26 = sshll.u32 %s340_s25, 4  ;;  %s3823_s23 = smov 111   ;;  %vm1512_vm14 = vcmask 64512  }
  0x2f   : > { %v3320_v6 = vsel %vm381_vm0, 1.0, %v3817_v1  ;;  %v3318_v7 = vsel %vm375_vm1, 1.0, %v3817_v1  ;;  %s343_s12 = scalar_lea.vmem %s5069_s0, %s3576_s26  ;;  %s3824_s14 = smov 112   ;;  %vm1551_vm15 = vcmask 1040384   ;;  %vm1556_vm0 = vcmask 1041409  }
  0x30   : > { %vm382_vm2 = vcmp.ne.s32.totalorder %v362_v5, 15  ;;  %vm376_vm3 = vcmp.ne.s32.totalorder %v362_v5, 0  ;;  %v3986_v10 = vld [vmem:[%s343_s12] sm:$0xff]  ;;  %v3988_v11 = vld [vmem:[%s343_s12 + $0x8] sm:$0xff]  ;;  %s3825_s29 = smov 16   ;;  %vm1560_vm1 = vcmask 1042434  }
  0x31   : > { %v3321_v8 = vsel %vm382_vm2, 1.0, %v3817_v1  ;;  %v3319_v9 = vsel %vm376_vm3, 1.0, %v3817_v1  ;;  %v3991_v13 = vmax.f32 %v3986_v10, 0.0  ;;  %v3994_v14 = vmax.f32 %v3988_v11, 0.0  ;;  %s3829_s10 = smov 64   ;;  %s3830_s12 = smov 96  }
  0x32   : > { %v3685_v12 = vpack.i.bf16 %v3321_v8, %v3320_v6  ;;  %v3690_v15 = vpack.i.bf16 %v3319_v9, %v3318_v7  ;;  %vm1564_vm2 = vcmask 1043459   ;;  %vm1624_vm3 = vcmask 122880   ;;  %s3831_s25 = smov 48   ;;  %s3620_s16 = sshll.u32 %s3901_s9, 8 }
  0x33   : > { %v573_v16 = vpack.c.bf16 %v3994_v14, %v3991_v13  ;;  %v572_v17 = vld [vmem:[#allocation2 + $0x18] sm:$0xff]  ;;  %v429_v63 = vpack.c.bf16 %v3991_v13, %v3817_v1  ;;  %s3207_s9 = scalar_lea.sflag [#allocation7], %s3966_s19 }
  0x34   : > { %3686 = vrot.lane.b32.xlu0 %v3685_v12, %s3818_s13  ;;  %3696 = vrot.lane.b32.xlu1 %v3685_v12, %s3819_s20  ;;  %v4007_v18 = vpack.c.bf16 %v572_v17, %v572_v17 }
  0x35   : > { %3706 = vrot.lane.b32.xlu2 %v3690_v15, %s3820_s21  ;;  %509 = vst [vmem:[#allocation3 + $0x20] sm:$0xff] %v573_v16 }
  0x3c   : > { %3691 = vrot.lane.b32.xlu0 %v3690_v15, %s3821_s15  ;;  %3701 = vrot.lane.b32.xlu1 %v3685_v12, %s3822_s22 }
  0x3d   : > { %3711 = vrot.lane.b32.xlu2 %v3690_v15, %s3823_s23  ;;  %v430_v15 = vpack.c.bf16 %v3994_v14, %v3994_v14 }
  0x44   : > { %577 = vrot.lane.b32.xlu1 %v573_v16, %s3824_s14 }
  0x45   : > { %579 = vrot.lane.b32.xlu2 %v4007_v18, %s3824_s14 }
  0x8f   : > { %v3707_v19 = vpop.permute.xlu2 %3706 }
  0x90   : > { %v4011_v20 = vunpack.i.h.bf16 %v3707_v19  ;;  %v3708_v30 = vunpack.i.l.bf16 %v3707_v19 }
  0x92   : > { %v490_v21 = vmul.f32 %v4011_v20, %v3994_v14  ;;  %v4036_v42 = vsel %vm483_vm6, %v3708_v30, %v4011_v20  ;;  %v4050_v47 = vmul.f32 0.0, %v3708_v30 }
  0x93   : > { %v489_v48 = vmul.f32 %v4036_v42, %v3991_v13 }
  0x94   : > { %v492_v22 = vpack.c.bf16 %v490_v21, %v490_v21 }
  0x95   : > { %v491_v54 = vpack.c.bf16 %v489_v48, %v4050_v47 }
  0x96   : > { %497 = vrot.lane.b32.xlu2 %v492_v22, %s3819_s20 }
  0x97   : > { %v3712_v51 = vpop.permute.xlu2 %3711 }
  0x98   : > { %v4062_v55 = vunpack.i.h.bf16 %v3712_v51  ;;  %v3713_v3 = vunpack.i.l.bf16 %v3712_v51 }
  0x9a   : > { %v409_v58 = vmul.f32 %v4062_v55, %v3994_v14  ;;  %v4095_v6 = vsel %vm402_vm9, %v3713_v3, %v4062_v55  ;;  %v4098_v8 = vmul.f32 0.0, %v3713_v3 }
  0x9b   : > { %v408_v9 = vmul.f32 %v4095_v6, %v3991_v13 }
  0x9c   : > { %v411_v62 = vpack.c.bf16 %v409_v58, %v409_v58 }
  0x9d   : > { %v410_v12 = vpack.c.bf16 %v408_v9, %v4098_v8 }
  0x9f   : > { %v580_v16 = vpop.permute.xlu2 %579 }
  0xa6   : > { %v3687_v23 = vpop.permute.xlu0 %3686  ;;  %v3697_v24 = vpop.permute.xlu1 %3696 }
  0xa7   : > { %v3689_v25 = vunpack.i.h.bf16 %v3687_v23  ;;  %v3699_v26 = vunpack.i.h.bf16 %v3697_v24  ;;  %v4059_v52 = vunpack.i.l.bf16 %v3687_v23  ;;  %v4078_v61 = vunpack.i.l.bf16 %v3697_v24 }
  0xa9   : > { %v601_v27 = vmul.f32 %v3689_v25, %v572_v17  ;;  %v524_v29 = vmul.f32 %v3699_v26, %v572_v17  ;;  %v4067_v57 = vsel %vm346_vm4, %v4059_v52, %v3689_v25  ;;  %v599_v59 = vmul.f32 %v4059_v52, %v3991_v13 }
  0xaa   : > { %v600_v60 = vmul.f32 %v4067_v57, %v3994_v14  ;;  %v4084_v2 = vsel %vm502_vm8, %v4078_v61, %v3699_v26  ;;  %v522_v4 = vmul.f32 %v4078_v61, %v3991_v13 }
  0xab   : > { %v4016_v28 = vpack.c.bf16 %v601_v27, %v601_v27  ;;  %v4024_v38 = vpack.c.bf16 %v524_v29, %v524_v29  ;;  %v523_v5 = vmul.f32 %v4084_v2, %v3994_v14 }
  0xac   : > { %v602_v0 = vpack.c.bf16 %v600_v60, %v599_v59 }
  0xad   : > { %608 = vrot.lane.b32.xlu1 %v4016_v28, %s3823_s23  ;;  %v525_v7 = vpack.c.bf16 %v523_v5, %v522_v4 }
  0xae   : > { %v3692_v31 = vpop.permute.xlu0 %3691  ;;  %v3702_v32 = vpop.permute.xlu1 %3701 }
  0xaf   : > { %v3694_v33 = vunpack.i.h.bf16 %v3692_v31  ;;  %v4020_v34 = vunpack.i.l.bf16 %v3692_v31  ;;  %v4022_v35 = vunpack.i.h.bf16 %v3702_v32  ;;  %v3703_v36 = vunpack.i.l.bf16 %v3702_v32 }
  0xb1   : > { %v554_v37 = vmul.f32 %v3694_v33, %v572_v17  ;;  %v4028_v39 = vsel %vm472_vm5, %v4020_v34, %v3694_v33  ;;  %v552_v40 = vmul.f32 %v4020_v34, %v3991_v13  ;;  %v4042_v44 = vsel %vm453_vm7, %v3703_v36, %v4022_v35 }
  0xb2   : > { %v553_v41 = vmul.f32 %v4028_v39, %v3994_v14  ;;  %v460_v46 = vmul.f32 %v4022_v35, %v3994_v14  ;;  %v4055_v49 = vmul.f32 0.0, %v3703_v36  ;;  %v459_v50 = vmul.f32 %v4042_v44, %v3991_v13 }
  0xb3   : > { %v4038_v43 = vpack.c.bf16 %v554_v37, %v554_v37  ;;  %v582_v13 = vrot.slane %v580_v16, 4 }
  0xb4   : > { %v555_v45 = vpack.c.bf16 %v553_v41, %v552_v40  ;;  %v462_v53 = vpack.c.bf16 %v460_v46, %v460_v46  ;;  %v461_v56 = vpack.c.bf16 %v459_v50, %v4055_v49 }
  0xb5   : > { %561 = vrot.lane.b32.xlu0 %v4038_v43, %s3822_s22  ;;  %531 = vrot.lane.b32.xlu1 %v4024_v38, %s3820_s21 }
  0xb6   : > { %559 = vrot.lane.b32.xlu2 %v555_v45, %s3822_s22  ;;  %v578_v17 = vpop.permute.xlu1 %577 }
  0xb7   : > { %v581_v19 = vrot.slane %v578_v17, 4 }
  0xb9   : > { %v583_v21 = vsel %vm420_vm10, %v581_v19, %v582_v13 }
  0xba   : > { %v585_v22 = vsel %vm584_vm11, %v578_v17, %v583_v21  ;;  %v627_v17 = vld [vmem:[%s5072_s3] sm:$0xff]  ;;  %v3826_v21 = vmov 0  }
  0xbb   : > { %587 = vst [vmem:[#allocation3 + $0x38] sm:$0xff] %v585_v22  ;;  %3715 = vset.pattern.permute.xlu1 %v3826_v21  ;;  %3716 = vset.pattern.permute.xlu0 %v3826_v21 }
  0xbc   : > { %3717 = vset.pattern.permute.xlu2 %v3826_v21 }
  0xbd   : > { %467 = vrot.lane.b32.xlu0 %v462_v53, %s3821_s15  ;;  %495 = vrot.lane.b32.xlu1 %v491_v54, %s3819_s20 }
  0xbe   : > { %465 = vrot.lane.b32.xlu2 %v461_v56, %s3821_s15 }
  0xc2   : > { %v3584_v5 = vld [vmem:[#allocation3 + $0x34] sm:$0xf0] }
  0xc5   : > { %606 = vrot.lane.b32.xlu0 %v602_v0, %s3823_s23  ;;  %416 = vrot.lane.b32.xlu1 %v411_v62, %s3818_s13 }
  0xc6   : > { %433 = vrot.lane.b32.xlu2 %v429_v63, %s3825_s29 }
  0xcd   : > { %529 = vrot.lane.b32.xlu0 %v525_v7, %s3820_s21  ;;  %v3350_v7 = vld [vmem:[#allocation3 + $0x38] sm:$0xf0]  ;;  %630 = vperm.xlu1 %3715, %v627_v17  }
  0xce   : > { %832 = vrot.lane.b32.xlu2 %v4038_v43, %s3822_s22 }
  0xd5   : > { %414 = vrot.lane.b32.xlu0 %v410_v12, %s3818_s13  ;;  %849 = vrot.lane.b32.xlu1 %v4007_v18, %s3824_s14 }
  0xdd   : > { %435 = vrot.lane.b32.xlu0 %v430_v15, %s3825_s29 }
  0xe5   : > { %869 = vrot.lane.b32.xlu0 %v4016_v28, %s3823_s23 }
  0xed   : > { %812 = vrot.lane.b32.xlu0 %v4024_v38, %s3820_s21 }
  0xf0   : > { %v498_v14 = vpop.permute.xlu2 %497 }
  0xf1   : > { %v500_v37 = vrot.slane %v498_v14, 4 }
 0x110   : > { %v560_v24 = vpop.permute.xlu2 %559 }
 0x111   : > { %v563_v27 = vrot.slane %v560_v24, 4 }
 0x118   : > { %v466_v32 = vpop.permute.xlu2 %465 }
 0x119   : > { %v469_v40 = vrot.slane %v466_v32, 4 }
 0x11f   : > { %v609_v23 = vpop.permute.xlu1 %608 }
 0x120   : > { %v611_v54 = vrot.slane %v609_v23, 4 }
 0x127   : > { %v562_v25 = vpop.permute.xlu0 %561  ;;  %v532_v26 = vpop.permute.xlu1 %531 }
 0x128   : > { %v564_v29 = vrot.slane %v562_v25, 4  ;;  %v534_v9 = vrot.slane %v532_v26, 4 }
 0x12a   : > { %v565_v30 = vsel %vm420_vm10, %v563_v27, %v564_v29  ;;  %v3340_v29 = vld [vmem:[#allocation3 + $0x20] sm:$0xf] }
 0x12b   : > { %v567_v31 = vsel %vm453_vm7, %v560_v24, %v565_v30  ;;  %v3581_v30 = vld [vmem:[#allocation3 + $0x24] sm:$0xf] }
 0x12c   : > { %569 = vst [vmem:[#allocation3 + $0x30] sm:$0xff] %v567_v31 }
 0x12f   : > { %v468_v33 = vpop.permute.xlu0 %467  ;;  %v496_v36 = vpop.permute.xlu1 %495 }
 0x130   : > { %v470_v41 = vrot.slane %v468_v33, 4  ;;  %v499_v45 = vrot.slane %v496_v36, 4 }
 0x132   : > { %v471_v46 = vsel %vm420_vm10, %v469_v40, %v470_v41  ;;  %v501_v48 = vsel %vm420_vm10, %v499_v45, %v500_v37  ;;  %v434_v45 = vpop.permute.xlu2 %433 }
 0x133   : > { %v473_v50 = vsel %vm472_vm5, %v466_v32, %v471_v46  ;;  %v503_v51 = vsel %vm502_vm8, %v496_v36, %v501_v48  ;;  %v3348_v4 = vld [vmem:[#allocation3 + $0x30] sm:$0xf]  ;;  %v3583_v13 = vld [vmem:[#allocation3 + $0x34] sm:$0xf] }
 0x134   : > { %475 = vst [vmem:[#allocation3 + $0x10] sm:$0xff] %v473_v50  ;;  %v3349_v23 = vor.u32 %v3584_v5, %v3348_v4  ;;  %v3353_v24 = vor.u32 %v3583_v13, %v3350_v7  ;;  %v617_v7 = vld [vmem:[%s5071_s2] sm:$0xf] }
 0x135   : > { %505 = vst [vmem:[#allocation3 + $0x18] sm:$0xff] %v503_v51  ;;  %v437_v51 = vrot.slane %v434_v45, 4 }
 0x137   : > { %v607_v53 = vpop.permute.xlu0 %606  ;;  %v417_v14 = vpop.permute.xlu1 %416 }
 0x138   : > { %v610_v56 = vrot.slane %v607_v53, 4  ;;  %v419_v25 = vrot.slane %v417_v14, 4 }
 0x13a   : > { %v612_v58 = vsel %vm420_vm10, %v610_v56, %v611_v54 }
 0x13b   : > { %v614_v59 = vsel %vm402_vm9, %v607_v53, %v612_v58  ;;  %v3332_v41 = vld [vmem:[#allocation3 + $0x10] sm:$0xf]  ;;  %v3579_v48 = vld [vmem:[#allocation3 + $0x14] sm:$0xf] }
 0x13c   : > { %v658_v60 = vunpack.c.l.b16 %v614_v59  ;;  %v659_v62 = vunpack.c.h.b16 %v614_v59  ;;  %v3580_v46 = vld [vmem:[#allocation3 + $0x14] sm:$0xf0]  ;;  %v3334_v50 = vld [vmem:[#allocation3 + $0x18] sm:$0xf0] }
 0x13d   : > { %v3333_v56 = vor.u32 %v3580_v46, %v3332_v41  ;;  %v3337_v58 = vor.u32 %v3579_v48, %v3334_v50 }
 0x13e   : > { %v668_v63 = vpack.c.b16 %v658_v60, %v658_v60  ;;  %v669_v0 = vpack.c.b16 %v659_v62, %v659_v62 }
 0x13f   : > { %v530_v3 = vpop.permute.xlu0 %529 }
 0x140   : > { %v533_v12 = vrot.slane %v530_v3, 4  ;;  %v684_v15 = vsel %vm420_vm10, %v668_v63, 0  ;;  %v687_v16 = vsel %vm420_vm10, %v669_v0, 0 }
 0x141   : > { %692 = vmatpush.bf16.msra.mxu0 %v684_v15  ;;  %705 = vmatpush.bf16.msra.mxu1 %v687_v16 }
 0x142   : > { %v535_v19 = vsel %vm420_vm10, %v533_v12, %v534_v9  ;;  %v631_v9 = vpop.permute.xlu1 %630 }
 0x143   : > { %v537_v22 = vsel %vm483_vm6, %v530_v3, %v535_v19 }
 0x144   : > { %539 = vst [vmem:[#allocation3 + $0x28] sm:$0xff] %v537_v22 }
 0x145   : > { %693 = vmatpush.bf16.msra.mxu0 %v3349_v23  ;;  %706 = vmatpush.bf16.msra.mxu1 %v3353_v24 }
 0x147   : > { %v415_v26 = vpop.permute.xlu0 %414 }
 0x148   : > { %v418_v27 = vrot.slane %v415_v26, 4 }
 0x14a   : > { %v421_v31 = vsel %vm420_vm10, %v418_v27, %v419_v25 }
 0x14b   : > { %v423_v32 = vsel %vm346_vm4, %v415_v26, %v421_v31  ;;  %v3582_v33 = vld [vmem:[#allocation3 + $0x24] sm:$0xf0]  ;;  %v3342_v36 = vld [vmem:[#allocation3 + $0x28] sm:$0xf0] }
 0x14c   : > { %425 = vst [vmem:[#allocation3] sm:$0xff] %v423_v32  ;;  %v3341_v37 = vor.u32 %v3582_v33, %v3340_v29  ;;  %v3345_v40 = vor.u32 %v3581_v30, %v3342_v36 }
 0x14e   : > { %694 = vmatpush.bf16.msra.mxu0 %v3341_v37  ;;  %707 = vmatpush.bf16.msra.mxu1 %v3345_v40 }
 0x14f   : > { %v436_v53 = vpop.permute.xlu0 %435 }
 0x150   : > { %v438_v54 = vrot.slane %v436_v53, 4 }
 0x152   : > { %v439_v59 = vsel %vm420_vm10, %v437_v51, %v438_v54  ;;  %695 = vmatpush.bf16.msra.mxu0 %v3333_v56  ;;  %708 = vmatpush.bf16.msra.mxu1 %v3337_v58  ;;  %v3357_v54 = vld [vmem:[%s5072_s3 + $0x8] sm:$0xff] }
 0x153   : > { %v441_v60 = vsel %vm440_vm12, %v434_v45, %v439_v59  ;;  %v3324_v62 = vld [vmem:[#allocation3] sm:$0xf]  ;;  %v3577_v0 = vld [vmem:[#allocation3 + $0x4] sm:$0xf] }
 0x154   : > { %443 = vst [vmem:[#allocation3 + $0x8] sm:$0xff] %v441_v60  ;;  %v833_v60 = vpop.permute.xlu2 %832 }
 0x15b   : > { %v3578_v63 = vld [vmem:[#allocation3 + $0x4] sm:$0xf0]  ;;  %v3326_v3 = vld [vmem:[#allocation3 + $0x8] sm:$0xf0] }
 0x15c   : > { %v3325_v4 = vor.u32 %v3578_v63, %v3324_v62  ;;  %v3329_v5 = vor.u32 %v3577_v0, %v3326_v3  ;;  %v870_v62 = vpop.permute.xlu0 %869 }
 0x15d   : > { %v872_v0 = vrot.slane %v870_v62, 4 }
 0x15e   : > { %696 = vmatpush.bf16.msra.mxu0 %v3325_v4  ;;  %709 = vmatpush.bf16.msra.mxu1 %v3329_v5 }
 0x161   : > { %3354 = vmatmul.msk.bf16.vlgmr.msra.gmra.mxu0 %vm678_vm13, %v617_v7  ;;  %3355 = vmatmul.msk.bf16.vlgmr.msra.gmra.mxu1 %vm678_vm13, %v617_v7 }
 0x1de   : > { %v698_v12 = vpop.f32.mrf.mxu0  ;;  %v711_v15 = vpop.f32.mrf.mxu1 }
 0x1df   : > { %v699_v16 = vadd.f32 %v698_v12, %v631_v9  ;;  %v712_v13 = vadd.f32 %v711_v15, %v631_v9  ;;  %v813_v12 = vpop.permute.xlu0 %812 }
 0x1e1   : > { %v715_v17 = vmax.f32 %v699_v16, 0.0  ;;  %v716_v19 = vmax.f32 %v712_v13, 0.0  ;;  %v815_v13 = vrot.slane %v813_v12, 4 }
 0x1e3   : > { %v843_v21 = vpack.c.bf16 %v716_v19, %v715_v17  ;;  %v860_v22 = vmul.f32 %v4059_v52, %v715_v17  ;;  %v861_v14 = vmul.f32 %v716_v19, %v4067_v57  ;;  %v823_v23 = vmul.f32 %v4020_v34, %v715_v17 }
 0x1e4   : > { %v824_v24 = vmul.f32 %v716_v19, %v4028_v39  ;;  %v780_v30 = vmul.f32 %v715_v17, %v4036_v42  ;;  %v803_v31 = vmul.f32 %v4078_v61, %v715_v17  ;;  %v804_v32 = vmul.f32 %v716_v19, %v4084_v2 }
 0x1e5   : > { %847 = vrot.lane.b32.xlu0 %v843_v21, %s3824_s14  ;;  %v863_v25 = vpack.c.bf16 %v861_v14, %v860_v22  ;;  %799 = vst [vmem:[#allocation3 + $0x20] sm:$0xff] %v843_v21  ;;  %v760_v33 = vmul.f32 %v715_v17, %v4042_v44  ;;  %v724_v41 = vmul.f32 %v4062_v55, %v716_v19 }
 0x1e6   : > { %v700_v26 = vpop.f32.mrf.mxu0  ;;  %v713_v27 = vpop.f32.mrf.mxu1  ;;  %v826_v29 = vpack.c.bf16 %v824_v24, %v823_v23  ;;  %v782_v36 = vpack.c.bf16 %v780_v30, %v4050_v47  ;;  %v806_v37 = vpack.c.bf16 %v804_v32, %v803_v31  ;;  %v761_v45 = vmul.f32 %v4022_v35, %v716_v19 }
 0x1e7   : > { %867 = vrot.lane.b32.xlu2 %v863_v25, %s3823_s23  ;;  %v762_v40 = vpack.c.bf16 %v760_v33, %v4055_v49  ;;  %v781_v46 = vmul.f32 %v4011_v20, %v716_v19  ;;  %v726_v48 = vpack.c.bf16 %v724_v41, %v724_v41  ;;  %v723_v53 = vmul.f32 %v715_v17, %v4095_v6  ;;  %v850_v23 = vpop.permute.xlu1 %849 }
 0x1e8   : > { %830 = vrot.lane.b32.xlu1 %v826_v29, %s3822_s22  ;;  %v763_v50 = vpack.c.bf16 %v761_v45, %v761_v45  ;;  %v742_v58 = vpack.c.bf16 %v715_v17, %v3817_v1  ;;  %v743_v59 = vpack.c.bf16 %v716_v19, %v716_v19  ;;  %v852_v25 = vrot.slane %v850_v23, 4 }
 0x1e9   : > { %v783_v51 = vpack.c.bf16 %v781_v46, %v781_v46  ;;  %v725_v56 = vpack.c.bf16 %v723_v53, %v4098_v8  ;;  %v835_v30 = vrot.slane %v833_v60, 4 }
 0x1ed   : > { %786 = vrot.lane.b32.xlu0 %v782_v36, %s3819_s20 }
 0x1ef   : > { %810 = vrot.lane.b32.xlu2 %v806_v37, %s3820_s21 }
 0x1f0   : > { %766 = vrot.lane.b32.xlu1 %v762_v40, %s3821_s15 }
 0x1f5   : > { %731 = vrot.lane.b32.xlu0 %v726_v48, %s3818_s13 }
 0x1f7   : > { %768 = vrot.lane.b32.xlu2 %v763_v50, %s3821_s15 }
 0x1f8   : > { %788 = vrot.lane.b32.xlu1 %v783_v51, %s3819_s20 }
 0x1fd   : > { %892 = vperm.xlu0 %3716, %v3357_v54  }
 0x1ff   : > { %729 = vrot.lane.b32.xlu2 %v725_v56, %s3818_s13 }
 0x200   : > { %746 = vrot.lane.b32.xlu1 %v742_v58, %s3825_s29 }
 0x205   : > { %1078 = vrot.lane.b32.xlu0 %v4024_v38, %s3820_s21 }
 0x207   : > { %748 = vrot.lane.b32.xlu2 %v743_v59, %s3825_s29 }
 0x208   : > { %1115 = vrot.lane.b32.xlu1 %v4007_v18, %s3824_s14 }
 0x20f   : > { %1135 = vrot.lane.b32.xlu2 %v4016_v28, %s3823_s23 }
 0x217   : > { %1098 = vrot.lane.b32.xlu2 %v4038_v43, %s3822_s22 }
 0x241   : > { %v868_v63 = vpop.permute.xlu2 %867 }
 0x242   : > { %v871_v3 = vrot.slane %v868_v63, 4 }
 0x244   : > { %v873_v4 = vsel %vm420_vm10, %v871_v3, %v872_v0 }
 0x245   : > { %v874_v5 = vsel %vm402_vm9, %v868_v63, %v873_v4 }
 0x246   : > { %v920_v7 = vunpack.c.l.b16 %v874_v5  ;;  %v921_v9 = vunpack.c.h.b16 %v874_v5  ;;  %v3376_v5 = vld [vmem:[#allocation3 + $0x20] sm:$0xf] }
 0x248   : > { %v930_v15 = vpack.c.b16 %v920_v7, %v920_v7  ;;  %v931_v18 = vpack.c.b16 %v921_v9, %v921_v9 }
 0x249   : > { %v811_v16 = vpop.permute.xlu2 %810 }
 0x24a   : > { %v814_v17 = vrot.slane %v811_v16, 4  ;;  %v944_v19 = vsel %vm420_vm10, %v930_v15, 0  ;;  %v947_v21 = vsel %vm420_vm10, %v931_v18, 0  ;;  %v3589_v15 = vld [vmem:[#allocation3 + $0x24] sm:$0xf] }
 0x24b   : > { %952 = vmatpush.bf16.msra.mxu2 %v944_v19  ;;  %965 = vmatpush.bf16.msra.mxu3 %v947_v21 }
 0x24c   : > { %v816_v22 = vsel %vm420_vm10, %v814_v17, %v815_v13 }
 0x24d   : > { %v817_v14 = vsel %vm483_vm6, %v811_v16, %v816_v22 }
 0x24e   : > { %819 = vst [vmem:[#allocation3 + $0x28] sm:$0xff] %v817_v14 }
 0x251   : > { %v769_v31 = vpop.permute.xlu2 %768 }
 0x252   : > { %v771_v45 = vrot.slane %v769_v31, 4 }
 0x255   : > { %v3590_v63 = vld [vmem:[#allocation3 + $0x24] sm:$0xf0]  ;;  %v3378_v4 = vld [vmem:[#allocation3 + $0x28] sm:$0xf0] }
 0x256   : > { %v3377_v12 = vor.u32 %v3590_v63, %v3376_v5  ;;  %v3381_v17 = vor.u32 %v3589_v15, %v3378_v4 }
 0x257   : > { %v848_v24 = vpop.permute.xlu0 %847 }
 0x258   : > { %v851_v26 = vrot.slane %v848_v24, 4 }
 0x259   : > { %v730_v48 = vpop.permute.xlu2 %729 }
 0x25a   : > { %v853_v27 = vsel %vm420_vm10, %v851_v26, %v852_v25  ;;  %v831_v29 = vpop.permute.xlu1 %830  ;;  %v733_v0 = vrot.slane %v730_v48, 4 }
 0x25b   : > { %v854_v32 = vsel %vm584_vm11, %v848_v24, %v853_v27  ;;  %v834_v33 = vrot.slane %v831_v29, 4 }
 0x25c   : > { %856 = vst [vmem:[#allocation3 + $0x38] sm:$0xff] %v854_v32 }
 0x25d   : > { %v836_v36 = vsel %vm420_vm10, %v834_v33, %v835_v30 }
 0x25e   : > { %v837_v37 = vsel %vm453_vm7, %v831_v29, %v836_v36 }
 0x25f   : > { %839 = vst [vmem:[#allocation3 + $0x30] sm:$0xff] %v837_v37  ;;  %v787_v40 = vpop.permute.xlu0 %786 }
 0x260   : > { %v790_v18 = vrot.slane %v787_v40, 4 }
 0x261   : > { %v749_v22 = vpop.permute.xlu2 %748 }
 0x262   : > { %v767_v41 = vpop.permute.xlu1 %766  ;;  %v751_v23 = vrot.slane %v749_v22, 4 }
 0x263   : > { %v770_v46 = vrot.slane %v767_v41, 4  ;;  %v3592_v51 = vld [vmem:[#allocation3 + $0x34] sm:$0xf0]  ;;  %v3386_v58 = vld [vmem:[#allocation3 + $0x38] sm:$0xf0] }
 0x265   : > { %v772_v50 = vsel %vm420_vm10, %v770_v46, %v771_v45 }
 0x266   : > { %v773_v53 = vsel %vm472_vm5, %v767_v41, %v772_v50  ;;  %v3384_v54 = vld [vmem:[#allocation3 + $0x30] sm:$0xf]  ;;  %v3591_v56 = vld [vmem:[#allocation3 + $0x34] sm:$0xf] }
 0x267   : > { %775 = vst [vmem:[#allocation3 + $0x10] sm:$0xff] %v773_v53  ;;  %v732_v59 = vpop.permute.xlu0 %731  ;;  %v3385_v60 = vor.u32 %v3592_v51, %v3384_v54  ;;  %v3389_v62 = vor.u32 %v3591_v56, %v3386_v58  ;;  %v977_v58 = vld [vmem:[%s3970_s24] sm:$0xff] }
 0x268   : > { %v734_v3 = vrot.slane %v732_v59, 4  ;;  %v978_v59 = vld [vmem:[%s3970_s24 + $0x8] sm:$0xff]  ;;  %s3828_s24 = smov 32  }
 0x269   : > { %953 = vmatpush.bf16.msra.mxu2 %v3385_v60  ;;  %966 = vmatpush.bf16.msra.mxu3 %v3389_v62 }
 0x26a   : > { %v735_v7 = vsel %vm420_vm10, %v733_v0, %v734_v3  ;;  %v789_v9 = vpop.permute.xlu1 %788 }
 0x26b   : > { %v736_v16 = vsel %vm346_vm4, %v730_v48, %v735_v7  ;;  %v791_v13 = vrot.slane %v789_v9, 4  ;;  %v3356_v48 = vld [vmem:[%s5071_s2 + $0x4] sm:$0xf] }
 0x26c   : > { %738 = vst [vmem:[#allocation3] sm:$0xff] %v736_v16 }
 0x26d   : > { %v792_v19 = vsel %vm420_vm10, %v790_v18, %v791_v13  ;;  %954 = vmatpush.bf16.msra.mxu2 %v3377_v12  ;;  %967 = vmatpush.bf16.msra.mxu3 %v3381_v17 }
 0x26e   : > { %v793_v21 = vsel %vm502_vm8, %v787_v40, %v792_v19  ;;  %v3368_v26 = vld [vmem:[#allocation3 + $0x10] sm:$0xf]  ;;  %v3587_v30 = vld [vmem:[#allocation3 + $0x14] sm:$0xf] }
 0x26f   : > { %795 = vst [vmem:[#allocation3 + $0x18] sm:$0xff] %v793_v21  ;;  %v893_v50 = vpop.permute.xlu0 %892 }
 0x272   : > { %v747_v14 = vpop.permute.xlu1 %746 }
 0x273   : > { %v750_v24 = vrot.slane %v747_v14, 4  ;;  %v3360_v36 = vld [vmem:[#allocation3] sm:$0xf]  ;;  %v3585_v40 = vld [vmem:[#allocation3 + $0x4] sm:$0xf] }
 0x275   : > { %v752_v25 = vsel %vm420_vm10, %v750_v24, %v751_v23 }
 0x276   : > { %v753_v27 = vsel %vm440_vm12, %v747_v14, %v752_v25  ;;  %v3588_v29 = vld [vmem:[#allocation3 + $0x14] sm:$0xf0]  ;;  %v3370_v31 = vld [vmem:[#allocation3 + $0x18] sm:$0xf0] }
 0x277   : > { %755 = vst [vmem:[#allocation3 + $0x8] sm:$0xff] %v753_v27  ;;  %v3369_v32 = vor.u32 %v3588_v29, %v3368_v26  ;;  %v3373_v33 = vor.u32 %v3587_v30, %v3370_v31 }
 0x279   : > { %955 = vmatpush.bf16.msra.mxu2 %v3369_v32  ;;  %968 = vmatpush.bf16.msra.mxu3 %v3373_v33  ;;  %v3393_v32 = vld [vmem:[%s5072_s3 + $0x10] sm:$0xff] }
 0x27e   : > { %v3586_v37 = vld [vmem:[#allocation3 + $0x4] sm:$0xf0]  ;;  %v3362_v41 = vld [vmem:[#allocation3 + $0x8] sm:$0xf0] }
 0x27f   : > { %v3361_v45 = vor.u32 %v3586_v37, %v3360_v36  ;;  %v3365_v46 = vor.u32 %v3585_v40, %v3362_v41  ;;  %v1136_v40 = vpop.permute.xlu2 %1135 }
 0x281   : > { %956 = vmatpush.bf16.msra.mxu2 %v3361_v45  ;;  %969 = vmatpush.bf16.msra.mxu3 %v3365_v46  ;;  %v1079_v45 = vpop.permute.xlu0 %1078 }
 0x284   : > { %3390 = vmatmul.msk.bf16.vlgmr.msra.gmra.mxu2 %vm678_vm13, %v3356_v48  ;;  %3391 = vmatmul.msk.bf16.vlgmr.msra.gmra.mxu3 %vm678_vm13, %v3356_v48  ;;  %v1081_v48 = vrot.slane %v1079_v45, 4 }
 0x287   : > { %v1099_v41 = vpop.permute.xlu2 %1098 }
 0x307   : > { %v958_v51 = vpop.f32.mrf.mxu2  ;;  %v971_v53 = vpop.f32.mrf.mxu3 }
 0x308   : > { %v959_v54 = vadd.f32 %v958_v51, %v893_v50  ;;  %v972_v56 = vadd.f32 %v971_v53, %v893_v50  ;;  %v1116_v53 = vpop.permute.xlu1 %1115 }
 0x30a   : > { %v975_v60 = vadd.f32 %v959_v54, %v3986_v10  ;;  %v976_v62 = vadd.f32 %v972_v56, %v3988_v11 }
 0x30c   : > { %v4207_v63 = vadd.f32 %v977_v58, %v975_v60  ;;  %v4209_v0 = vadd.f32 %v978_v59, %v976_v62 }
 0x30e   : > { %v981_v3 = vmax.f32 %v4207_v63, 0.0  ;;  %v982_v4 = vmax.f32 %v4209_v0, 0.0 }
 0x30f   : > { %v960_v5 = vpop.f32.mrf.mxu2  ;;  %v973_v7 = vpop.f32.mrf.mxu3 }
 0x310   : > { %v1109_v9 = vpack.c.bf16 %v982_v4, %v981_v3  ;;  %v1126_v12 = vmul.f32 %v4059_v52, %v981_v3  ;;  %v1127_v15 = vmul.f32 %v982_v4, %v4067_v57  ;;  %v1069_v18 = vmul.f32 %v4078_v61, %v981_v3 }
 0x311   : > { %v1070_v10 = vmul.f32 %v982_v4, %v4084_v2  ;;  %v1046_v13 = vmul.f32 %v981_v3, %v4036_v42  ;;  %v1089_v17 = vmul.f32 %v4020_v34, %v981_v3  ;;  %v1090_v19 = vmul.f32 %v982_v4, %v4028_v39 }
 0x312   : > { %1113 = vrot.lane.b32.xlu0 %v1109_v9, %s3824_s14  ;;  %v1129_v11 = vpack.c.bf16 %v1127_v15, %v1126_v12  ;;  %1065 = vst [vmem:[#allocation3 + $0x20] sm:$0xff] %v1109_v9  ;;  %v1027_v21 = vmul.f32 %v4022_v35, %v982_v4  ;;  %v990_v24 = vmul.f32 %v4062_v55, %v982_v4 }
 0x313   : > { %v1072_v16 = vpack.c.bf16 %v1070_v10, %v1069_v18  ;;  %v1048_v22 = vpack.c.bf16 %v1046_v13, %v4050_v47  ;;  %v1092_v14 = vpack.c.bf16 %v1090_v19, %v1089_v17  ;;  %v1026_v25 = vmul.f32 %v981_v3, %v4042_v44 }
 0x314   : > { %1133 = vrot.lane.b32.xlu1 %v1129_v11, %s3823_s23  ;;  %v1029_v23 = vpack.c.bf16 %v1027_v21, %v1027_v21  ;;  %v989_v26 = vmul.f32 %v981_v3, %v4095_v6  ;;  %v992_v27 = vpack.c.bf16 %v990_v24, %v990_v24  ;;  %v1047_v31 = vmul.f32 %v4011_v20, %v982_v4 }
 0x315   : > { %1076 = vrot.lane.b32.xlu2 %v1072_v16, %s3820_s21  ;;  %v1028_v29 = vpack.c.bf16 %v1026_v25, %v4055_v49  ;;  %v1009_v36 = vpack.c.bf16 %v982_v4, %v982_v4  ;;  %v1008_v37 = vpack.c.bf16 %v981_v3, %v3817_v1  ;;  %v1101_v10 = vrot.slane %v1099_v41, 4 }
 0x316   : > { %v991_v30 = vpack.c.bf16 %v989_v26, %v4098_v8  ;;  %v1049_v33 = vpack.c.bf16 %v1047_v31, %v1047_v31 }
 0x31a   : > { %1052 = vrot.lane.b32.xlu0 %v1048_v22, %s3819_s20 }
 0x31c   : > { %1096 = vrot.lane.b32.xlu1 %v1092_v14, %s3822_s22 }
 0x31d   : > { %1034 = vrot.lane.b32.xlu2 %v1029_v23, %s3821_s15 }
 0x322   : > { %997 = vrot.lane.b32.xlu0 %v992_v27, %s3818_s13 }
 0x324   : > { %1032 = vrot.lane.b32.xlu1 %v1028_v29, %s3821_s15 }
 0x325   : > { %995 = vrot.lane.b32.xlu2 %v991_v30, %s3818_s13  ;;  %v1368_v30 = vld [vmem:[#allocation2 + $0x18] sm:$0xff] }
 0x32a   : > { %1158 = vperm.xlu0 %3716, %v3393_v32  }
 0x32c   : > { %1054 = vrot.lane.b32.xlu1 %v1049_v33, %s3819_s20  ;;  %v1370_v33 = vpack.c.bf16 %v1368_v30, %v1368_v30 }
 0x32d   : > { %1014 = vrot.lane.b32.xlu2 %v1009_v36, %s3825_s29 }
 0x332   : > { %1375 = vrot.lane.b32.xlu0 %v1370_v33, %s3824_s14 }
 0x334   : > { %1012 = vrot.lane.b32.xlu1 %v1008_v37, %s3825_s29 }
 0x335   : > { %1395 = vrot.lane.b32.xlu2 %v4016_v28, %s3823_s23  ;;  %v1118_v28 = vrot.slane %v1116_v53, 4  ;;  %v3597_v53 = vld [vmem:[#allocation3 + $0x24] sm:$0xf] }
 0x33c   : > { %1358 = vrot.lane.b32.xlu1 %v4038_v43, %s3822_s22  ;;  %v1138_v43 = vrot.slane %v1136_v40, 4 }
 0x33d   : > { %1338 = vrot.lane.b32.xlu2 %v4024_v38, %s3820_s21 }
 0x36f   : > { %v1077_v46 = vpop.permute.xlu2 %1076 }
 0x370   : > { %v1080_v50 = vrot.slane %v1077_v46, 4 }
 0x372   : > { %v1082_v51 = vsel %vm420_vm10, %v1080_v50, %v1081_v48 }
 0x373   : > { %v1083_v1 = vsel %vm483_vm6, %v1077_v46, %v1082_v51 }
 0x374   : > { %1085 = vst [vmem:[#allocation3 + $0x28] sm:$0xff] %v1083_v1  ;;  %v3412_v1 = vld [vmem:[#allocation3 + $0x20] sm:$0xf] }
 0x377   : > { %v1035_v60 = vpop.permute.xlu2 %1034 }
 0x378   : > { %v1037_v25 = vrot.slane %v1035_v60, 4 }
 0x37b   : > { %v3598_v48 = vld [vmem:[#allocation3 + $0x24] sm:$0xf0]  ;;  %v3414_v50 = vld [vmem:[#allocation3 + $0x28] sm:$0xf0] }
 0x37f   : > { %v996_v19 = vpop.permute.xlu2 %995 }
 0x380   : > { %v999_v14 = vrot.slane %v996_v19, 4 }
 0x384   : > { %v1114_v54 = vpop.permute.xlu0 %1113 }
 0x385   : > { %v1117_v56 = vrot.slane %v1114_v54, 4 }
 0x386   : > { %v1134_v58 = vpop.permute.xlu1 %1133 }
 0x387   : > { %v1119_v59 = vsel %vm420_vm10, %v1117_v56, %v1118_v28  ;;  %v1137_v38 = vrot.slane %v1134_v58, 4  ;;  %v3413_v56 = vor.u32 %v3598_v48, %v3412_v1 }
 0x388   : > { %v1120_v62 = vsel %vm584_vm11, %v1114_v54, %v1119_v59 }
 0x389   : > { %1122 = vst [vmem:[#allocation3 + $0x38] sm:$0xff] %v1120_v62  ;;  %v1139_v3 = vsel %vm420_vm10, %v1137_v38, %v1138_v43  ;;  %v1015_v38 = vpop.permute.xlu2 %1014 }
 0x38a   : > { %v1140_v4 = vsel %vm402_vm9, %v1134_v58, %v1139_v3  ;;  %v3417_v58 = vor.u32 %v3597_v53, %v3414_v50  ;;  %v1017_v62 = vrot.slane %v1015_v38, 4 }
 0x38b   : > { %v1186_v5 = vunpack.c.l.b16 %v1140_v4  ;;  %v1187_v7 = vunpack.c.h.b16 %v1140_v4 }
 0x38c   : > { %v1053_v9 = vpop.permute.xlu0 %1052 }
 0x38d   : > { %v1196_v12 = vpack.c.b16 %v1186_v5, %v1186_v5  ;;  %v1197_v15 = vpack.c.b16 %v1187_v7, %v1187_v7  ;;  %v1056_v54 = vrot.slane %v1053_v9, 4 }
 0x38e   : > { %v1097_v18 = vpop.permute.xlu1 %1096 }
 0x38f   : > { %v1100_v11 = vrot.slane %v1097_v18, 4  ;;  %v1210_v16 = vsel %vm420_vm10, %v1196_v12, 0  ;;  %v1213_v13 = vsel %vm420_vm10, %v1197_v15, 0 }
 0x390   : > { %1218 = vmatpush.bf16.msrb.mxu0 %v1210_v16  ;;  %1231 = vmatpush.bf16.msrb.mxu1 %v1213_v13  ;;  %v3600_v32 = vld [vmem:[#allocation3 + $0x34] sm:$0xf0]  ;;  %v3422_v41 = vld [vmem:[#allocation3 + $0x38] sm:$0xf0] }
 0x391   : > { %v1102_v17 = vsel %vm420_vm10, %v1100_v11, %v1101_v10 }
 0x392   : > { %v1103_v21 = vsel %vm453_vm7, %v1097_v18, %v1102_v17 }
 0x393   : > { %1105 = vst [vmem:[#allocation3 + $0x30] sm:$0xff] %v1103_v21 }
 0x394   : > { %v998_v22 = vpop.permute.xlu0 %997 }
 0x395   : > { %v1000_v23 = vrot.slane %v998_v22, 4  ;;  %v3392_v22 = vld [vmem:[%s5071_s2 + $0x8] sm:$0xf] }
 0x396   : > { %v1033_v24 = vpop.permute.xlu1 %1032 }
 0x397   : > { %v1001_v26 = vsel %vm420_vm10, %v999_v14, %v1000_v23  ;;  %v1036_v27 = vrot.slane %v1033_v24, 4 }
 0x398   : > { %v1002_v29 = vsel %vm346_vm4, %v996_v19, %v1001_v26 }
 0x399   : > { %1004 = vst [vmem:[#allocation3] sm:$0xff] %v1002_v29  ;;  %v1038_v31 = vsel %vm420_vm10, %v1036_v27, %v1037_v25 }
 0x39a   : > { %v1039_v36 = vsel %vm472_vm5, %v1033_v24, %v1038_v31  ;;  %v3420_v37 = vld [vmem:[#allocation3 + $0x30] sm:$0xf]  ;;  %v3599_v40 = vld [vmem:[#allocation3 + $0x34] sm:$0xf] }
 0x39b   : > { %1041 = vst [vmem:[#allocation3 + $0x10] sm:$0xff] %v1039_v36  ;;  %v3421_v45 = vor.u32 %v3600_v32, %v3420_v37  ;;  %v3425_v46 = vor.u32 %v3599_v40, %v3422_v41 }
 0x39c   : > { %v1159_v14 = vpop.permute.xlu0 %1158 }
 0x39d   : > { %1219 = vmatpush.bf16.msrb.mxu0 %v3421_v45  ;;  %1232 = vmatpush.bf16.msrb.mxu1 %v3425_v46 }
 0x39e   : > { %v1055_v51 = vpop.permute.xlu1 %1054 }
 0x39f   : > { %v1057_v28 = vrot.slane %v1055_v51, 4 }
 0x3a0   : > { %v3396_v16 = vld [vmem:[#allocation3] sm:$0xf]  ;;  %v3593_v13 = vld [vmem:[#allocation3 + $0x4] sm:$0xf] }
 0x3a1   : > { %v1058_v43 = vsel %vm420_vm10, %v1056_v54, %v1057_v28  ;;  %1220 = vmatpush.bf16.msrb.mxu0 %v3413_v56  ;;  %1233 = vmatpush.bf16.msrb.mxu1 %v3417_v58  ;;  %v1396_v54 = vpop.permute.xlu2 %1395 }
 0x3a2   : > { %v1059_v59 = vsel %vm502_vm8, %v1053_v9, %v1058_v43  ;;  %v3404_v5 = vld [vmem:[#allocation3 + $0x10] sm:$0xf]  ;;  %v3595_v15 = vld [vmem:[#allocation3 + $0x14] sm:$0xf] }
 0x3a3   : > { %1061 = vst [vmem:[#allocation3 + $0x18] sm:$0xff] %v1059_v59 }
 0x3a4   : > { %v1376_v56 = vpop.permute.xlu0 %1375 }
 0x3a6   : > { %v1013_v60 = vpop.permute.xlu1 %1012 }
 0x3a7   : > { %v1016_v3 = vrot.slane %v1013_v60, 4 }
 0x3a9   : > { %v1018_v4 = vsel %vm420_vm10, %v1016_v3, %v1017_v62  ;;  %v1339_v28 = vpop.permute.xlu2 %1338  ;;  %v1398_v62 = vrot.slane %v1396_v54, 4 }
 0x3aa   : > { %v1019_v7 = vsel %vm440_vm12, %v1013_v60, %v1018_v4  ;;  %v3596_v12 = vld [vmem:[#allocation3 + $0x14] sm:$0xf0]  ;;  %v3406_v18 = vld [vmem:[#allocation3 + $0x18] sm:$0xf0] }
 0x3ab   : > { %1021 = vst [vmem:[#allocation3 + $0x8] sm:$0xff] %v1019_v7  ;;  %v3405_v10 = vor.u32 %v3596_v12, %v3404_v5  ;;  %v3409_v11 = vor.u32 %v3595_v15, %v3406_v18 }
 0x3ad   : > { %1221 = vmatpush.bf16.msrb.mxu0 %v3405_v10  ;;  %1234 = vmatpush.bf16.msrb.mxu1 %v3409_v11 }
 0x3ae   : > { %v1359_v38 = vpop.permute.xlu1 %1358 }
 0x3af   : > { %v1361_v5 = vrot.slane %v1359_v38, 4 }
 0x3b2   : > { %v3594_v9 = vld [vmem:[#allocation3 + $0x4] sm:$0xf0]  ;;  %v3398_v17 = vld [vmem:[#allocation3 + $0x8] sm:$0xf0] }
 0x3b3   : > { %v3397_v19 = vor.u32 %v3594_v9, %v3396_v16  ;;  %v3401_v21 = vor.u32 %v3593_v13, %v3398_v17 }
 0x3b5   : > { %1222 = vmatpush.bf16.msrb.mxu0 %v3397_v19  ;;  %1235 = vmatpush.bf16.msrb.mxu1 %v3401_v21  ;;  %v1341_v19 = vrot.slane %v1339_v28, 4 }
 0x3b8   : > { %3426 = vmatmul.msk.bf16.vlgmr.msrb.gmra.mxu0 %vm678_vm13, %v3392_v22  ;;  %3427 = vmatmul.msk.bf16.vlgmr.msrb.gmra.mxu1 %vm678_vm13, %v3392_v22 }
 0x435   : > { %v1224_v23 = vpop.f32.mrf.mxu0  ;;  %v1237_v24 = vpop.f32.mrf.mxu1 }
 0x436   : > { %v1225_v25 = vadd.f32 %v1224_v23, %v1159_v14  ;;  %v1238_v26 = vadd.f32 %v1237_v24, %v1159_v14 }
 0x438   : > { %v1241_v27 = vmax.f32 %v1225_v25, 0.0  ;;  %v1242_v29 = vmax.f32 %v1238_v26, 0.0 }
 0x43a   : > { %v1369_v30 = vpack.c.bf16 %v1242_v29, %v1241_v27  ;;  %v1386_v31 = vmul.f32 %v4059_v52, %v1241_v27  ;;  %v1387_v32 = vmul.f32 %v1242_v29, %v4067_v57  ;;  %v1349_v33 = vmul.f32 %v4020_v34, %v1241_v27 }
 0x43b   : > { %v1350_v36 = vmul.f32 %v1242_v29, %v4028_v39  ;;  %v1306_v46 = vmul.f32 %v1241_v27, %v4036_v42  ;;  %v1329_v52 = vmul.f32 %v4078_v61, %v1241_v27  ;;  %v1330_v57 = vmul.f32 %v1242_v29, %v4084_v2 }
 0x43c   : > { %1373 = vrot.lane.b32.xlu2 %v1369_v30, %s3824_s14  ;;  %v1389_v37 = vpack.c.bf16 %v1387_v32, %v1386_v31  ;;  %1325 = vst [vmem:[#allocation3 + $0x20] sm:$0xff] %v1369_v30  ;;  %v1286_v34 = vmul.f32 %v1241_v27, %v4042_v44  ;;  %v1250_v51 = vmul.f32 %v4062_v55, %v1242_v29  ;;  %v3718_v55 = vld [vmem:[#allocation2] sm:$0xff] }
 0x43d   : > { %v1226_v40 = vpop.f32.mrf.mxu0  ;;  %v1239_v41 = vpop.f32.mrf.mxu1  ;;  %v1352_v45 = vpack.c.bf16 %v1350_v36, %v1349_v33  ;;  %v1308_v39 = vpack.c.bf16 %v1306_v46, %v4050_v47  ;;  %v1332_v48 = vpack.c.bf16 %v1330_v57, %v1329_v52  ;;  %v1287_v42 = vmul.f32 %v4022_v35, %v1242_v29  ;;  %v3429_v52 = vld [vmem:[%s5072_s3 + $0x18] sm:$0xff] }
 0x43e   : > { %1393 = vrot.lane.b32.xlu1 %v1389_v37, %s3823_s23  ;;  %v1288_v50 = vpack.c.bf16 %v1286_v34, %v4055_v49  ;;  %v1307_v61 = vmul.f32 %v4011_v20, %v1242_v29  ;;  %v1252_v2 = vpack.c.bf16 %v1250_v51, %v1250_v51  ;;  %v1249_v49 = vmul.f32 %v1241_v27, %v4095_v6  ;;  %v1506_v20 = vld [vmem:[%s5074_s5] sm:$0xff]  ;;  %s3315_s23 = sshll.u32 %s3966_s19, 8 }
 0x43f   : > { %1356 = vrot.lane.b32.xlu0 %v1352_v45, %s3822_s22  ;;  %v1289_v44 = vpack.c.bf16 %v1287_v42, %v1287_v42  ;;  %v1268_v53 = vpack.c.bf16 %v1241_v27, %v3718_v55  ;;  %v1269_v35 = vpack.c.bf16 %v1242_v29, %v1242_v29  ;;  %v1378_v6 = vrot.slane %v1376_v56, 4  ;;  %s4969_s26 = scalar_lea.vmem [#allocation8], %s3315_s23 }
 0x440   : > { %v1309_v47 = vpack.c.bf16 %v1307_v61, %v1307_v61  ;;  %v1251_v1 = vpack.c.bf16 %v1249_v49, %v4098_v8 }
 0x443   : > { %v3448_v34 = vld [vmem:[#allocation3 + $0x20] sm:$0xf]  ;;  %v3605_v51 = vld [vmem:[#allocation3 + $0x24] sm:$0xf] }
 0x444   : > { %1312 = vrot.lane.b32.xlu2 %v1308_v39, %s3819_s20 }
 0x446   : > { %1336 = vrot.lane.b32.xlu1 %v1332_v48, %s3820_s21  ;;  %s3832_s21 = smov 80  }
 0x447   : > { %1292 = vrot.lane.b32.xlu0 %v1288_v50, %s3821_s15 }
 0x44c   : > { %1257 = vrot.lane.b32.xlu2 %v1252_v2, %s3818_s13 }
 0x44e   : > { %1294 = vrot.lane.b32.xlu1 %v1289_v44, %s3821_s15 }
 0x44f   : > { %1314 = vrot.lane.b32.xlu0 %v1309_v47, %s3819_s20  ;;  %s3769_s20 = scalar_lea.hbm %s5077_s8, 512 }
 0x454   : > { %1418 = vperm.xlu2 %3717, %v3429_v52  }
 0x456   : > { %1255 = vrot.lane.b32.xlu1 %v1251_v1, %s3818_s13 }
 0x457   : > { %1272 = vrot.lane.b32.xlu0 %v1268_v53, %s3825_s29 }
 0x45e   : > { %1274 = vrot.lane.b32.xlu1 %v1269_v35, %s3825_s29 }
 0x45f   : > { %1509 = vperm.xlu0 %3716, %v1506_v20  }
 0x496   : > { %v1374_v58 = vpop.permute.xlu2 %1373 }
 0x497   : > { %v1377_v8 = vrot.slane %v1374_v58, 4 }
 0x499   : > { %v1379_v43 = vsel %vm420_vm10, %v1377_v8, %v1378_v6 }
 0x49a   : > { %v1380_v59 = vsel %vm584_vm11, %v1374_v58, %v1379_v43 }
 0x49b   : > { %1382 = vst [vmem:[#allocation3 + $0x38] sm:$0xff] %v1380_v59 }
 0x49e   : > { %v1313_v25 = vpop.permute.xlu2 %1312 }
 0x49f   : > { %v1316_v45 = vrot.slane %v1313_v25, 4 }
 0x4a2   : > { %v3608_v27 = vld [vmem:[#allocation3 + $0x34] sm:$0xf0]  ;;  %v3458_v29 = vld [vmem:[#allocation3 + $0x38] sm:$0xf0] }
 0x4a6   : > { %v1258_v47 = vpop.permute.xlu2 %1257 }
 0x4a7   : > { %v1260_v1 = vrot.slane %v1258_v47, 4 }
 0x4b0   : > { %v1394_v60 = vpop.permute.xlu1 %1393 }
 0x4b1   : > { %v1397_v3 = vrot.slane %v1394_v60, 4  ;;  %v1357_v4 = vpop.permute.xlu0 %1356 }
 0x4b2   : > { %v1360_v7 = vrot.slane %v1357_v4, 4 }
 0x4b3   : > { %v1399_v12 = vsel %vm420_vm10, %v1397_v3, %v1398_v62 }
 0x4b4   : > { %v1400_v15 = vsel %vm402_vm9, %v1394_v60, %v1399_v12  ;;  %v1362_v18 = vsel %vm420_vm10, %v1360_v7, %v1361_v5  ;;  %vm1725_vm9 = vcmask 123905  }
 0x4b5   : > { %v1363_v10 = vsel %vm453_vm7, %v1357_v4, %v1362_v18  ;;  %v1446_v11 = vunpack.c.l.b16 %v1400_v15  ;;  %v1447_v16 = vunpack.c.h.b16 %v1400_v15  ;;  %v3428_v18 = vld [vmem:[%s5071_s2 + $0xc] sm:$0xf]  ;;  %vm1827_vm7 = vsmask.f32 2304 }
 0x4b6   : > { %1365 = vst [vmem:[#allocation3 + $0x30] sm:$0xff] %v1363_v10  ;;  %v1419_v10 = vpop.permute.xlu2 %1418 }
 0x4b7   : > { %v1456_v9 = vpack.c.b16 %v1446_v11, %v1446_v11  ;;  %v1457_v13 = vpack.c.b16 %v1447_v16, %v1447_v16 }
 0x4b8   : > { %v1337_v17 = vpop.permute.xlu1 %1336 }
 0x4b9   : > { %v1340_v21 = vrot.slane %v1337_v17, 4  ;;  %v1293_v22 = vpop.permute.xlu0 %1292  ;;  %v1470_v14 = vsel %vm420_vm10, %v1456_v9, 0  ;;  %v1473_v23 = vsel %vm420_vm10, %v1457_v13, 0 }
 0x4ba   : > { %1478 = vmatpush.bf16.msrb.mxu2 %v1470_v14  ;;  %1491 = vmatpush.bf16.msrb.mxu3 %v1473_v23  ;;  %v1296_v37 = vrot.slane %v1293_v22, 4 }
 0x4bb   : > { %v1342_v24 = vsel %vm420_vm10, %v1340_v21, %v1341_v19 }
 0x4bc   : > { %v1343_v26 = vsel %vm483_vm6, %v1337_v17, %v1342_v24  ;;  %vm1826_vm6 = vcmask 124930  }
 0x4bd   : > { %1345 = vst [vmem:[#allocation3 + $0x28] sm:$0xff] %v1343_v26  ;;  %v3456_v30 = vld [vmem:[#allocation3 + $0x30] sm:$0xf]  ;;  %v3607_v31 = vld [vmem:[#allocation3 + $0x34] sm:$0xf] }
 0x4be   : > { %v3457_v32 = vor.u32 %v3608_v27, %v3456_v30  ;;  %v3461_v33 = vor.u32 %v3607_v31, %v3458_v29  ;;  %v1503_v26 = vld [vmem:[%s5073_s4] sm:$0xf]  ;;  %v3827_v31 = vmov 286326784  }
 0x4c0   : > { %v1295_v36 = vpop.permute.xlu1 %1294  ;;  %1479 = vmatpush.bf16.msrb.mxu2 %v3457_v32  ;;  %1492 = vmatpush.bf16.msrb.mxu3 %v3461_v33  ;;  %v1585_v32 = vunpack.c.l.s4 %v3827_v31 }
 0x4c1   : > { %v1297_v40 = vrot.slane %v1295_v36, 4  ;;  %v1315_v41 = vpop.permute.xlu0 %1314 }
 0x4c2   : > { %v1317_v46 = vrot.slane %v1315_v41, 4 }
 0x4c3   : > { %v1298_v57 = vsel %vm420_vm10, %v1296_v37, %v1297_v40  ;;  %v4337_v37 = vunpack.c.0.s8 %v1585_v32 }
 0x4c4   : > { %v1299_v39 = vsel %vm472_vm5, %v1293_v22, %v1298_v57  ;;  %v1318_v48 = vsel %vm420_vm10, %v1316_v45, %v1317_v46  ;;  %v3606_v50 = vld [vmem:[#allocation3 + $0x24] sm:$0xf0]  ;;  %v3450_v42 = vld [vmem:[#allocation3 + $0x28] sm:$0xf0] }
 0x4c5   : > { %1301 = vst [vmem:[#allocation3 + $0x10] sm:$0xff] %v1299_v39  ;;  %v1319_v61 = vsel %vm502_vm8, %v1313_v25, %v1318_v48  ;;  %v3449_v2 = vor.u32 %v3606_v50, %v3448_v34  ;;  %v3453_v44 = vor.u32 %v3605_v51, %v3450_v42  ;;  %vm4514_vm8 = vmand %vm1826_vm6, %vm1827_vm7 }
 0x4c6   : > { %1321 = vst [vmem:[#allocation3 + $0x18] sm:$0xff] %v1319_v61 }
 0x4c7   : > { %1480 = vmatpush.bf16.msrb.mxu2 %v3449_v2  ;;  %1493 = vmatpush.bf16.msrb.mxu3 %v3453_v44 }
 0x4c8   : > { %v1256_v49 = vpop.permute.xlu1 %1255 }
 0x4c9   : > { %v1259_v55 = vrot.slane %v1256_v49, 4  ;;  %v1273_v6 = vpop.permute.xlu0 %1272 }
 0x4ca   : > { %v1276_v59 = vrot.slane %v1273_v6, 4 }
 0x4cb   : > { %v1261_v53 = vsel %vm420_vm10, %v1259_v55, %v1260_v1 }
 0x4cc   : > { %v1262_v20 = vsel %vm346_vm4, %v1256_v49, %v1261_v53  ;;  %v3440_v35 = vld [vmem:[#allocation3 + $0x10] sm:$0xf]  ;;  %v3603_v54 = vld [vmem:[#allocation3 + $0x14] sm:$0xf]  ;;  %vm1625_vm4 = vsmask.f32 256 }
 0x4cd   : > { %1264 = vst [vmem:[#allocation3] sm:$0xff] %v1262_v20  ;;  %v3604_v28 = vld [vmem:[#allocation3 + $0x14] sm:$0xf0]  ;;  %v3442_v56 = vld [vmem:[#allocation3 + $0x18] sm:$0xf0]  ;;  %vm4366_vm5 = vmand %vm1624_vm3, %vm1625_vm4 }
 0x4ce   : > { %v3441_v58 = vor.u32 %v3604_v28, %v3440_v35  ;;  %v3445_v8 = vor.u32 %v3603_v54, %v3442_v56  ;;  %v1627_v53 = vld [vmem:[#allocation4] sm:$0x1]  ;;  %v2068_v20 = vld [vmem:[#allocation4 + $0x4] sm:$0x1]  ;;  %vm1675_vm4 = vsmask.f32 7938 }
 0x4cf   : > { %vm4602_vm7 = vmand %vm1624_vm3, %vm1675_vm4  ;;  %vm1978_vm3 = vsmask.f32 7950 }
 0x4d0   : > { %1481 = vmatpush.bf16.msrb.mxu2 %v3441_v58  ;;  %1494 = vmatpush.bf16.msrb.mxu3 %v3445_v8  ;;  %v1275_v43 = vpop.permute.xlu1 %1274 }
 0x4d1   : > { %v1277_v38 = vrot.slane %v1275_v43, 4  ;;  %v2071_v43 = vld [vmem:[#allocation4 + $0xc] sm:$0x1] }
 0x4d3   : > { %v1278_v60 = vsel %vm420_vm10, %v1276_v59, %v1277_v38 }
 0x4d4   : > { %v1279_v62 = vsel %vm440_vm12, %v1273_v6, %v1278_v60  ;;  %v3432_v3 = vld [vmem:[#allocation3] sm:$0xf]  ;;  %v3601_v5 = vld [vmem:[#allocation3 + $0x4] sm:$0xf] }
 0x4d5   : > { %1281 = vst [vmem:[#allocation3 + $0x8] sm:$0xff] %v1279_v62 }
 0x4dc   : > { %v3602_v4 = vld [vmem:[#allocation3 + $0x4] sm:$0xf0]  ;;  %v3434_v7 = vld [vmem:[#allocation3 + $0x8] sm:$0xf0] }
 0x4dd   : > { %v3433_v12 = vor.u32 %v3602_v4, %v3432_v3  ;;  %v3437_v15 = vor.u32 %v3601_v5, %v3434_v7  ;;  %v2074_v5 = vld [vmem:[#allocation4 + $0x14] sm:$0x1] }
 0x4df   : > { %1482 = vmatpush.bf16.msrb.mxu2 %v3433_v12  ;;  %1495 = vmatpush.bf16.msrb.mxu3 %v3437_v15 }
 0x4e2   : > { %3462 = vmatmul.msk.bf16.vlgmr.msrb.gmra.mxu2 %vm678_vm13, %v3428_v18  ;;  %3463 = vmatmul.msk.bf16.vlgmr.msrb.gmra.mxu3 %vm678_vm13, %v3428_v18  ;;  %vm1927_vm13 = vcmask 125955  }
 0x565   : > { %v1484_v11 = vpop.f32.mrf.mxu2  ;;  %v1497_v16 = vpop.f32.mrf.mxu3 }
 0x566   : > { %v1485_v9 = vadd.f32 %v1484_v11, %v1419_v10  ;;  %v1498_v13 = vadd.f32 %v1497_v16, %v1419_v10  ;;  %v2077_v11 = vld [vmem:[#allocation4 + $0x1c] sm:$0x1] }
 0x568   : > { %v1501_v17 = vadd.f32 %v1485_v9, %v4207_v63  ;;  %v1502_v19 = vadd.f32 %v1498_v13, %v4209_v0  ;;  %v1510_v63 = vpop.permute.xlu0 %1509 }
 0x56a   : > { %v1504_v21 = vpack.c.bf16 %v1501_v17, %v1501_v17  ;;  %v1505_v22 = vpack.c.bf16 %v1502_v19, %v1502_v19  ;;  %v1630_v17 = vld [vmem:[#allocation4 + $0x8] sm:$0x1] }
 0x56c   : > { %v1517_v14 = vsel %vm420_vm10, %v1504_v21, 0  ;;  %v1520_v23 = vsel %vm420_vm10, %v1505_v22, 0  ;;  %vm1726_vm10 = vsmask.f32 1280 }
 0x56d   : > { %v1486_v24 = vpop.f32.mrf.mxu2  ;;  %v1499_v25 = vpop.f32.mrf.mxu3  ;;  %1529 = vmatpush.bf16.msra.mxu0 %v1517_v14  ;;  %1542 = vmatpush.bf16.msra.mxu1 %v1520_v23  ;;  %v2080_v14 = vld [vmem:[#allocation4 + $0x24] sm:$0x1]  ;;  %vm4537_vm11 = vmand %vm1725_vm9, %vm1726_vm10 }
 0x570   : > { %3464 = vmatmul.msk.bf16.vlgmr.msra.gmra.mxu0 %vm1512_vm14, %v1503_v26  ;;  %3465 = vmatmul.msk.bf16.vlgmr.msra.gmra.mxu1 %vm1512_vm14, %v1503_v26  ;;  %vm1928_vm14 = vsmask.f32 3328 }
 0x5ed   : > { %v1531_v27 = vpop.f32.mrf.mxu0  ;;  %v1544_v0 = vpop.f32.mrf.mxu1 }
 0x5ee   : > { %v1532_v29 = vadd.f32 %v1531_v27, %v1510_v63  ;;  %v1545_v30 = vadd.f32 %v1544_v0, %v1510_v63 }
 0x5f0   : > { %v1548_v33 = vpack.c.bf16 %v1545_v30, %v1532_v29  ;;  %v2083_v29 = vld [vmem:[#allocation4 + $0x2c] sm:$0x1]  ;;  %v2086_v30 = vld [vmem:[#allocation4 + $0x34] sm:$0x1] }
 0x5f2   : > { %v1550_v36 = vrot.slane %v1548_v33, 3 }
 0x5f4   : > { %v4339_v40 = vsel %vm1551_vm15, %v1548_v33, %v1550_v36  ;;  %v1557_v41 = vsel %vm1556_vm0, %v1548_v33, %v1550_v36  ;;  %v1561_v45 = vsel %vm1560_vm1, %v1548_v33, %v1550_v36  ;;  %v1565_v46 = vsel %vm1564_vm2, %v1548_v33, %v1550_v36  ;;  %vm4554_vm0 = vmand %vm1927_vm13, %vm1928_vm14 }
 0x5f5   : > { %v4341_v52 = vrot.slane %v1557_v41, 1  ;;  %v4343_v57 = vrot.slane %v1561_v45, 2  ;;  %v4345_v34 = vrot.slane %v1565_v46, 3  ;;  %v1533_v39 = vpop.f32.mrf.mxu0  ;;  %v1546_v48 = vpop.f32.mrf.mxu1  ;;  %2552 = vrot.lane.b32.xlu0 %v4339_v40, %s3828_s24  ;;  %2368 = vrot.lane.b32.xlu2 %v4339_v40, %s3829_s10  ;;  %v3466_v50 = vpack.i.b16 %v4339_v40, %v4339_v40  ;;  %v1633_v46 = vld [vmem:[#allocation4 + $0x10] sm:$0x1] }
 0x5f6   : > { %2184 = vrot.lane.b32.xlu1 %v4339_v40, %s3830_s12  ;;  %v1569_v51 = vunpack.i.h.s16 %v4339_v40  ;;  %v2008_v42 = vrot.slane %v4339_v40, 1  ;;  %v2089_v48 = vld [vmem:[#allocation4 + $0x3c] sm:$0x1]  ;;  %vm1776_vm15 = vsmask.f32 7942 }
 0x5f7   : > { %v4358_v61 = vperm.slane %v3466_v50, %v4337_v37  ;;  %v3467_v2 = vpack.i.b16 %v4341_v52, %v4341_v52  ;;  %v3468_v44 = vpack.i.b16 %v4343_v57, %v4343_v57  ;;  %v3469_v35 = vpack.i.b16 %v4345_v34, %v4345_v34  ;;  %v1639_v50 = vld [vmem:[#allocation4 + $0x20] sm:$0x1]  ;;  %vm4560_vm1 = vmand %vm1725_vm9, %vm1776_vm15 }
 0x5f8   : > { %v1577_v47 = vpack.i.b16 %v1569_v51, %v1569_v51  ;;  %v2013_v1 = vunpack.i.h.s16 %v2008_v42  ;;  %v3470_v55 = vpack.i.b16 %v2008_v42, %v2008_v42  ;;  %v2009_v54 = vrot.slane %v4341_v52, 1 }
 0x5f9   : > { %v4374_v28 = vperm.slane %v3467_v2, %v4337_v37  ;;  %v1571_v58 = vunpack.i.h.s16 %v4341_v52  ;;  %v4379_v8 = vperm.slane %v3468_v44, %v4337_v37  ;;  %v1628_v60 = vsel %vm4366_vm5, %v4358_v61, %v1627_v53  ;;  %v1636_v53 = vld [vmem:[#allocation4 + $0x18] sm:$0x1] }
 0x5fa   : > { %v2021_v56 = vpack.i.b16 %v2013_v1, %v2013_v1  ;;  %v2031_v6 = vperm.slane %v3470_v55, %v4337_v37  ;;  %v2015_v59 = vunpack.i.h.s16 %v2009_v54  ;;  %v3471_v38 = vpack.i.b16 %v2009_v54, %v2009_v54  ;;  %1629 = vst [vmem:[#allocation4] sm:$0x1] %v1628_v60 }
 0x5fb   : > { %v4385_v62 = vperm.slane %v1577_v47, %v4337_v37  ;;  %v2010_v7 = vrot.slane %v4343_v57, 1  ;;  %v1573_v18 = vunpack.i.h.s16 %v4343_v57  ;;  %v2011_v13 = vrot.slane %v4345_v34, 1  ;;  %v1645_v47 = vld [vmem:[#allocation4 + $0x30] sm:$0x1] }
 0x5fc   : > { %v2035_v3 = vperm.slane %v2021_v56, %v4337_v37  ;;  %v2069_v4 = vsel %vm4366_vm5, %v2031_v6, %v2068_v20  ;;  %v2023_v12 = vpack.i.b16 %v2015_v59, %v2015_v59  ;;  %v2039_v15 = vperm.slane %v3471_v38, %v4337_v37  ;;  %v1642_v56 = vld [vmem:[#allocation4 + $0x28] sm:$0x1] }
 0x5fd   : > { %2460 = vrot.lane.b32.xlu0 %v4339_v40, %s3831_s25  ;;  %2276 = vrot.lane.b32.xlu2 %v4339_v40, %s3832_s21  ;;  %2070 = vst [vmem:[#allocation4 + $0x4] sm:$0x1] %v2069_v4  ;;  %v2017_v16 = vunpack.i.h.s16 %v2010_v7  ;;  %v3472_v9 = vpack.i.b16 %v2010_v7, %v2010_v7  ;;  %v1579_v19 = vpack.i.b16 %v1571_v58, %v1571_v58  ;;  %v1575_v23 = vunpack.i.h.s16 %v4345_v34  ;;  %v1648_v58 = vld [vmem:[#allocation4 + $0x38] sm:$0x1]  ;;  %v2439_v7 = vld [vmem:[#allocation4 + $0xc] sm:$0x4] }
 0x5fe   : > { %2092 = vrot.lane.b32.xlu1 %v4339_v40, %s3824_s14  ;;  %v2072_v10 = vsel %vm4366_vm5, %v2035_v3, %v2071_v43  ;;  %v2043_v21 = vperm.slane %v2023_v12, %v4337_v37  ;;  %v2075_v22 = vsel %vm4366_vm5, %v2039_v15, %v2074_v5  ;;  %v2019_v26 = vunpack.i.h.s16 %v2011_v13  ;;  %v2436_v3 = vld [vmem:[#allocation4 + $0x4] sm:$0x4] }
 0x5ff   : > { %2073 = vst [vmem:[#allocation4 + $0xc] sm:$0x1] %v2072_v10  ;;  %v2025_v24 = vpack.i.b16 %v2017_v16, %v2017_v16  ;;  %v2047_v25 = vperm.slane %v3472_v9, %v4337_v37  ;;  %v3473_v63 = vpack.i.b16 %v2011_v13, %v2011_v13  ;;  %v1581_v0 = vpack.i.b16 %v1573_v18, %v1573_v18 }
 0x600   : > { %2076 = vst [vmem:[#allocation4 + $0x14] sm:$0x1] %v2075_v22  ;;  %v2078_v27 = vsel %vm4366_vm5, %v2043_v21, %v2077_v11  ;;  %v1583_v31 = vpack.i.b16 %v1575_v23, %v1575_v23  ;;  %v1631_v32 = vsel %vm4366_vm5, %v4385_v62, %v1630_v17  ;;  %v2027_v41 = vpack.i.b16 %v2019_v26, %v2019_v26  ;;  %v2258_v17 = vld [vmem:[#allocation4 + $0x14] sm:$0x2]  ;;  %v2261_v22 = vld [vmem:[#allocation4 + $0x1c] sm:$0x2] }
 0x601   : > { %2079 = vst [vmem:[#allocation4 + $0x1c] sm:$0x1] %v2078_v27  ;;  %v2051_v33 = vperm.slane %v2025_v24, %v4337_v37  ;;  %v2081_v36 = vsel %vm4366_vm5, %v2047_v25, %v2080_v14  ;;  %v2055_v45 = vperm.slane %v3473_v63, %v4337_v37  ;;  %v4417_v39 = vperm.slane %v3469_v35, %v4337_v37 }
 0x602   : > { %2082 = vst [vmem:[#allocation4 + $0x24] sm:$0x1] %v2081_v36  ;;  %v4420_v51 = vperm.slane %v1579_v19, %v4337_v37  ;;  %v2059_v2 = vperm.slane %v2027_v41, %v4337_v37  ;;  %v4432_v1 = vperm.slane %v1581_v0, %v4337_v37  ;;  %v1634_v55 = vsel %vm4366_vm5, %v4374_v28, %v1633_v46  ;;  %v2620_v36 = vld [vmem:[#allocation4 + $0x4] sm:$0x8] }
 0x603   : > { %v2084_v42 = vsel %vm4366_vm5, %v2051_v33, %v2083_v29  ;;  %v2087_v44 = vsel %vm4366_vm5, %v2055_v45, %v2086_v30  ;;  %1632 = vst [vmem:[#allocation4 + $0x8] sm:$0x1] %v1631_v32  ;;  %v4442_v35 = vperm.slane %v1583_v31, %v4337_v37  ;;  %v1640_v54 = vsel %vm4366_vm5, %v4379_v8, %v1639_v50 }
 0x604   : > { %2085 = vst [vmem:[#allocation4 + $0x2c] sm:$0x1] %v2084_v42  ;;  %v2090_v20 = vsel %vm4366_vm5, %v2059_v2, %v2089_v48  ;;  %v1646_v6 = vsel %vm4366_vm5, %v4417_v39, %v1645_v47  ;;  %v1643_v43 = vsel %vm4366_vm5, %v4432_v1, %v1642_v56  ;;  %v2623_v47 = vld [vmem:[#allocation4 + $0xc] sm:$0x8]  ;;  %vm1877_vm2 = vsmask.f32 7946 }
 0x605   : > { %2370 = vrot.lane.b32.xlu0 %v4341_v52, %s3829_s10  ;;  %2186 = vrot.lane.b32.xlu2 %v4341_v52, %s3830_s12  ;;  %2088 = vst [vmem:[#allocation4 + $0x34] sm:$0x1] %v2087_v44  ;;  %v1649_v59 = vsel %vm4366_vm5, %v4442_v35, %v1648_v58 }
 0x606   : > { %2644 = vrot.lane.b32.xlu1 %v4339_v40, %s3825_s29  ;;  %2091 = vst [vmem:[#allocation4 + $0x3c] sm:$0x1] %v2090_v20  ;;  %v1637_v40 = vsel %vm4366_vm5, %v4420_v51, %v1636_v53  ;;  %vm4594_vm5 = vmand %vm1826_vm6, %vm1877_vm2 }
 0x607   : > { %1635 = vst [vmem:[#allocation4 + $0x10] sm:$0x1] %v1634_v55  ;;  %v2252_v55 = vld [vmem:[#allocation4 + $0x4] sm:$0x2]  ;;  %vm4639_vm6 = vmand %vm1927_vm13, %vm1978_vm3 }
 0x608   : > { %1641 = vst [vmem:[#allocation4 + $0x20] sm:$0x1] %v1640_v54 }
 0x609   : > { %1647 = vst [vmem:[#allocation4 + $0x30] sm:$0x1] %v1646_v6 }
 0x60a   : > { %1638 = vst [vmem:[#allocation4 + $0x18] sm:$0x1] %v1637_v40  ;;  %v2255_v40 = vld [vmem:[#allocation4 + $0xc] sm:$0x2] }
 0x60b   : > { %1644 = vst [vmem:[#allocation4 + $0x28] sm:$0x1] %v1643_v43 }
 0x60c   : > { %1650 = vst [vmem:[#allocation4 + $0x38] sm:$0x1] %v1649_v59 }
 0x60d   : > { %2462 = vrot.lane.b32.xlu0 %v4341_v52, %s3831_s25  ;;  %2278 = vrot.lane.b32.xlu2 %v4341_v52, %s3832_s21 }
 0x60e   : > { %2554 = vrot.lane.b32.xlu1 %v4341_v52, %s3828_s24 }
 0x615   : > { %2556 = vrot.lane.b32.xlu0 %v4343_v57, %s3828_s24  ;;  %2372 = vrot.lane.b32.xlu2 %v4343_v57, %s3829_s10 }
 0x616   : > { %2094 = vrot.lane.b32.xlu1 %v4341_v52, %s3824_s14 }
 0x61d   : > { %2464 = vrot.lane.b32.xlu0 %v4343_v57, %s3831_s25  ;;  %2280 = vrot.lane.b32.xlu2 %v4343_v57, %s3832_s21 }
 0x61e   : > { %2646 = vrot.lane.b32.xlu1 %v4341_v52, %s3825_s29 }
 0x625   : > { %2374 = vrot.lane.b32.xlu0 %v4345_v34, %s3829_s10  ;;  %2190 = vrot.lane.b32.xlu2 %v4345_v34, %s3830_s12 }
 0x626   : > { %2188 = vrot.lane.b32.xlu1 %v4343_v57, %s3830_s12 }
 0x62d   : > { %2466 = vrot.lane.b32.xlu0 %v4345_v34, %s3831_s25  ;;  %2282 = vrot.lane.b32.xlu2 %v4345_v34, %s3832_s21 }
 0x62e   : > { %2096 = vrot.lane.b32.xlu1 %v4343_v57, %s3824_s14 }
 0x635   : > { %1903 = vrot.lane.b32.xlu2 %v4358_v61, %s3828_s24  ;;  %1802 = vrot.lane.b32.xlu0 %v4358_v61, %s3829_s10 }
 0x636   : > { %2648 = vrot.lane.b32.xlu1 %v4343_v57, %s3825_s29 }
 0x63d   : > { %1651 = vrot.lane.b32.xlu2 %v4358_v61, %s3824_s14  ;;  %1853 = vrot.lane.b32.xlu0 %v4358_v61, %s3831_s25 }
 0x63e   : > { %2558 = vrot.lane.b32.xlu1 %v4345_v34, %s3828_s24 }
 0x645   : > { %1954 = vrot.lane.b32.xlu2 %v4358_v61, %s3825_s29  ;;  %1905 = vrot.lane.b32.xlu0 %v4385_v62, %s3828_s24 }
 0x646   : > { %2098 = vrot.lane.b32.xlu1 %v4345_v34, %s3824_s14 }
 0x64d   : > { %1653 = vrot.lane.b32.xlu0 %v4385_v62, %s3824_s14  ;;  %1703 = vrot.lane.b32.xlu2 %v4385_v62, %s3830_s12 }
 0x64e   : > { %2650 = vrot.lane.b32.xlu1 %v4345_v34, %s3825_s29 }
 0x64f   : > { %v2369_v52 = vpop.permute.xlu2 %2368 }
 0x650   : > { %v2376_v57 = vrot.slane %v2369_v52, 1 }
 0x652   : > { %v2381_v49 = vunpack.i.h.s16 %v2376_v57  ;;  %v3486_v38 = vpack.i.b16 %v2376_v57, %v2376_v57 }
 0x654   : > { %v2389_v4 = vpack.i.b16 %v2381_v49, %v2381_v49  ;;  %v2399_v5 = vperm.slane %v3486_v38, %v4337_v37 }
 0x655   : > { %1956 = vrot.lane.b32.xlu0 %v4385_v62, %s3825_s29  ;;  %1754 = vrot.lane.b32.xlu2 %v4385_v62, %s3832_s21 }
 0x656   : > { %v2403_v34 = vperm.slane %v2389_v4, %v4337_v37  ;;  %v2437_v12 = vsel %vm4514_vm8, %v2399_v5, %v2436_v3  ;;  %1701 = vrot.lane.b32.xlu1 %v4358_v61, %s3830_s12 }
 0x657   : > { %2438 = vst [vmem:[#allocation4 + $0x4] sm:$0x4] %v2437_v12  ;;  %v2277_v15 = vpop.permute.xlu2 %2276 }
 0x658   : > { %v2440_v18 = vsel %vm4514_vm8, %v2403_v34, %v2439_v7  ;;  %v4565_v44 = vrot.slane %v2277_v15, 1 }
 0x659   : > { %2441 = vst [vmem:[#allocation4 + $0xc] sm:$0x4] %v2440_v18 }
 0x65a   : > { %v2289_v7 = vunpack.i.h.s16 %v4565_v44 }
 0x65d   : > { %1806 = vrot.lane.b32.xlu0 %v4374_v28, %s3829_s10  ;;  %1907 = vrot.lane.b32.xlu2 %v4374_v28, %s3828_s24 }
 0x65e   : > { %1752 = vrot.lane.b32.xlu1 %v4358_v61, %s3832_s21 }
 0x65f   : > { %v2187_v10 = vpop.permute.xlu2 %2186 }
 0x660   : > { %v2193_v11 = vrot.slane %v2187_v10, 1 }
 0x662   : > { %v2199_v16 = vunpack.i.h.s16 %v2193_v11  ;;  %v3479_v9 = vpack.i.b16 %v2193_v11, %v2193_v11 }
 0x664   : > { %v2207_v19 = vpack.i.b16 %v2199_v16, %v2199_v16  ;;  %v2223_v21 = vperm.slane %v3479_v9, %v4337_v37  ;;  %v3482_v9 = vpack.i.b16 %v4565_v44, %v4565_v44 }
 0x665   : > { %1857 = vrot.lane.b32.xlu0 %v4374_v28, %s3831_s25  ;;  %1655 = vrot.lane.b32.xlu2 %v4374_v28, %s3824_s14 }
 0x666   : > { %v2227_v61 = vperm.slane %v2207_v19, %v4337_v37  ;;  %v2259_v14 = vsel %vm4537_vm11, %v2223_v21, %v2258_v17  ;;  %1804 = vrot.lane.b32.xlu1 %v4385_v62, %s3829_s10  ;;  %v2448_v19 = vld [vmem:[#allocation4 + $0x24] sm:$0x4] }
 0x667   : > { %2260 = vst [vmem:[#allocation4 + $0x14] sm:$0x2] %v2259_v14  ;;  %v2553_v23 = vpop.permute.xlu0 %2552  ;;  %v2279_v24 = vpop.permute.xlu2 %2278 }
 0x668   : > { %v2262_v25 = vsel %vm4537_vm11, %v2227_v61, %v2261_v22  ;;  %v2560_v26 = vrot.slane %v2553_v23, 1  ;;  %v2285_v63 = vrot.slane %v2279_v24, 1  ;;  %v2185_v27 = vpop.permute.xlu1 %2184 }
 0x669   : > { %2263 = vst [vmem:[#allocation4 + $0x1c] sm:$0x2] %v2262_v25  ;;  %v2192_v0 = vrot.slane %v2185_v27, 1  ;;  %v2297_v25 = vpack.i.b16 %v2289_v7, %v2289_v7 }
 0x66a   : > { %v2565_v29 = vunpack.i.h.s16 %v2560_v26  ;;  %v3494_v30 = vpack.i.b16 %v2560_v26, %v2560_v26  ;;  %v2291_v31 = vunpack.i.h.s16 %v2285_v63  ;;  %v3483_v32 = vpack.i.b16 %v2285_v63, %v2285_v63  ;;  %v2528_v26 = vld [vmem:[#allocation4 + $0x4] sm:$0x4]  ;;  %v2451_v63 = vld [vmem:[#allocation4 + $0x2c] sm:$0x4] }
 0x66b   : > { %v2197_v41 = vunpack.i.h.s16 %v2192_v0  ;;  %v3478_v45 = vpack.i.b16 %v2192_v0, %v2192_v0 }
 0x66c   : > { %v2573_v46 = vpack.i.b16 %v2565_v29, %v2565_v29  ;;  %v2583_v48 = vperm.slane %v3494_v30, %v4337_v37  ;;  %v2299_v42 = vpack.i.b16 %v2291_v31, %v2291_v31  ;;  %v2315_v2 = vperm.slane %v3483_v32, %v4337_v37 }
 0x66d   : > { %v2205_v53 = vpack.i.b16 %v2197_v41, %v2197_v41  ;;  %v2215_v20 = vperm.slane %v3478_v45, %v4337_v37  ;;  %1810 = vrot.lane.b32.xlu0 %v4379_v8, %s3829_s10  ;;  %1958 = vrot.lane.b32.xlu2 %v4374_v28, %s3825_s29  ;;  %v2531_v41 = vld [vmem:[#allocation4 + $0xc] sm:$0x4] }
 0x66e   : > { %v2587_v54 = vperm.slane %v2573_v46, %v4337_v37  ;;  %v2621_v56 = vsel %vm4554_vm0, %v2583_v48, %v2620_v36  ;;  %v2350_v6 = vld [vmem:[#allocation4 + $0x14] sm:$0x2]  ;;  %v2319_v58 = vperm.slane %v2299_v42, %v4337_v37  ;;  %1855 = vrot.lane.b32.xlu1 %v4385_v62, %s3831_s25  ;;  %v2160_v46 = vld [vmem:[#allocation4 + $0x4] sm:$0x1] }
 0x66f   : > { %2622 = vst [vmem:[#allocation4 + $0x4] sm:$0x8] %v2621_v56  ;;  %v2351_v43 = vsel %vm4560_vm1, %v2315_v2, %v2350_v6  ;;  %v2219_v59 = vperm.slane %v2205_v53, %v4337_v37  ;;  %v2461_v52 = vpop.permute.xlu0 %2460  ;;  %v2373_v57 = vpop.permute.xlu2 %2372  ;;  %v2253_v3 = vsel %vm4537_vm11, %v2215_v20, %v2252_v55  ;;  %v2307_v20 = vperm.slane %v3482_v9, %v4337_v37 }
 0x670   : > { %v2624_v49 = vsel %vm4554_vm0, %v2587_v54, %v2623_v47  ;;  %v2353_v38 = vld [vmem:[#allocation4 + $0x1c] sm:$0x2]  ;;  %2352 = vst [vmem:[#allocation4 + $0x14] sm:$0x2] %v2351_v43  ;;  %v2468_v4 = vrot.slane %v2461_v52, 1  ;;  %v2378_v62 = vrot.slane %v2373_v57, 1  ;;  %v2093_v5 = vpop.permute.xlu1 %2092  ;;  %v2311_v56 = vperm.slane %v2297_v25, %v4337_v37 }
 0x671   : > { %2625 = vst [vmem:[#allocation4 + $0xc] sm:$0x8] %v2624_v49  ;;  %v2354_v34 = vsel %vm4560_vm1, %v2319_v58, %v2353_v38  ;;  %v2256_v12 = vsel %vm4537_vm11, %v2219_v59, %v2255_v40  ;;  %v2100_v15 = vrot.slane %v2093_v5, 1  ;;  %v2163_v58 = vld [vmem:[#allocation4 + $0xc] sm:$0x1] }
 0x672   : > { %2355 = vst [vmem:[#allocation4 + $0x1c] sm:$0x2] %v2354_v34  ;;  %v2473_v18 = vunpack.i.h.s16 %v2468_v4  ;;  %v3490_v10 = vpack.i.b16 %v2468_v4, %v2468_v4  ;;  %v2385_v11 = vunpack.i.h.s16 %v2378_v62  ;;  %v3488_v16 = vpack.i.b16 %v2378_v62, %v2378_v62  ;;  %v2442_v49 = vld [vmem:[#allocation4 + $0x14] sm:$0x4]  ;;  %v2445_v34 = vld [vmem:[#allocation4 + $0x1c] sm:$0x4] }
 0x673   : > { %2254 = vst [vmem:[#allocation4 + $0x4] sm:$0x2] %v2253_v3  ;;  %v2105_v21 = vunpack.i.h.s16 %v2100_v15  ;;  %v3474_v22 = vpack.i.b16 %v2100_v15, %v2100_v15 }
 0x674   : > { %2257 = vst [vmem:[#allocation4 + $0xc] sm:$0x2] %v2256_v12  ;;  %v2481_v61 = vpack.i.b16 %v2473_v18, %v2473_v18  ;;  %v2491_v14 = vperm.slane %v3490_v10, %v4337_v37  ;;  %v2393_v23 = vpack.i.b16 %v2385_v11, %v2385_v11  ;;  %v2415_v24 = vperm.slane %v3488_v16, %v4337_v37 }
 0x675   : > { %v2113_v0 = vpack.i.b16 %v2105_v21, %v2105_v21  ;;  %v2123_v29 = vperm.slane %v3474_v22, %v4337_v37  ;;  %1861 = vrot.lane.b32.xlu0 %v4379_v8, %s3831_s25  ;;  %1911 = vrot.lane.b32.xlu2 %v4379_v8, %s3828_s24 }
 0x676   : > { %v2495_v30 = vperm.slane %v2481_v61, %v4337_v37  ;;  %v2529_v31 = vsel %vm4594_vm5, %v2491_v14, %v2528_v26  ;;  %v2419_v32 = vperm.slane %v2393_v23, %v4337_v37  ;;  %v2449_v36 = vsel %vm4514_vm8, %v2415_v24, %v2448_v19  ;;  %1705 = vrot.lane.b32.xlu1 %v4374_v28, %s3830_s12  ;;  %v2712_v11 = vld [vmem:[#allocation4 + $0x4] sm:$0x8] }
 0x677   : > { %2530 = vst [vmem:[#allocation4 + $0x4] sm:$0x4] %v2529_v31  ;;  %v2127_v45 = vperm.slane %v2113_v0, %v4337_v37  ;;  %v2371_v48 = vpop.permute.xlu0 %2370  ;;  %v4620_v42 = vpop.permute.xlu2 %2280  ;;  %v2161_v47 = vsel %vm4602_vm7, %v2123_v29, %v2160_v46 }
 0x678   : > { %v2532_v2 = vsel %vm4594_vm5, %v2495_v30, %v2531_v41  ;;  %2450 = vst [vmem:[#allocation4 + $0x24] sm:$0x4] %v2449_v36  ;;  %v2452_v44 = vsel %vm4514_vm8, %v2419_v32, %v2451_v63  ;;  %v2377_v55 = vrot.slane %v2371_v48, 1  ;;  %v2645_v53 = vpop.permute.xlu1 %2644  ;;  %v2715_v61 = vld [vmem:[#allocation4 + $0xc] sm:$0x8] }
 0x679   : > { %2533 = vst [vmem:[#allocation4 + $0xc] sm:$0x4] %v2532_v2  ;;  %v2652_v54 = vrot.slane %v2645_v53, 1  ;;  %v2164_v57 = vsel %vm4602_vm7, %v2127_v45, %v2163_v58  ;;  %v2270_v30 = vld [vmem:[#allocation4 + $0x34] sm:$0x2] }
 0x67a   : > { %v2344_v6 = vld [vmem:[#allocation4 + $0x4] sm:$0x2]  ;;  %2453 = vst [vmem:[#allocation4 + $0x2c] sm:$0x4] %v2452_v44  ;;  %v2383_v40 = vunpack.i.h.s16 %v2377_v55  ;;  %v3487_v43 = vpack.i.b16 %v2377_v55, %v2377_v55  ;;  %v2273_v48 = vld [vmem:[#allocation4 + $0x3c] sm:$0x2] }
 0x67b   : > { %v2345_v59 = vsel %vm4560_vm1, %v2307_v20, %v2344_v6  ;;  %v2347_v52 = vld [vmem:[#allocation4 + $0xc] sm:$0x2]  ;;  %2162 = vst [vmem:[#allocation4 + $0x4] sm:$0x1] %v2161_v47  ;;  %v2657_v38 = vunpack.i.h.s16 %v2652_v54  ;;  %v3498_v3 = vpack.i.b16 %v2652_v54, %v2652_v54  ;;  %v2626_v2 = vld [vmem:[#allocation4 + $0x14] sm:$0x8] }
 0x67c   : > { %2346 = vst [vmem:[#allocation4 + $0x4] sm:$0x2] %v2345_v59  ;;  %v2348_v4 = vsel %vm4560_vm1, %v2311_v56, %v2347_v52  ;;  %v2391_v62 = vpack.i.b16 %v2383_v40, %v2383_v40  ;;  %v2407_v5 = vperm.slane %v3487_v43, %v4337_v37  ;;  %v2629_v56 = vld [vmem:[#allocation4 + $0x1c] sm:$0x8] }
 0x67d   : > { %2349 = vst [vmem:[#allocation4 + $0xc] sm:$0x2] %v2348_v4  ;;  %v2665_v12 = vpack.i.b16 %v2657_v38, %v2657_v38  ;;  %v2675_v15 = vperm.slane %v3498_v3, %v4337_v37  ;;  %1814 = vrot.lane.b32.xlu0 %v4417_v39, %s3829_s10  ;;  %1659 = vrot.lane.b32.xlu2 %v4379_v8, %s3824_s14 }
 0x67e   : > { %2165 = vst [vmem:[#allocation4 + $0xc] sm:$0x1] %v2164_v57  ;;  %v2411_v18 = vperm.slane %v2391_v62, %v4337_v37  ;;  %v2443_v10 = vsel %vm4514_vm8, %v2407_v5, %v2442_v49  ;;  %1756 = vrot.lane.b32.xlu1 %v4374_v28, %s3832_s21 }
 0x67f   : > { %2444 = vst [vmem:[#allocation4 + $0x14] sm:$0x4] %v2443_v10  ;;  %v2679_v16 = vperm.slane %v2665_v12, %v4337_v37  ;;  %v2713_v9 = vsel %vm4639_vm6, %v2675_v15, %v2712_v11  ;;  %v2463_v19 = vpop.permute.xlu0 %2462  ;;  %v2191_v21 = vpop.permute.xlu2 %2190  ;;  %v2632_v10 = vld [vmem:[#allocation4 + $0x24] sm:$0x8] }
 0x680   : > { %v2446_v22 = vsel %vm4514_vm8, %v2411_v18, %v2445_v34  ;;  %2714 = vst [vmem:[#allocation4 + $0x4] sm:$0x8] %v2713_v9  ;;  %v2469_v14 = vrot.slane %v2463_v19, 1  ;;  %v2195_v23 = vrot.slane %v2191_v21, 1  ;;  %v2555_v24 = vpop.permute.xlu1 %2554 }
 0x681   : > { %2447 = vst [vmem:[#allocation4 + $0x1c] sm:$0x4] %v2446_v22  ;;  %v2716_v28 = vsel %vm4639_vm6, %v2679_v16, %v2715_v61  ;;  %v2561_v25 = vrot.slane %v2555_v24, 1  ;;  %v2635_v61 = vld [vmem:[#allocation4 + $0x2c] sm:$0x8] }
 0x682   : > { %2717 = vst [vmem:[#allocation4 + $0xc] sm:$0x8] %v2716_v28  ;;  %v2475_v26 = vunpack.i.h.s16 %v2469_v14  ;;  %v3491_v63 = vpack.i.b16 %v2469_v14, %v2469_v14  ;;  %v2203_v0 = vunpack.i.h.s16 %v2195_v23  ;;  %v3481_v29 = vpack.i.b16 %v2195_v23, %v2195_v23 }
 0x683   : > { %v2567_v31 = vunpack.i.h.s16 %v2561_v25  ;;  %v3495_v32 = vpack.i.b16 %v2561_v25, %v2561_v25 }
 0x684   : > { %v2483_v36 = vpack.i.b16 %v2475_v26, %v2475_v26  ;;  %v2499_v41 = vperm.slane %v3491_v63, %v4337_v37  ;;  %v2211_v45 = vpack.i.b16 %v2203_v0, %v2203_v0  ;;  %v2239_v46 = vperm.slane %v3481_v29, %v4337_v37  ;;  %v2166_v63 = vld [vmem:[#allocation4 + $0x14] sm:$0x1]  ;;  %v2169_v29 = vld [vmem:[#allocation4 + $0x1c] sm:$0x1] }
 0x685   : > { %v2575_v44 = vpack.i.b16 %v2567_v31, %v2567_v31  ;;  %v2591_v47 = vperm.slane %v3495_v32, %v4337_v37  ;;  %1909 = vrot.lane.b32.xlu0 %v4420_v51, %s3828_s24  ;;  %1962 = vrot.lane.b32.xlu2 %v4379_v8, %s3825_s29  ;;  %v1930_v32 = vld [vmem:[#allocation4] sm:$0x8] }
 0x686   : > { %v2534_v55 = vld [vmem:[#allocation4 + $0x14] sm:$0x4]  ;;  %v2503_v53 = vperm.slane %v2483_v36, %v4337_v37  ;;  %v2243_v20 = vperm.slane %v2211_v45, %v4337_v37  ;;  %v2271_v54 = vsel %vm4537_vm11, %v2239_v46, %v2270_v30  ;;  %1709 = vrot.lane.b32.xlu1 %v4379_v8, %s3830_s12 }
 0x687   : > { %v2535_v6 = vsel %vm4594_vm5, %v2499_v41, %v2534_v55  ;;  %2272 = vst [vmem:[#allocation4 + $0x34] sm:$0x2] %v2271_v54  ;;  %v2595_v58 = vperm.slane %v2575_v44, %v4337_v37  ;;  %v2557_v40 = vpop.permute.xlu0 %2556  ;;  %v2283_v43 = vpop.permute.xlu2 %2282  ;;  %v2627_v57 = vsel %vm4554_vm0, %v2591_v47, %v2626_v2 }
 0x688   : > { %v2537_v59 = vld [vmem:[#allocation4 + $0x1c] sm:$0x4]  ;;  %2536 = vst [vmem:[#allocation4 + $0x14] sm:$0x4] %v2535_v6  ;;  %v2274_v52 = vsel %vm4537_vm11, %v2243_v20, %v2273_v48  ;;  %v2562_v49 = vrot.slane %v2557_v40, 1  ;;  %v2287_v38 = vrot.slane %v2283_v43, 1  ;;  %v2095_v3 = vpop.permute.xlu1 %2094 }
 0x689   : > { %v2538_v4 = vsel %vm4594_vm5, %v2503_v53, %v2537_v59  ;;  %2275 = vst [vmem:[#allocation4 + $0x3c] sm:$0x2] %v2274_v52  ;;  %v2630_v62 = vsel %vm4554_vm0, %v2595_v58, %v2629_v56  ;;  %v2101_v5 = vrot.slane %v2095_v3, 1  ;;  %v2540_v40 = vld [vmem:[#allocation4 + $0x24] sm:$0x4] }
 0x68a   : > { %2539 = vst [vmem:[#allocation4 + $0x1c] sm:$0x4] %v2538_v4  ;;  %v2569_v34 = vunpack.i.h.s16 %v2562_v49  ;;  %v3496_v12 = vpack.i.b16 %v2562_v49, %v2562_v49  ;;  %v2295_v15 = vunpack.i.h.s16 %v2287_v38  ;;  %v3485_v18 = vpack.i.b16 %v2287_v38, %v2287_v38  ;;  %v2543_v38 = vld [vmem:[#allocation4 + $0x2c] sm:$0x4] }
 0x68b   : > { %2628 = vst [vmem:[#allocation4 + $0x14] sm:$0x8] %v2627_v57  ;;  %v2107_v11 = vunpack.i.h.s16 %v2101_v5  ;;  %v3475_v16 = vpack.i.b16 %v2101_v5, %v2101_v5 }
 0x68c   : > { %2631 = vst [vmem:[#allocation4 + $0x1c] sm:$0x8] %v2630_v62  ;;  %v2577_v9 = vpack.i.b16 %v2569_v34, %v2569_v34  ;;  %v2599_v19 = vperm.slane %v3496_v12, %v4337_v37  ;;  %v2303_v21 = vpack.i.b16 %v2295_v15, %v2295_v15  ;;  %v2331_v22 = vperm.slane %v3485_v18, %v4337_v37  ;;  %v1677_v34 = vld [vmem:[#allocation4] sm:$0x1] }
 0x68d   : > { %v2115_v14 = vpack.i.b16 %v2107_v11, %v2107_v11  ;;  %v2131_v23 = vperm.slane %v3475_v16, %v4337_v37  ;;  %1657 = vrot.lane.b32.xlu0 %v4420_v51, %s3824_s14  ;;  %1915 = vrot.lane.b32.xlu2 %v4417_v39, %s3828_s24 }
 0x68e   : > { %v2603_v24 = vperm.slane %v2577_v9, %v4337_v37  ;;  %v2633_v28 = vsel %vm4554_vm0, %v2599_v19, %v2632_v10  ;;  %v2362_v25 = vld [vmem:[#allocation4 + $0x34] sm:$0x2]  ;;  %v2335_v26 = vperm.slane %v2303_v21, %v4337_v37  ;;  %1760 = vrot.lane.b32.xlu1 %v4379_v8, %s3832_s21 }
 0x68f   : > { %2634 = vst [vmem:[#allocation4 + $0x24] sm:$0x8] %v2633_v28  ;;  %v2363_v0 = vsel %vm4560_vm1, %v2331_v22, %v2362_v25  ;;  %v2135_v30 = vperm.slane %v2115_v14, %v4337_v37  ;;  %v2465_v31 = vpop.permute.xlu0 %2464  ;;  %v1904_v36 = vpop.permute.xlu2 %1903  ;;  %v2167_v46 = vsel %vm4602_vm7, %v2131_v23, %v2166_v63  ;;  %v2454_v22 = vld [vmem:[#allocation4 + $0x34] sm:$0x4]  ;;  %v2286_v23 = vrot.slane %v4620_v42, 1 }
 0x690   : > { %v2636_v41 = vsel %vm4554_vm0, %v2603_v24, %v2635_v61  ;;  %v2365_v45 = vld [vmem:[#allocation4 + $0x3c] sm:$0x2]  ;;  %2364 = vst [vmem:[#allocation4 + $0x34] sm:$0x2] %v2363_v0  ;;  %v2470_v48 = vrot.slane %v2465_v31, 1  ;;  %v2647_v8 = vpop.permute.xlu1 %2646  ;;  %v1931_v20 = vsel %vm4554_vm0, %v1904_v36, %v1930_v32 }
 0x691   : > { %2637 = vst [vmem:[#allocation4 + $0x2c] sm:$0x8] %v2636_v41  ;;  %v2366_v2 = vsel %vm4560_vm1, %v2335_v26, %v2365_v45  ;;  %v2170_v44 = vsel %vm4602_vm7, %v2135_v30, %v2169_v29  ;;  %v2653_v47 = vrot.slane %v2647_v8, 1  ;;  %v2264_v25 = vld [vmem:[#allocation4 + $0x24] sm:$0x2] }
 0x692   : > { %2367 = vst [vmem:[#allocation4 + $0x3c] sm:$0x2] %v2366_v2  ;;  %v2477_v55 = vunpack.i.h.s16 %v2470_v48  ;;  %v3492_v53 = vpack.i.b16 %v2470_v48, %v2470_v48  ;;  %v2718_v49 = vld [vmem:[#allocation4 + $0x14] sm:$0x8]  ;;  %v2457_v26 = vld [vmem:[#allocation4 + $0x3c] sm:$0x4] }
 0x693   : > { %2168 = vst [vmem:[#allocation4 + $0x14] sm:$0x1] %v2167_v46  ;;  %v2659_v54 = vunpack.i.h.s16 %v2653_v47  ;;  %v3499_v56 = vpack.i.b16 %v2653_v47, %v2653_v47  ;;  %v2721_v15 = vld [vmem:[#allocation4 + $0x1c] sm:$0x8]  ;;  %v2267_v42 = vld [vmem:[#allocation4 + $0x2c] sm:$0x2]  ;;  %v2293_v46 = vunpack.i.h.s16 %v2286_v23 }
 0x694   : > { %2171 = vst [vmem:[#allocation4 + $0x1c] sm:$0x1] %v2170_v44  ;;  %v2485_v6 = vpack.i.b16 %v2477_v55, %v2477_v55  ;;  %v2507_v58 = vperm.slane %v3492_v53, %v4337_v37  ;;  %v3484_v53 = vpack.i.b16 %v2286_v23, %v2286_v23 }
 0x695   : > { %v2667_v43 = vpack.i.b16 %v2659_v54, %v2659_v54  ;;  %v2683_v59 = vperm.slane %v3499_v56, %v4337_v37  ;;  %1932 = vst [vmem:[#allocation4] sm:$0x8] %v1931_v20  ;;  %1960 = vrot.lane.b32.xlu0 %v4420_v51, %s3825_s29  ;;  %1663 = vrot.lane.b32.xlu2 %v4417_v39, %s3824_s14 }
 0x696   : > { %v2511_v52 = vperm.slane %v2485_v6, %v4337_v37  ;;  %v2541_v57 = vsel %vm4594_vm5, %v2507_v58, %v2540_v40  ;;  %1713 = vrot.lane.b32.xlu1 %v4417_v39, %s3830_s12  ;;  %v2301_v58 = vpack.i.b16 %v2293_v46, %v2293_v46 }
 0x697   : > { %2542 = vst [vmem:[#allocation4 + $0x24] sm:$0x4] %v2541_v57  ;;  %v2687_v3 = vperm.slane %v2667_v43, %v4337_v37  ;;  %v2719_v4 = vsel %vm4639_vm6, %v2683_v59, %v2718_v49  ;;  %v2375_v62 = vpop.permute.xlu0 %2374  ;;  %v1652_v5 = vpop.permute.xlu2 %1651  ;;  %v2323_v57 = vperm.slane %v3484_v53, %v4337_v37  ;;  %v1933_v53 = vld [vmem:[#allocation4 + $0x8] sm:$0x8] }
 0x698   : > { %v2544_v12 = vsel %vm4594_vm5, %v2511_v52, %v2543_v38  ;;  %2720 = vst [vmem:[#allocation4 + $0x14] sm:$0x8] %v2719_v4  ;;  %v2379_v18 = vrot.slane %v2375_v62, 1  ;;  %v2189_v10 = vpop.permute.xlu1 %2188  ;;  %v1678_v11 = vsel %vm4602_vm7, %v1652_v5, %v1677_v34  ;;  %v2175_v5 = vld [vmem:[#allocation4 + $0x2c] sm:$0x1] }
 0x699   : > { %2545 = vst [vmem:[#allocation4 + $0x2c] sm:$0x4] %v2544_v12  ;;  %v2722_v16 = vsel %vm4639_vm6, %v2687_v3, %v2721_v15  ;;  %v2194_v9 = vrot.slane %v2189_v10, 1  ;;  %v2172_v3 = vld [vmem:[#allocation4 + $0x24] sm:$0x1]  ;;  %v2327_v10 = vperm.slane %v2301_v58, %v4337_v37 }
 0x69a   : > { %2723 = vst [vmem:[#allocation4 + $0x1c] sm:$0x8] %v2722_v16  ;;  %v2387_v19 = vunpack.i.h.s16 %v2379_v18  ;;  %v3489_v21 = vpack.i.b16 %v2379_v18, %v2379_v18  ;;  %v1829_v12 = vld [vmem:[#allocation4] sm:$0x4] }
 0x69b   : > { %v2201_v61 = vunpack.i.h.s16 %v2194_v9  ;;  %v3480_v14 = vpack.i.b16 %v2194_v9, %v2194_v9  ;;  %1679 = vst [vmem:[#allocation4] sm:$0x1] %v1678_v11 }
 0x69c   : > { %v2395_v24 = vpack.i.b16 %v2387_v19, %v2387_v19  ;;  %v2423_v28 = vperm.slane %v3489_v21, %v4337_v37  ;;  %v1980_v41 = vld [vmem:[#allocation4] sm:$0x8]  ;;  %v1731_v19 = vld [vmem:[#allocation4 + $0x8] sm:$0x2] }
 0x69d   : > { %v2209_v63 = vpack.i.b16 %v2201_v61, %v2201_v61  ;;  %v2231_v0 = vperm.slane %v3480_v14, %v4337_v37  ;;  %1913 = vrot.lane.b32.xlu0 %v4432_v1, %s3828_s24  ;;  %1707 = vrot.lane.b32.xlu2 %v4420_v51, %s3830_s12 }
 0x69e   : > { %v2427_v29 = vperm.slane %v2395_v24, %v4337_v37  ;;  %v2455_v30 = vsel %vm4514_vm8, %v2423_v28, %v2454_v22  ;;  %1808 = vrot.lane.b32.xlu1 %v4420_v51, %s3829_s10 }
 0x69f   : > { %2456 = vst [vmem:[#allocation4 + $0x34] sm:$0x4] %v2455_v30  ;;  %v2235_v31 = vperm.slane %v2209_v63, %v4337_v37  ;;  %v2265_v32 = vsel %vm4537_vm11, %v2231_v0, %v2264_v25  ;;  %v2467_v36 = vpop.permute.xlu0 %2466  ;;  %v1955_v45 = vpop.permute.xlu2 %1954 }
 0x6a0   : > { %v2458_v48 = vsel %vm4514_vm8, %v2427_v29, %v2457_v26  ;;  %2266 = vst [vmem:[#allocation4 + $0x24] sm:$0x2] %v2265_v32  ;;  %v2471_v8 = vrot.slane %v2467_v36, 1  ;;  %v2097_v2 = vpop.permute.xlu1 %2096  ;;  %v1981_v44 = vsel %vm4639_vm6, %v1955_v45, %v1980_v41  ;;  %v2724_v29 = vld [vmem:[#allocation4 + $0x24] sm:$0x8] }
 0x6a1   : > { %2459 = vst [vmem:[#allocation4 + $0x3c] sm:$0x4] %v2458_v48  ;;  %v2268_v47 = vsel %vm4537_vm11, %v2235_v31, %v2267_v42  ;;  %v2102_v55 = vrot.slane %v2097_v2, 1  ;;  %v2727_v36 = vld [vmem:[#allocation4 + $0x2c] sm:$0x8] }
 0x6a2   : > { %2269 = vst [vmem:[#allocation4 + $0x2c] sm:$0x2] %v2268_v47  ;;  %v2479_v20 = vunpack.i.h.s16 %v2471_v8  ;;  %v3493_v54 = vpack.i.b16 %v2471_v8, %v2471_v8  ;;  %v2638_v2 = vld [vmem:[#allocation4 + $0x34] sm:$0x8] }
 0x6a3   : > { %v2109_v56 = vunpack.i.h.s16 %v2102_v55  ;;  %v3476_v6 = vpack.i.b16 %v2102_v55, %v2102_v55  ;;  %1982 = vst [vmem:[#allocation4] sm:$0x8] %v1981_v44 }
 0x6a4   : > { %v2487_v40 = vpack.i.b16 %v2479_v20, %v2479_v20  ;;  %v2515_v43 = vperm.slane %v3493_v54, %v4337_v37  ;;  %v2641_v20 = vld [vmem:[#allocation4 + $0x3c] sm:$0x8] }
 0x6a5   : > { %v2117_v59 = vpack.i.b16 %v2109_v56, %v2109_v56  ;;  %v2139_v52 = vperm.slane %v3476_v6, %v4337_v37  ;;  %1661 = vrot.lane.b32.xlu0 %v4432_v1, %s3824_s14  ;;  %1758 = vrot.lane.b32.xlu2 %v4420_v51, %s3832_s21  ;;  %v1936_v6 = vld [vmem:[#allocation4 + $0x10] sm:$0x8] }
 0x6a6   : > { %v2546_v49 = vld [vmem:[#allocation4 + $0x34] sm:$0x4]  ;;  %v2519_v38 = vperm.slane %v2487_v40, %v4337_v37  ;;  %1859 = vrot.lane.b32.xlu1 %v4420_v51, %s3831_s25 }
 0x6a7   : > { %v2356_v4 = vld [vmem:[#allocation4 + $0x24] sm:$0x2]  ;;  %v2547_v62 = vsel %vm4594_vm5, %v2515_v43, %v2546_v49  ;;  %v2143_v34 = vperm.slane %v2117_v59, %v4337_v37  ;;  %v1803_v15 = vpop.permute.xlu0 %1802  ;;  %v1704_v18 = vpop.permute.xlu2 %1703  ;;  %v2173_v22 = vsel %vm4602_vm7, %v2139_v52, %v2172_v3 }
 0x6a8   : > { %v2357_v11 = vsel %vm4560_vm1, %v2323_v57, %v2356_v4  ;;  %v2549_v16 = vld [vmem:[#allocation4 + $0x3c] sm:$0x4]  ;;  %2548 = vst [vmem:[#allocation4 + $0x34] sm:$0x4] %v2547_v62  ;;  %v2649_v9 = vpop.permute.xlu1 %2648  ;;  %v1830_v25 = vsel %vm4514_vm8, %v1803_v15, %v1829_v12  ;;  %v1732_v26 = vsel %vm4537_vm11, %v1704_v18, %v1731_v19  ;;  %v2178_v15 = vld [vmem:[#allocation4 + $0x34] sm:$0x1] }
 0x6a9   : > { %2358 = vst [vmem:[#allocation4 + $0x24] sm:$0x2] %v2357_v11  ;;  %v2359_v51 = vld [vmem:[#allocation4 + $0x2c] sm:$0x2]  ;;  %v2550_v21 = vsel %vm4594_vm5, %v2519_v38, %v2549_v16  ;;  %v2654_v61 = vrot.slane %v2649_v9, 1  ;;  %v2176_v23 = vsel %vm4602_vm7, %v2143_v34, %v2175_v5  ;;  %v3617_v5 = vld [vmem:[%s5075_s6] sm:$0xff] }
 0x6aa   : > { %v2360_v14 = vsel %vm4560_vm1, %v2327_v10, %v2359_v51  ;;  %2551 = vst [vmem:[#allocation4 + $0x3c] sm:$0x4] %v2550_v21  ;;  %2776 = vmatpush.bf16.msra.mxu2 %v3617_v5  ;;  %v1680_v16 = vld [vmem:[#allocation4 + $0x8] sm:$0x1]  ;;  %v1683_v9 = vld [vmem:[#allocation4 + $0x10] sm:$0x1]  ;;  %2798 = vmatpush.bf16.msra.mxu3 %v3617_v5 }
 0x6ab   : > { %2361 = vst [vmem:[#allocation4 + $0x2c] sm:$0x2] %v2360_v14  ;;  %v2661_v24 = vunpack.i.h.s16 %v2654_v61  ;;  %v3500_v28 = vpack.i.b16 %v2654_v61, %v2654_v61  ;;  %2820 = vmatpush.bf16.msrb.mxu0 %v3617_v5  ;;  %v2181_v51 = vld [vmem:[#allocation4 + $0x3c] sm:$0x1]  ;;  %2842 = vmatpush.bf16.msrb.mxu1 %v3617_v5 }
 0x6ac   : > { %2174 = vst [vmem:[#allocation4 + $0x24] sm:$0x1] %v2173_v22 }
 0x6ad   : > { %2177 = vst [vmem:[#allocation4 + $0x2c] sm:$0x1] %v2176_v23  ;;  %v2669_v63 = vpack.i.b16 %v2661_v24, %v2661_v24  ;;  %v2691_v0 = vperm.slane %v3500_v28, %v4337_v37  ;;  %1964 = vrot.lane.b32.xlu0 %v4432_v1, %s3825_s29  ;;  %1711 = vrot.lane.b32.xlu2 %v4432_v1, %s3830_s12 }
 0x6ae   : > { %1831 = vst [vmem:[#allocation4] sm:$0x4] %v1830_v25  ;;  %1812 = vrot.lane.b32.xlu1 %v4432_v1, %s3829_s10  ;;  %2864 = vmatpush.bf16.msrb.mxu2 %v3617_v5 }
 0x6af   : > { %v2695_v30 = vperm.slane %v2669_v63, %v4337_v37  ;;  %v2725_v42 = vsel %vm4639_vm6, %v2691_v0, %v2724_v29  ;;  %1733 = vst [vmem:[#allocation4 + $0x8] sm:$0x2] %v1732_v26  ;;  %v1854_v31 = vpop.permute.xlu0 %1853  ;;  %v1755_v32 = vpop.permute.xlu2 %1754  ;;  %2886 = vmatpush.bf16.msrb.mxu3 %v3617_v5  ;;  %2908 = vmatpush.bf16.msra.mxu0 %v3617_v5  ;;  %v1728_v0 = vld [vmem:[#allocation4] sm:$0x2] }
 0x6b0   : > { %2726 = vst [vmem:[#allocation4 + $0x24] sm:$0x8] %v2725_v42  ;;  %v2559_v41 = vpop.permute.xlu1 %2558  ;;  %2930 = vmatpush.bf16.msra.mxu1 %v3617_v5 }
 0x6b1   : > { %v2728_v45 = vsel %vm4639_vm6, %v2695_v30, %v2727_v36  ;;  %v2563_v46 = vrot.slane %v2559_v41, 1 }
 0x6b2   : > { %2729 = vst [vmem:[#allocation4 + $0x2c] sm:$0x8] %v2728_v45 }
 0x6b3   : > { %v2571_v48 = vunpack.i.h.s16 %v2563_v46  ;;  %v3497_v8 = vpack.i.b16 %v2563_v46, %v2563_v46 }
 0x6b5   : > { %v2579_v44 = vpack.i.b16 %v2571_v48, %v2571_v48  ;;  %v2607_v47 = vperm.slane %v3497_v8, %v4337_v37  ;;  %v1879_v55 = vld [vmem:[#allocation4] sm:$0x4]  ;;  %1865 = vrot.lane.b32.xlu0 %v4417_v39, %s3831_s25  ;;  %1762 = vrot.lane.b32.xlu2 %v4432_v1, %s3832_s21 }
 0x6b6   : > { %v1880_v54 = vsel %vm4594_vm5, %v1854_v31, %v1879_v55  ;;  %v1781_v56 = vld [vmem:[#allocation4 + $0x8] sm:$0x2]  ;;  %1863 = vrot.lane.b32.xlu1 %v4432_v1, %s3831_s25 }
 0x6b7   : > { %v2611_v58 = vperm.slane %v2579_v44, %v4337_v37  ;;  %v2639_v40 = vsel %vm4554_vm0, %v2607_v47, %v2638_v2  ;;  %1881 = vst [vmem:[#allocation4] sm:$0x4] %v1880_v54  ;;  %v1782_v43 = vsel %vm4560_vm1, %v1755_v32, %v1781_v56  ;;  %v1906_v59 = vpop.permute.xlu0 %1905  ;;  %v1908_v52 = vpop.permute.xlu2 %1907  ;;  %v1835_v2 = vld [vmem:[#allocation4 + $0x10] sm:$0x4]  ;;  %v1942_v44 = vld [vmem:[#allocation4 + $0x20] sm:$0x8] }
 0x6b8   : > { %2640 = vst [vmem:[#allocation4 + $0x34] sm:$0x8] %v2639_v40  ;;  %v2099_v57 = vpop.permute.xlu1 %2098  ;;  %v1934_v49 = vsel %vm4554_vm0, %v1906_v59, %v1933_v53  ;;  %v1937_v3 = vsel %vm4554_vm0, %v1908_v52, %v1936_v6  ;;  %v1832_v6 = vld [vmem:[#allocation4 + $0x8] sm:$0x4]  ;;  %v1689_v40 = vld [vmem:[#allocation4 + $0x20] sm:$0x1] }
 0x6b9   : > { %v2642_v1 = vsel %vm4554_vm0, %v2611_v58, %v2641_v20  ;;  %1783 = vst [vmem:[#allocation4 + $0x8] sm:$0x2] %v1782_v43  ;;  %v2103_v38 = vrot.slane %v2099_v57, 1 }
 0x6ba   : > { %2643 = vst [vmem:[#allocation4 + $0x3c] sm:$0x8] %v2642_v1 }
 0x6bb   : > { %v2111_v4 = vunpack.i.h.s16 %v2103_v38  ;;  %v3477_v62 = vpack.i.b16 %v2103_v38, %v2103_v38  ;;  %1935 = vst [vmem:[#allocation4 + $0x8] sm:$0x8] %v1934_v49  ;;  %v1841_v38 = vld [vmem:[#allocation4 + $0x20] sm:$0x4] }
 0x6bc   : > { %1938 = vst [vmem:[#allocation4 + $0x10] sm:$0x8] %v1937_v3 }
 0x6bd   : > { %v2119_v34 = vpack.i.b16 %v2111_v4, %v2111_v4  ;;  %v2147_v12 = vperm.slane %v3477_v62, %v4337_v37  ;;  %1917 = vrot.lane.b32.xlu0 %v4442_v35, %s3828_s24  ;;  %1715 = vrot.lane.b32.xlu2 %v4442_v35, %s3830_s12  ;;  %s3218_s12 = scalar_lea.hbm %s5077_s8, %s3620_s16 }
 0x6be   : > { %1816 = vrot.lane.b32.xlu1 %v4442_v35, %s3829_s10 }
 0x6bf   : > { %v2151_v18 = vperm.slane %v2119_v34, %v4337_v37  ;;  %v2179_v10 = vsel %vm4602_vm7, %v2147_v12, %v2178_v15  ;;  %v1654_v11 = vpop.permute.xlu0 %1653  ;;  %v1656_v19 = vpop.permute.xlu2 %1655  ;;  %v2730_v63 = vld [vmem:[#allocation4 + $0x34] sm:$0x8] }
 0x6c0   : > { %2180 = vst [vmem:[#allocation4 + $0x34] sm:$0x1] %v2179_v10  ;;  %v2651_v21 = vpop.permute.xlu1 %2650  ;;  %v1681_v22 = vsel %vm4602_vm7, %v1654_v11, %v1680_v16  ;;  %v1684_v61 = vsel %vm4602_vm7, %v1656_v19, %v1683_v9  ;;  %v1948_v10 = vld [vmem:[#allocation4 + $0x30] sm:$0x8]  ;;  %v1734_v11 = vld [vmem:[#allocation4 + $0x10] sm:$0x2] }
 0x6c1   : > { %v2182_v14 = vsel %vm4602_vm7, %v2151_v18, %v2181_v51  ;;  %v2655_v23 = vrot.slane %v2651_v21, 1  ;;  %1682 = vst [vmem:[#allocation4 + $0x8] sm:$0x1] %v1681_v22  ;;  %v2733_v36 = vld [vmem:[#allocation4 + $0x3c] sm:$0x8] }
 0x6c2   : > { %2183 = vst [vmem:[#allocation4 + $0x3c] sm:$0x1] %v2182_v14  ;;  %v1983_v42 = vld [vmem:[#allocation4 + $0x8] sm:$0x8] }
 0x6c3   : > { %v2663_v24 = vunpack.i.h.s16 %v2655_v23  ;;  %v3501_v28 = vpack.i.b16 %v2655_v23, %v2655_v23  ;;  %1685 = vst [vmem:[#allocation4 + $0x10] sm:$0x1] %v1684_v61  ;;  %v1986_v46 = vld [vmem:[#allocation4 + $0x10] sm:$0x8]  ;;  %v1847_v23 = vld [vmem:[#allocation4 + $0x30] sm:$0x4] }
 0x6c5   : > { %v2671_v25 = vpack.i.b16 %v2663_v24, %v2663_v24  ;;  %v2699_v26 = vperm.slane %v3501_v28, %v4337_v37  ;;  %1665 = vrot.lane.b32.xlu0 %v4442_v35, %s3824_s14  ;;  %1766 = vrot.lane.b32.xlu2 %v4442_v35, %s3832_s21  ;;  %v1695_v28 = vld [vmem:[#allocation4 + $0x30] sm:$0x1] }
 0x6c6   : > { %1764 = vrot.lane.b32.xlu1 %v4417_v39, %s3832_s21  ;;  %s3221_s21 = sshll.u32 %s3218_s12, 4  ;;  %s3222_s21 = int_to_ptr.hbm [resolvable:$true] %s3221_s21 }
 0x6c7   : > { %v2703_v29 = vperm.slane %v2671_v25, %v4337_v37  ;;  %v2731_v30 = vsel %vm4639_vm6, %v2699_v26, %v2730_v63  ;;  %v1957_v31 = vpop.permute.xlu0 %1956  ;;  %v1959_v32 = vpop.permute.xlu2 %1958  ;;  %s3763_s22 = sshra.s32 %s3222_s21, 4  ;;  %s3764_s22 = int_to_ptr.hbm [resolvable:$true] %s3763_s22 }
 0x6c8   : > { %2732 = vst [vmem:[#allocation4 + $0x34] sm:$0x8] %v2731_v30  ;;  %v1702_v41 = vpop.permute.xlu1 %1701  ;;  %v1984_v45 = vsel %vm4639_vm6, %v1957_v31, %v1983_v42  ;;  %v1987_v37 = vsel %vm4639_vm6, %v1959_v32, %v1986_v46  ;;  %v1939_v42 = vld [vmem:[#allocation4 + $0x18] sm:$0x8]  ;;  %v1737_v31 = vld [vmem:[#allocation4 + $0x18] sm:$0x2]  ;;  %p3770_p1 = scmp.lt.s32.totalorder %s3764_s22, %s5077_s8 }
 0x6c9   : > { %v2734_v48 = vsel %vm4639_vm6, %v2703_v29, %v2733_v36  ;;  %v1729_v8 = vsel %vm4537_vm11, %v1702_v41, %v1728_v0  ;;  %1985 = vst [vmem:[#allocation4 + $0x8] sm:$0x8] %v1984_v45  ;;  %v1740_v32 = vld [vmem:[#allocation4 + $0x20] sm:$0x2]  ;;  %s3765_s13 = scalar_lea.hbm %s3764_s22, 256 }
 0x6ca   : > { %2735 = vst [vmem:[#allocation4 + $0x3c] sm:$0x8] %v2734_v48  ;;  %p3766_p6 = scmp.ne.s32.totalorder %s3764_s22, %s3765_s13  ;;  %p3771_p3 = scmp.lt.s32.totalorder %s3769_s20, %s3765_s13 }
 0x6cb   : > { %1730 = vst [vmem:[#allocation4] sm:$0x2] %v1729_v8 }
 0x6cc   : > { %1988 = vst [vmem:[#allocation4 + $0x10] sm:$0x8] %v1987_v37  ;;  %p3767_p13 = pnand %p3766_p6, %p3930_p11  ;;  %p3772_p4 = por %p3771_p3, %p3770_p1 }
 0x6cd   : > { %1968 = vrot.lane.b32.xlu0 %v4442_v35, %s3825_s29  ;;  %1966 = vrot.lane.b32.xlu2 %v4417_v39, %s3825_s29 }
 0x6ce   : > { %1867 = vrot.lane.b32.xlu1 %v4442_v35, %s3831_s25  ;;  %s3219_s25 = sshll.u32 %s4969_s26, 4  ;;  %p3768_p0 = pneg %p3767_p13  ;;  %s3220_s25 = int_to_ptr.vmem [resolvable:$true] %s3219_s25 }
 0x6cf   : > { %v1807_v47 = vpop.permute.xlu0 %1806  ;;  %v1912_v55 = vpop.permute.xlu2 %1911 }
 0x6d0   : > { %v1753_v53 = vpop.permute.xlu1 %1752  ;;  %v1836_v20 = vsel %vm4514_vm8, %v1807_v47, %v1835_v2  ;;  %v1943_v54 = vsel %vm4554_vm0, %v1912_v55, %v1942_v44  ;;  %v1686_v2 = vld [vmem:[#allocation4 + $0x18] sm:$0x1]  ;;  %p3773_p7 = pnand %p3772_p4, %p3768_p0 }
 0x6d1   : > { %1837 = vst [vmem:[#allocation4 + $0x10] sm:$0x4] %v1836_v20 }
 0x6d2   : > { %v1778_v56 = vld [vmem:[#allocation4] sm:$0x2]  ;;  %1944 = vst [vmem:[#allocation4 + $0x20] sm:$0x8] %v1943_v54 }
 0x6d3   : > { %v1779_v39 = vsel %vm4560_vm1, %v1753_v53, %v1778_v56 }
 0x6d4   : > { %1780 = vst [vmem:[#allocation4] sm:$0x2] %v1779_v39 }
 0x6d7   : > { %v1858_v58 = vpop.permute.xlu0 %1857  ;;  %v1660_v35 = vpop.permute.xlu2 %1659 }
 0x6d8   : > { %v1885_v43 = vld [vmem:[#allocation4 + $0x10] sm:$0x4]  ;;  %v1805_v59 = vpop.permute.xlu1 %1804  ;;  %v1690_v52 = vsel %vm4602_vm7, %v1660_v35, %v1689_v40 }
 0x6d9   : > { %v1886_v57 = vsel %vm4594_vm5, %v1858_v58, %v1885_v43  ;;  %v1833_v49 = vsel %vm4514_vm8, %v1805_v59, %v1832_v6  ;;  %1691 = vst [vmem:[#allocation4 + $0x20] sm:$0x1] %v1690_v52  ;;  %v1992_v4 = vld [vmem:[#allocation4 + $0x20] sm:$0x8]  ;;  %v1743_v6 = vld [vmem:[#allocation4 + $0x28] sm:$0x2] }
 0x6da   : > { %1887 = vst [vmem:[#allocation4 + $0x10] sm:$0x4] %v1886_v57  ;;  %v1746_v58 = vld [vmem:[#allocation4 + $0x30] sm:$0x2] }
 0x6db   : > { %1834 = vst [vmem:[#allocation4 + $0x8] sm:$0x4] %v1833_v49  ;;  %v3609_v1 = vld [vmem:[#allocation4] sm:$0xff] }
 0x6dc   : > { %3510 = vmatmul.msk.bf16.vlgmr.msra.gmra.mxu2 %vm440_vm12, %v3609_v1 }
 0x6df   : > { %v1811_v3 = vpop.permute.xlu0 %1810  ;;  %v1963_v62 = vpop.permute.xlu2 %1962 }
 0x6e0   : > { %v1842_v5 = vsel %vm4514_vm8, %v1811_v3, %v1841_v38  ;;  %v1856_v34 = vpop.permute.xlu1 %1855  ;;  %v1993_v12 = vsel %vm4639_vm6, %v1963_v62, %v1992_v4  ;;  %v1945_v38 = vld [vmem:[#allocation4 + $0x28] sm:$0x8]  ;;  %v1838_v3 = vld [vmem:[#allocation4 + $0x18] sm:$0x4] }
 0x6e1   : > { %1843 = vst [vmem:[#allocation4 + $0x20] sm:$0x4] %v1842_v5 }
 0x6e2   : > { %v1882_v15 = vld [vmem:[#allocation4 + $0x8] sm:$0x4]  ;;  %1994 = vst [vmem:[#allocation4 + $0x20] sm:$0x8] %v1993_v12 }
 0x6e3   : > { %v1883_v18 = vsel %vm4594_vm5, %v1856_v34, %v1882_v15 }
 0x6e4   : > { %1884 = vst [vmem:[#allocation4 + $0x8] sm:$0x4] %v1883_v18 }
 0x6e7   : > { %v1862_v16 = vpop.permute.xlu0 %1861  ;;  %v1916_v9 = vpop.permute.xlu2 %1915 }
 0x6e8   : > { %v1891_v19 = vld [vmem:[#allocation4 + $0x20] sm:$0x4]  ;;  %v1706_v51 = vpop.permute.xlu1 %1705  ;;  %v1949_v21 = vsel %vm4554_vm0, %v1916_v9, %v1948_v10  ;;  %v1749_v10 = vld [vmem:[#allocation4 + $0x38] sm:$0x2] }
 0x6e9   : > { %v1892_v22 = vsel %vm4594_vm5, %v1862_v16, %v1891_v19  ;;  %v1735_v61 = vsel %vm4537_vm11, %v1706_v51, %v1734_v11  ;;  %1950 = vst [vmem:[#allocation4 + $0x30] sm:$0x8] %v1949_v21  ;;  %v1692_v11 = vld [vmem:[#allocation4 + $0x28] sm:$0x1] }
 0x6ea   : > { %1893 = vst [vmem:[#allocation4 + $0x20] sm:$0x4] %v1892_v22 }
 0x6eb   : > { %1736 = vst [vmem:[#allocation4 + $0x10] sm:$0x2] %v1735_v61  ;;  %v3610_v14 = vld [vmem:[#allocation4 + $0x8] sm:$0xff] }
 0x6ec   : > { %3515 = vmatmul.msk.bf16.vlgmr.msra.gmra.mxu3 %vm440_vm12, %v3610_v14  ;;  %v1844_v14 = vld [vmem:[#allocation4 + $0x28] sm:$0x4] }
 0x6ef   : > { %v1815_v24 = vpop.permute.xlu0 %1814  ;;  %v1664_v25 = vpop.permute.xlu2 %1663 }
 0x6f0   : > { %v1848_v26 = vsel %vm4514_vm8, %v1815_v24, %v1847_v23  ;;  %v1757_v63 = vpop.permute.xlu1 %1756  ;;  %v1696_v0 = vsel %vm4602_vm7, %v1664_v25, %v1695_v28 }
 0x6f1   : > { %1849 = vst [vmem:[#allocation4 + $0x30] sm:$0x4] %v1848_v26 }
 0x6f2   : > { %v1784_v29 = vld [vmem:[#allocation4 + $0x10] sm:$0x2]  ;;  %1697 = vst [vmem:[#allocation4 + $0x30] sm:$0x1] %v1696_v0 }
 0x6f3   : > { %v1785_v30 = vsel %vm4560_vm1, %v1757_v63, %v1784_v29 }
 0x6f4   : > { %1786 = vst [vmem:[#allocation4 + $0x10] sm:$0x2] %v1785_v30 }
 0x6f7   : > { %v1910_v36 = vpop.permute.xlu0 %1909  ;;  %v1708_v41 = vpop.permute.xlu2 %1707 }
 0x6f8   : > { %v1940_v45 = vsel %vm4554_vm0, %v1910_v36, %v1939_v42  ;;  %v1710_v46 = vpop.permute.xlu1 %1709  ;;  %v1738_v48 = vsel %vm4537_vm11, %v1708_v41, %v1737_v31  ;;  %v1897_v30 = vld [vmem:[#allocation4 + $0x30] sm:$0x4]  ;;  %v1998_v31 = vld [vmem:[#allocation4 + $0x30] sm:$0x8] }
 0x6f9   : > { %1941 = vst [vmem:[#allocation4 + $0x18] sm:$0x8] %v1940_v45  ;;  %v1741_v8 = vsel %vm4537_vm11, %v1710_v46, %v1740_v32 }
 0x6fa   : > { %1742 = vst [vmem:[#allocation4 + $0x20] sm:$0x2] %v1741_v8  ;;  %v1951_v8 = vld [vmem:[#allocation4 + $0x38] sm:$0x8] }
 0x6fb   : > { %1739 = vst [vmem:[#allocation4 + $0x18] sm:$0x2] %v1738_v48  ;;  %v3611_v37 = vld [vmem:[#allocation4 + $0x10] sm:$0xff] }
 0x6fc   : > { %3520 = vmatmul.msk.bf16.vlgmr.msrb.gmra.mxu0 %vm440_vm12, %v3611_v37  ;;  %v1850_v37 = vld [vmem:[#allocation4 + $0x38] sm:$0x4] }
 0x6ff   : > { %v1658_v44 = vpop.permute.xlu0 %1657  ;;  %v1759_v47 = vpop.permute.xlu2 %1758 }
 0x700   : > { %v1687_v55 = vsel %vm4602_vm7, %v1658_v44, %v1686_v2  ;;  %v1761_v53 = vpop.permute.xlu1 %1760  ;;  %v1989_v40 = vld [vmem:[#allocation4 + $0x18] sm:$0x8] }
 0x701   : > { %1688 = vst [vmem:[#allocation4 + $0x18] sm:$0x1] %v1687_v55  ;;  %v1790_v20 = vld [vmem:[#allocation4 + $0x20] sm:$0x2] }
 0x702   : > { %v1791_v54 = vsel %vm4560_vm1, %v1761_v53, %v1790_v20  ;;  %v1787_v56 = vld [vmem:[#allocation4 + $0x18] sm:$0x2]  ;;  %v1698_v20 = vld [vmem:[#allocation4 + $0x38] sm:$0x1] }
 0x703   : > { %1792 = vst [vmem:[#allocation4 + $0x20] sm:$0x2] %v1791_v54  ;;  %v1788_v39 = vsel %vm4560_vm1, %v1759_v47, %v1787_v56 }
 0x704   : > { %1789 = vst [vmem:[#allocation4 + $0x18] sm:$0x2] %v1788_v39 }
 0x707   : > { %v1961_v35 = vpop.permute.xlu0 %1960  ;;  %v1712_v43 = vpop.permute.xlu2 %1711 }
 0x708   : > { %v1990_v59 = vsel %vm4639_vm6, %v1961_v35, %v1989_v40  ;;  %v1714_v52 = vpop.permute.xlu1 %1713  ;;  %v1744_v57 = vsel %vm4537_vm11, %v1712_v43, %v1743_v6 }
 0x709   : > { %1991 = vst [vmem:[#allocation4 + $0x18] sm:$0x8] %v1990_v59  ;;  %v1747_v49 = vsel %vm4537_vm11, %v1714_v52, %v1746_v58 }
 0x70a   : > { %1748 = vst [vmem:[#allocation4 + $0x30] sm:$0x2] %v1747_v49  ;;  %v3613_v1 = vld [vmem:[#allocation4 + $0x20] sm:$0xff] }
 0x70b   : > { %1745 = vst [vmem:[#allocation4 + $0x28] sm:$0x2] %v1744_v57  ;;  %3530 = vmatmul.msk.bf16.vlgmr.msrb.gmra.mxu2 %vm440_vm12, %v3613_v1 }
 0x70f   : > { %v1914_v4 = vpop.permute.xlu0 %1913  ;;  %v1763_v62 = vpop.permute.xlu2 %1762 }
 0x710   : > { %v1946_v5 = vsel %vm4554_vm0, %v1914_v4, %v1945_v38  ;;  %v1809_v34 = vpop.permute.xlu1 %1808 }
 0x711   : > { %1947 = vst [vmem:[#allocation4 + $0x28] sm:$0x8] %v1946_v5  ;;  %v1839_v12 = vsel %vm4514_vm8, %v1809_v34, %v1838_v3  ;;  %v1796_v39 = vld [vmem:[#allocation4 + $0x30] sm:$0x2] }
 0x712   : > { %1840 = vst [vmem:[#allocation4 + $0x18] sm:$0x4] %v1839_v12  ;;  %v1793_v15 = vld [vmem:[#allocation4 + $0x28] sm:$0x2] }
 0x713   : > { %v1794_v18 = vsel %vm4560_vm1, %v1763_v62, %v1793_v15 }
 0x714   : > { %1795 = vst [vmem:[#allocation4 + $0x28] sm:$0x2] %v1794_v18 }
 0x717   : > { %v1662_v16 = vpop.permute.xlu0 %1661  ;;  %v1716_v9 = vpop.permute.xlu2 %1715 }
 0x718   : > { %v1693_v19 = vsel %vm4602_vm7, %v1662_v16, %v1692_v11  ;;  %v1860_v51 = vpop.permute.xlu1 %1859  ;;  %v1750_v21 = vsel %vm4537_vm11, %v1716_v9, %v1749_v10  ;;  %v1995_v23 = vld [vmem:[#allocation4 + $0x28] sm:$0x8] }
 0x719   : > { %1694 = vst [vmem:[#allocation4 + $0x28] sm:$0x1] %v1693_v19  ;;  %v1888_v22 = vld [vmem:[#allocation4 + $0x18] sm:$0x4] }
 0x71a   : > { %v1889_v61 = vsel %vm4594_vm5, %v1860_v51, %v1888_v22  ;;  %1751 = vst [vmem:[#allocation4 + $0x38] sm:$0x2] %v1750_v21 }
 0x71b   : > { %1890 = vst [vmem:[#allocation4 + $0x18] sm:$0x4] %v1889_v61 }
 0x71f   : > { %v1965_v24 = vpop.permute.xlu0 %1964  ;;  %v1767_v28 = vpop.permute.xlu2 %1766 }
 0x720   : > { %v1996_v25 = vsel %vm4639_vm6, %v1965_v24, %v1995_v23  ;;  %v1813_v26 = vpop.permute.xlu1 %1812  ;;  %v3618_v23 = vld [vmem:[%s5076_s7] sm:$0xff] }
 0x721   : > { %1997 = vst [vmem:[#allocation4 + $0x28] sm:$0x8] %v1996_v25  ;;  %v1845_v13 = vsel %vm4514_vm8, %v1813_v26, %v1844_v14  ;;  %v1799_v63 = vld [vmem:[#allocation4 + $0x38] sm:$0x2] }
 0x722   : > { %1846 = vst [vmem:[#allocation4 + $0x28] sm:$0x4] %v1845_v13  ;;  %v1800_v0 = vsel %vm4560_vm1, %v1767_v28, %v1799_v63  ;;  %v3612_v29 = vld [vmem:[#allocation4 + $0x18] sm:$0xff]  ;;  %v3619_v63 = vld [vmem:[%s5076_s7 + $0x8] sm:$0xff] }
 0x723   : > { %1801 = vst [vmem:[#allocation4 + $0x38] sm:$0x2] %v1800_v0  ;;  %3525 = vmatmul.msk.bf16.vlgmr.msrb.gmra.mxu1 %vm440_vm12, %v3612_v29 }
 0x727   : > { %v1866_v42 = vpop.permute.xlu0 %1865  ;;  %v1967_v32 = vpop.permute.xlu2 %1966 }
 0x728   : > { %v1898_v36 = vsel %vm4594_vm5, %v1866_v42, %v1897_v30  ;;  %v1864_v41 = vpop.permute.xlu1 %1863  ;;  %v1999_v45 = vsel %vm4639_vm6, %v1967_v32, %v1998_v31 }
 0x729   : > { %1899 = vst [vmem:[#allocation4 + $0x30] sm:$0x4] %v1898_v36  ;;  %v1894_v46 = vld [vmem:[#allocation4 + $0x28] sm:$0x4] }
 0x72a   : > { %v1895_v48 = vsel %vm4594_vm5, %v1864_v41, %v1894_v46  ;;  %2000 = vst [vmem:[#allocation4 + $0x30] sm:$0x8] %v1999_v45 }
 0x72b   : > { %1896 = vst [vmem:[#allocation4 + $0x28] sm:$0x4] %v1895_v48 }
 0x72f   : > { %v1918_v2 = vpop.permute.xlu0 %1917 }
 0x730   : > { %v1952_v44 = vsel %vm4554_vm0, %v1918_v2, %v1951_v8  ;;  %v1817_v47 = vpop.permute.xlu1 %1816 }
 0x731   : > { %1953 = vst [vmem:[#allocation4 + $0x38] sm:$0x8] %v1952_v44  ;;  %v1851_v55 = vsel %vm4514_vm8, %v1817_v47, %v1850_v37  ;;  %vm3173_vm8 = vcmask 261120  }
 0x732   : > { %1852 = vst [vmem:[#allocation4 + $0x38] sm:$0x4] %v1851_v55  ;;  %v3614_v53 = vld [vmem:[#allocation4 + $0x28] sm:$0xff] }
 0x733   : > { %3535 = vmatmul.msk.bf16.vlgmr.msrb.gmra.mxu3 %vm440_vm12, %v3614_v53 }
 0x737   : > { %v1666_v54 = vpop.permute.xlu0 %1665 }
 0x738   : > { %v1699_v56 = vsel %vm4602_vm7, %v1666_v54, %v1698_v20  ;;  %v1765_v6 = vpop.permute.xlu1 %1764  ;;  %v2001_v58 = vld [vmem:[#allocation4 + $0x38] sm:$0x8] }
 0x739   : > { %1700 = vst [vmem:[#allocation4 + $0x38] sm:$0x1] %v1699_v56  ;;  %v1797_v33 = vsel %vm4560_vm1, %v1765_v6, %v1796_v39  ;;  %v1900_v35 = vld [vmem:[#allocation4 + $0x38] sm:$0x4] }
 0x73a   : > { %1798 = vst [vmem:[#allocation4 + $0x30] sm:$0x2] %v1797_v33 }
 0x73f   : > { %v1969_v40 = vpop.permute.xlu0 %1968 }
 0x740   : > { %v2002_v60 = vsel %vm4639_vm6, %v1969_v40, %v2001_v58  ;;  %v1868_v43 = vpop.permute.xlu1 %1867 }
 0x741   : > { %2003 = vst [vmem:[#allocation4 + $0x38] sm:$0x8] %v2002_v60  ;;  %v1901_v59 = vsel %vm4594_vm5, %v1868_v43, %v1900_v35  ;;  %v3615_v27 = vld [vmem:[#allocation4 + $0x30] sm:$0xff] }
 0x742   : > { %1902 = vst [vmem:[#allocation4 + $0x38] sm:$0x4] %v1901_v59  ;;  %3540 = vmatmul.msk.bf16.vlgmr.msra.gmra.mxu0 %vm440_vm12, %v3615_v27 }
 0x749   : > { %v3616_v52 = vld [vmem:[#allocation4 + $0x38] sm:$0xff] }
 0x74a   : > { %3545 = vmatmul.msk.bf16.vlgmr.msra.gmra.mxu1 %vm440_vm12, %v3616_v52 }
 0x75f   : > { %v2778_v50 = vpop.f32.mrf.mxu2 }
 0x760   : > { %v2941_v57 = vpack.c.bf16 %v2778_v50, %v2778_v50 }
 0x762   : > { %v2969_v38 = vunpack.c.l.b16 %v2941_v57 }
 0x767   : > { %v2780_v49 = vpop.f32.mrf.mxu2 }
 0x768   : > { %v2942_v1 = vpack.c.bf16 %v2780_v49, %v2780_v49 }
 0x76a   : > { %v2970_v7 = vunpack.c.l.b16 %v2942_v1 }
 0x76c   : > { %v2971_v3 = vpack.c.b16 %v2970_v7, %v2969_v38 }
 0x76e   : > { %2986 = vmatpush.bf16.msra.mxu2 %v2971_v3 }
 0x76f   : > { %v2800_v4 = vpop.f32.mrf.mxu3 }
 0x770   : > { %v2943_v62 = vpack.c.bf16 %v2800_v4, %v2800_v4 }
 0x771   : > { %3554 = vmatmul.msk.bf16.vlgmr.msra.gmra.mxu2 %vm440_vm12, %v3618_v23 }
 0x772   : > { %v3000_v12 = vunpack.c.l.b16 %v2943_v62 }
 0x777   : > { %v2802_v5 = vpop.f32.mrf.mxu3 }
 0x778   : > { %v2944_v17 = vpack.c.bf16 %v2802_v5, %v2802_v5 }
 0x779   : > { %v2822_v34 = vpop.f32.mrf.mxu0 }
 0x77a   : > { %v3001_v15 = vunpack.c.l.b16 %v2944_v17  ;;  %v2945_v10 = vpack.c.bf16 %v2822_v34, %v2822_v34 }
 0x77c   : > { %v3002_v18 = vpack.c.b16 %v3001_v15, %v3000_v12  ;;  %v3025_v9 = vunpack.c.l.b16 %v2945_v10 }
 0x77e   : > { %3011 = vmatpush.bf16.msra.mxu3 %v3002_v18 }
 0x781   : > { %v2824_v11 = vpop.f32.mrf.mxu0  ;;  %3556 = vmatmul.msk.bf16.vlgmr.msra.gmra.mxu3 %vm440_vm12, %v3618_v23  ;;  %3555 = vmatmul.msk.bf16.gmra.mxu2 %vm440_vm12, %v3619_v63 }
 0x782   : > { %v2946_v16 = vpack.c.bf16 %v2824_v11, %v2824_v11 }
 0x784   : > { %v3026_v19 = vunpack.c.l.b16 %v2946_v16 }
 0x786   : > { %v3027_v51 = vpack.c.b16 %v3026_v19, %v3025_v9 }
 0x788   : > { %3036 = vmatpush.bf16.msrb.mxu0 %v3027_v51 }
 0x78b   : > { %3558 = vmatmul.msk.bf16.vlgmr.msrb.gmra.mxu0 %vm440_vm12, %v3618_v23 }
 0x78e   : > { %v2866_v21 = vpop.f32.mrf.mxu2 }
 0x78f   : > { %v2949_v22 = vpack.c.bf16 %v2866_v21, %v2866_v21 }
 0x791   : > { %v3075_v24 = vunpack.c.l.b16 %v2949_v22  ;;  %3557 = vmatmul.msk.bf16.gmra.mxu3 %vm440_vm12, %v3619_v63 }
 0x796   : > { %v2868_v61 = vpop.f32.mrf.mxu2 }
 0x797   : > { %v2950_v14 = vpack.c.bf16 %v2868_v61, %v2868_v61 }
 0x799   : > { %v3076_v28 = vunpack.c.l.b16 %v2950_v14 }
 0x79b   : > { %v3077_v25 = vpack.c.b16 %v3076_v28, %v3075_v24  ;;  %3559 = vmatmul.msk.bf16.gmra.mxu0 %vm440_vm12, %v3619_v63 }
 0x79d   : > { %3086 = vmatpush.bf16.msrb.mxu2 %v3077_v25 }
 0x7a0   : > { %v2844_v26 = vpop.f32.mrf.mxu1  ;;  %3562 = vmatmul.msk.bf16.vlgmr.msrb.gmra.mxu2 %vm440_vm12, %v3618_v23 }
 0x7a1   : > { %v2947_v13 = vpack.c.bf16 %v2844_v26, %v2844_v26 }
 0x7a3   : > { %v3050_v30 = vunpack.c.l.b16 %v2947_v13 }
 0x7a8   : > { %v2846_v0 = vpop.f32.mrf.mxu1 }
 0x7a9   : > { %v2948_v29 = vpack.c.bf16 %v2846_v0, %v2846_v0 }
 0x7ab   : > { %v3051_v42 = vunpack.c.l.b16 %v2948_v29 }
 0x7ad   : > { %v3052_v31 = vpack.c.b16 %v3051_v42, %v3050_v30 }
 0x7af   : > { %3061 = vmatpush.bf16.msrb.mxu1 %v3052_v31 }
 0x7b0   : > { %3563 = vmatmul.msk.bf16.gmra.mxu2 %vm440_vm12, %v3619_v63 }
 0x7b2   : > { %3560 = vmatmul.msk.bf16.vlgmr.msrb.gmra.mxu1 %vm440_vm12, %v3618_v23 }
 0x7b6   : > { %v2888_v32 = vpop.f32.mrf.mxu3 }
 0x7b7   : > { %v2951_v36 = vpack.c.bf16 %v2888_v32, %v2888_v32 }
 0x7b9   : > { %v3100_v48 = vunpack.c.l.b16 %v2951_v36 }
 0x7be   : > { %v2890_v41 = vpop.f32.mrf.mxu3 }
 0x7bf   : > { %v2952_v45 = vpack.c.bf16 %v2890_v41, %v2890_v41  ;;  %v2910_v46 = vpop.f32.mrf.mxu0 }
 0x7c0   : > { %v2953_v2 = vpack.c.bf16 %v2910_v46, %v2910_v46 }
 0x7c1   : > { %v3101_v8 = vunpack.c.l.b16 %v2952_v45 }
 0x7c2   : > { %3561 = vmatmul.msk.bf16.gmra.mxu1 %vm440_vm12, %v3619_v63  ;;  %v3125_v53 = vunpack.c.l.b16 %v2953_v2 }
 0x7c3   : > { %v3102_v37 = vpack.c.b16 %v3101_v8, %v3100_v48 }
 0x7c5   : > { %3111 = vmatpush.bf16.msrb.mxu3 %v3102_v37 }
 0x7c7   : > { %v2912_v44 = vpop.f32.mrf.mxu0  ;;  %v2932_v47 = vpop.f32.mrf.mxu1 }
 0x7c8   : > { %v2954_v55 = vpack.c.bf16 %v2912_v44, %v2912_v44  ;;  %3564 = vmatmul.msk.bf16.vlgmr.msrb.gmra.mxu3 %vm440_vm12, %v3618_v23  ;;  %v2955_v56 = vpack.c.bf16 %v2932_v47, %v2932_v47 }
 0x7ca   : > { %v3126_v20 = vunpack.c.l.b16 %v2954_v55  ;;  %v3150_v33 = vunpack.c.l.b16 %v2955_v56 }
 0x7cc   : > { %v3127_v54 = vpack.c.b16 %v3126_v20, %v3125_v53 }
 0x7ce   : > { %3136 = vmatpush.bf16.msra.mxu0 %v3127_v54 }
 0x7cf   : > { %v2934_v39 = vpop.f32.mrf.mxu1 }
 0x7d0   : > { %v2956_v6 = vpack.c.bf16 %v2934_v39, %v2934_v39 }
 0x7d1   : > { %3566 = vmatmul.msk.bf16.vlgmr.msra.gmra.mxu0 %vm440_vm12, %v3618_v23 }
 0x7d2   : > { %v3151_v58 = vunpack.c.l.b16 %v2956_v6 }
 0x7d4   : > { %v3152_v40 = vpack.c.b16 %v3151_v58, %v3150_v33 }
 0x7d6   : > { %3161 = vmatpush.bf16.msra.mxu1 %v3152_v40 }
 0x7d8   : > { %3565 = vmatmul.msk.bf16.gmra.mxu3 %vm440_vm12, %v3619_v63 }
 0x7d9   : > { %3568 = vmatmul.msk.bf16.vlgmr.msra.gmra.mxu1 %vm440_vm12, %v3618_v23 }
 0x7e1   : > { %3567 = vmatmul.msk.bf16.gmra.mxu0 %vm440_vm12, %v3619_v63 }
 0x7e9   : > { %3569 = vmatmul.msk.bf16.gmra.mxu1 %vm440_vm12, %v3619_v63 }
 0x7f4   : > { %v2988_v35 = vpop.f32.mrf.mxu2 }
 0x7f5   : > { %3174 = vst.msk [vmem:[%s4969_s26] sm:$0xff] %vm3173_vm8, %v2988_v35 }
 0x7fc   : > { %v2990_v27 = vpop.f32.mrf.mxu2 }
 0x7fd   : > { %3175 = vst.msk [vmem:[%s4969_s26 + $0x8] sm:$0xff] %vm3173_vm8, %v2990_v27 }
 0x804   : > { %v3013_v43 = vpop.f32.mrf.mxu3  ;;  %v2993_v57 = vpop.f32.mrf.mxu2 }
 0x805   : > { %3178 = vst.msk [vmem:[%s4969_s26 + $0x20] sm:$0xff] %vm3173_vm8, %v3013_v43 }
 0x806   : > { %3176 = vst.msk [vmem:[%s4969_s26 + $0x10] sm:$0xff] %vm3173_vm8, %v2993_v57 }
 0x808   : > { %v3038_v60 = vpop.f32.mrf.mxu0 }
 0x809   : > { %3182 = vst.msk [vmem:[%s4969_s26 + $0x40] sm:$0xff] %vm3173_vm8, %v3038_v60 }
 0x80c   : > { %v3015_v52 = vpop.f32.mrf.mxu3  ;;  %v2995_v7 = vpop.f32.mrf.mxu2 }
 0x80d   : > { %3179 = vst.msk [vmem:[%s4969_s26 + $0x28] sm:$0xff] %vm3173_vm8, %v3015_v52 }
 0x80e   : > { %3177 = vst.msk [vmem:[%s4969_s26 + $0x18] sm:$0xff] %vm3173_vm8, %v2995_v7 }
 0x810   : > { %v3040_v59 = vpop.f32.mrf.mxu0 }
 0x811   : > { %3183 = vst.msk [vmem:[%s4969_s26 + $0x48] sm:$0xff] %vm3173_vm8, %v3040_v59 }
 0x814   : > { %v3018_v49 = vpop.f32.mrf.mxu3 }
 0x815   : > { %3180 = vst.msk [vmem:[%s4969_s26 + $0x30] sm:$0xff] %vm3173_vm8, %v3018_v49 }
 0x818   : > { %v3043_v50 = vpop.f32.mrf.mxu0 }
 0x819   : > { %3184 = vst.msk [vmem:[%s4969_s26 + $0x50] sm:$0xff] %vm3173_vm8, %v3043_v50 }
 0x81c   : > { %v3020_v3 = vpop.f32.mrf.mxu3 }
 0x81d   : > { %3181 = vst.msk [vmem:[%s4969_s26 + $0x38] sm:$0xff] %vm3173_vm8, %v3020_v3 }
 0x820   : > { %v3045_v38 = vpop.f32.mrf.mxu0 }
 0x821   : > { %3185 = vst.msk [vmem:[%s4969_s26 + $0x58] sm:$0xff] %vm3173_vm8, %v3045_v38 }
 0x823   : > { %v3088_v62 = vpop.f32.mrf.mxu2 }
 0x824   : > { %3190 = vst.msk [vmem:[%s4969_s26 + $0x80] sm:$0xff] %vm3173_vm8, %v3088_v62 }
 0x82b   : > { %v3090_v17 = vpop.f32.mrf.mxu2 }
 0x82c   : > { %3191 = vst.msk [vmem:[%s4969_s26 + $0x88] sm:$0xff] %vm3173_vm8, %v3090_v17 }
 0x82f   : > { %v3063_v1 = vpop.f32.mrf.mxu1 }
 0x830   : > { %3186 = vst.msk [vmem:[%s4969_s26 + $0x60] sm:$0xff] %vm3173_vm8, %v3063_v1 }
 0x833   : > { %v3093_v15 = vpop.f32.mrf.mxu2 }
 0x834   : > { %3192 = vst.msk [vmem:[%s4969_s26 + $0x90] sm:$0xff] %vm3173_vm8, %v3093_v15 }
 0x837   : > { %v3065_v4 = vpop.f32.mrf.mxu1 }
 0x838   : > { %3187 = vst.msk [vmem:[%s4969_s26 + $0x68] sm:$0xff] %vm3173_vm8, %v3065_v4 }
 0x83b   : > { %v3095_v11 = vpop.f32.mrf.mxu2 }
 0x83c   : > { %3193 = vst.msk [vmem:[%s4969_s26 + $0x98] sm:$0xff] %vm3173_vm8, %v3095_v11 }
 0x83f   : > { %v3068_v5 = vpop.f32.mrf.mxu1 }
 0x840   : > { %3188 = vst.msk [vmem:[%s4969_s26 + $0x70] sm:$0xff] %vm3173_vm8, %v3068_v5 }
 0x847   : > { %v3070_v34 = vpop.f32.mrf.mxu1 }
 0x848   : > { %3189 = vst.msk [vmem:[%s4969_s26 + $0x78] sm:$0xff] %vm3173_vm8, %v3070_v34 }
 0x84b   : > { %v3113_v12 = vpop.f32.mrf.mxu3 }
 0x84c   : > { %3194 = vst.msk [vmem:[%s4969_s26 + $0xa0] sm:$0xff] %vm3173_vm8, %v3113_v12 }
 0x84e   : > { %v3138_v18 = vpop.f32.mrf.mxu0 }
 0x84f   : > { %3198 = vst.msk [vmem:[%s4969_s26 + $0xc0] sm:$0xff] %vm3173_vm8, %v3138_v18 }
 0x853   : > { %v3115_v10 = vpop.f32.mrf.mxu3 }
 0x854   : > { %3195 = vst.msk [vmem:[%s4969_s26 + $0xa8] sm:$0xff] %vm3173_vm8, %v3115_v10 }
 0x856   : > { %v3163_v16 = vpop.f32.mrf.mxu1  ;;  %v3140_v9 = vpop.f32.mrf.mxu0 }
 0x857   : > { %3202 = vst.msk [vmem:[%s4969_s26 + $0xe0] sm:$0xff] %vm3173_vm8, %v3163_v16 }
 0x858   : > { %3199 = vst.msk [vmem:[%s4969_s26 + $0xc8] sm:$0xff] %vm3173_vm8, %v3140_v9 }
 0x85b   : > { %v3118_v19 = vpop.f32.mrf.mxu3 }
 0x85c   : > { %3196 = vst.msk [vmem:[%s4969_s26 + $0xb0] sm:$0xff] %vm3173_vm8, %v3118_v19 }
 0x85e   : > { %v3165_v51 = vpop.f32.mrf.mxu1  ;;  %v3143_v21 = vpop.f32.mrf.mxu0 }
 0x85f   : > { %3203 = vst.msk [vmem:[%s4969_s26 + $0xe8] sm:$0xff] %vm3173_vm8, %v3165_v51 }
 0x860   : > { %3200 = vst.msk [vmem:[%s4969_s26 + $0xd0] sm:$0xff] %vm3173_vm8, %v3143_v21 }
 0x863   : > { %v3120_v22 = vpop.f32.mrf.mxu3 }
 0x864   : > { %3197 = vst.msk [vmem:[%s4969_s26 + $0xb8] sm:$0xff] %vm3173_vm8, %v3120_v22 }
 0x866   : > { %v3168_v61 = vpop.f32.mrf.mxu1  ;;  %v3145_v14 = vpop.f32.mrf.mxu0 }
 0x867   : > { %3204 = vst.msk [vmem:[%s4969_s26 + $0xf0] sm:$0xff] %vm3173_vm8, %v3168_v61 }
 0x868   : > { %3201 = vst.msk [vmem:[%s4969_s26 + $0xd8] sm:$0xff] %vm3173_vm8, %v3145_v14 }
 0x86e   : > { %v3170_v23 = vpop.f32.mrf.mxu1 }
 0x86f   : > { %3205 = vst.msk [vmem:[%s4969_s26 + $0xf8] sm:$0xff] %vm3173_vm8, %v3170_v23 }
 0x870   : > { %3776 = shalt.err (!%p3773_p7)
}
 0x871   : > { %s3833_s19 = smov 128   ;;  %s3834_s26 = smov 8  }
 0x872   : > { %3623 = dma.vmem_to_hbm [thread:$0]  (%p3930_p11), %s3220_s25, 4096, %s3222_s21, %s3207_s9, %s3833_s19, %s3833_s19, %s3834_s26  }
 0x873 PF: > { %s3236_s16 = sand.u32 1, %s3803_s27   ;;  %p5102_p5 = scmp.ge.s32.totalorder %s3815_s30, 2 }
 0x874   : > { %s3237_s24 = scalar_lea.sflag [#allocation7], %s3236_s16 }
 0x875   : > { %p3630_p8 = pnand %p5102_p5, %p3934_p12 }
 0x877   : > { %p3631_p10 = pneg %p3630_p8 }
 0x879   : > { %3798 = dma.done.wait (%p3631_p10), %s3237_s24, 4096  }
 0x87a   : > { %3800 = vsyncadd (%p3631_p10), %s3237_s24, 4294963200  ;;  %s5103_s10 = sld [smem:[#allocation11_spill]]  ;;  %p21_p2 = scmp.ge.s32.totalorder %s3905_s11, 4  }
 0x87b   : > { %s5104_s29 = sld [smem:[#allocation12_spill]]  ;;  %s5105_s27 = smov %s3807_s28 }
 0x87c   : > { %s5107_s30 = smov %s3905_s11  ;;  %23 = sbr.rel (!%p21_p2) target bundleno = 5 (0x5), region = 106 }
 0x880   : > { %s5106_s28 = smov %s5103_s10 }
 0x881   :  { %3243 = vsyncpa [#allocation6], 1 }
 0x882   :  { %3245 = vsyncpa [#allocation6 + $0x1], 1 }
 0x883   :  { %3246 = vsyncpa [#allocation7], 1 }
 0x884   :  { %3248 = vsyncpa [#allocation7 + $0x1], 1 }

</bundles_post_ra>
